<compile_context>
chip_gen: v6e
topology: v6e:2x2x1
jax: 0.10.0
libtpu: 0.0.40
codegen_flags: <defaults>
</compile_context>

<pallas_src>
import jax
import jax.numpy as jnp
from jax.experimental import pallas as pl
from jax.experimental.pallas import tpu as pltpu


CPAD = 128          # conv-weight out-channel lane padding (GEMM N stays 128)
FC1_PAD = 256       # fc1 width 200 -> 256 (VMEM-only, never hits HBM)
FC2_PAD = 128       # fc2 / fc3 widths 10 / 1 -> 128 (VMEM-only)
MXU_DTYPE = jnp.float32   # flip to jnp.bfloat16 on v6e/v7x for MXU throughput

_CONV_CFG = ((1, 16), (16, 32), (32, 64), (64, 128))   # (Cin, Cout) per layer

_VMEM = pl.BlockSpec(memory_space=pltpu.MemorySpace.VMEM)


def _round8(n):
    return (n + 7) // 8 * 8


# ---------------------------------------------------------------------------
# Pallas kernels
# ---------------------------------------------------------------------------
def _conv_pool_kernel(a_ref, w_ref, b_ref, o_ref):
    """Fused conv GEMM + bias + ReLU + 2x2 max-pool, as ONE stacked GEMM.

    a_ref: [4*Mp, K]  im2col patches, the 4 pooling phases stacked along rows
                      (Mp rows per phase; Mp is a multiple of 8 so the phase
                      row-slices below are sublane-aligned).
    w_ref: [K, 128]   conv weights (K = 25*Cin), out-channels zero-padded.
    b_ref: [1, 128]   bias (zero-padded).
    o_ref: [Mp, Cout] pooled activations at the REAL channel width.

    relu(max_p(conv_p) + bias) == max_p(relu(conv_p + bias)): (+bias) and relu
    are monotone, so the pool commutes with the epilogue.
    """
    mp, cout = o_ref.shape
    acc = jnp.dot(a_ref[...].astype(MXU_DTYPE), w_ref[...].astype(MXU_DTYPE),
                  preferred_element_type=jnp.float32)            # [4*Mp, 128]
    pooled = jnp.maximum(jnp.maximum(acc[0:mp], acc[mp:2 * mp]),
                         jnp.maximum(acc[2 * mp:3 * mp], acc[3 * mp:4 * mp]))
    act = jnp.maximum(pooled + b_ref[...], 0.0)                  # [Mp, 128]
    o_ref[...] = act[:, :cout].astype(o_ref.dtype)               # real channels


def _conv4_mlp_kernel(a_ref, w4_ref, b4_ref, w1_ref, b1_ref, w2_ref, b2_ref,
                      w3_ref, b3_ref, o_ref):
    """conv4 (stacked GEMM + bias + ReLU + pool) chained into fc1->fc2->fc3.

    Only used when conv4's pooled spatial size is 1x1 (L == 16): its pooled
    rows [B, 128] are exactly fc1's input, so no flatten/transpose is needed.
    Zero-padded batch rows flow through harmlessly and are sliced off outside.
    """
    mp = o_ref.shape[0]
    acc = jnp.dot(a_ref[...].astype(MXU_DTYPE), w4_ref[...].astype(MXU_DTYPE),
                  preferred_element_type=jnp.float32)            # [4*Mp, 128]
    pooled = jnp.maximum(jnp.maximum(acc[0:mp], acc[mp:2 * mp]),
                         jnp.maximum(acc[2 * mp:3 * mp], acc[3 * mp:4 * mp]))
    h = jnp.maximum(pooled + b4_ref[...], 0.0)                   # [Mp, 128]
    h = jnp.dot(h.astype(MXU_DTYPE), w1_ref[...].astype(MXU_DTYPE),
                preferred_element_type=jnp.float32)
    h = jnp.maximum(h + b1_ref[...], 0.0)
    h = jnp.dot(h.astype(MXU_DTYPE), w2_ref[...].astype(MXU_DTYPE),
                preferred_element_type=jnp.float32)
    h = jnp.maximum(h + b2_ref[...], 0.0)
    h = jnp.dot(h.astype(MXU_DTYPE), w3_ref[...].astype(MXU_DTYPE),
                preferred_element_type=jnp.float32)
    o_ref[...] = (h + b3_ref[...]).astype(o_ref.dtype)


def _mlp_kernel(x_ref, w1_ref, b1_ref, w2_ref, b2_ref, w3_ref, b3_ref, o_ref):
    """Fused FC tail (general-L fallback): fc1 -> ReLU -> fc2 -> ReLU -> fc3."""
    h = jnp.dot(x_ref[...].astype(MXU_DTYPE), w1_ref[...].astype(MXU_DTYPE),
                preferred_element_type=jnp.float32)
    h = jnp.maximum(h + b1_ref[...], 0.0)
    h = jnp.dot(h.astype(MXU_DTYPE), w2_ref[...].astype(MXU_DTYPE),
                preferred_element_type=jnp.float32)
    h = jnp.maximum(h + b2_ref[...], 0.0)
    h = jnp.dot(h.astype(MXU_DTYPE), w3_ref[...].astype(MXU_DTYPE),
                preferred_element_type=jnp.float32)
    o_ref[...] = (h + b3_ref[...]).astype(o_ref.dtype)


# ---------------------------------------------------------------------------
# pallas_call wrappers (whole-array VMEM, no grid: everything is tiny at B=2)
# ---------------------------------------------------------------------------
def _conv_pool(a, w, b, mp, cout):
    k = a.shape[1]
    flops = 2 * a.shape[0] * k * w.shape[1]
    nbytes = 4 * (a.size + w.size + b.size + mp * cout)
    return pl.pallas_call(
        _conv_pool_kernel,
        out_shape=jax.ShapeDtypeStruct((mp, cout), jnp.float32),
        in_specs=[_VMEM, _VMEM, _VMEM],
        out_specs=_VMEM,
        cost_estimate=pl.CostEstimate(flops=flops, transcendentals=0,
                                      bytes_accessed=nbytes),
    )(a, w, b)


def _conv4_mlp(a, kp, mp):
    k = a.shape[1]
    flops = 2 * (a.shape[0] * k * CPAD
                 + mp * (CPAD * FC1_PAD + FC1_PAD * FC2_PAD + FC2_PAD * FC2_PAD))
    nbytes = 4 * (a.size + kp["cw4"].size + kp["fw1"].size + kp["fw2"].size
                  + kp["fw3"].size + mp * FC2_PAD)
    return pl.pallas_call(
        _conv4_mlp_kernel,
        out_shape=jax.ShapeDtypeStruct((mp, FC2_PAD), jnp.float32),
        in_specs=[_VMEM] * 9,
        out_specs=_VMEM,
        cost_estimate=pl.CostEstimate(flops=flops, transcendentals=0,
                                      bytes_accessed=nbytes),
    )(a, kp["cw4"], kp["cb4"], kp["fw1"], kp["fb1"],
      kp["fw2"], kp["fb2"], kp["fw3"], kp["fb3"])


def _mlp(x, kp):
    m = x.shape[0]
    flops = 2 * m * (x.shape[1] * FC1_PAD + FC1_PAD * FC2_PAD + FC2_PAD * FC2_PAD)
    nbytes = 4 * (x.size + kp["fw1"].size + kp["fw2"].size + kp["fw3"].size
                  + m * FC2_PAD)
    return pl.pallas_call(
        _mlp_kernel,
        out_shape=jax.ShapeDtypeStruct((m, FC2_PAD), jnp.float32),
        in_specs=[_VMEM] * 7,
        out_specs=_VMEM,
        cost_estimate=pl.CostEstimate(flops=flops, transcendentals=0,
                                      bytes_accessed=nbytes),
    )(x, kp["fw1"], kp["fb1"], kp["fw2"], kp["fb2"], kp["fw3"], kp["fb3"])


# ---------------------------------------------------------------------------
# Glue: phase-stacked im2col (one small XLA fusion per layer boundary)
# ---------------------------------------------------------------------------
def _phase_im2col(x, row_pad=0):
    """NHWC activation -> phase-stacked im2col patches.

    x: [B, H, W, C] -> [4 * (M + row_pad), 25*C] with M = B*(H//2)*(W//2).
    Pooling phase p = 2*py + px occupies rows [p*Mp, (p+1)*Mp) (Mp = M+row_pad,
    padding rows are zero); row m of a phase holds the 5x5xC patch for conv
    output position (2i+py, 2j+px) with m = (b*(H//2) + i)*(W//2) + j.  Column
    order is (dy, dx, c), matching the weight layout from prepare_params.
    """
    bsz, h, w, c = x.shape
    assert h % 2 == 0 and w % 2 == 0, (h, w)
    ho, wo = h // 2, w // 2
    xp = jnp.pad(x, ((0, 0), (2, 2), (2, 2), (0, 0)))
    phases = []
    for py in range(2):
        for px in range(2):
            taps = []
            for dy in range(5):
                for dx in range(5):
                    ys, xs = py + dy, px + dx
                    taps.append(xp[:, ys:ys + 2 * ho - 1:2,
                                   xs:xs + 2 * wo - 1:2, :])
            phase = jnp.concatenate(taps, axis=-1).reshape(bsz * ho * wo, 25 * c)
            if row_pad:
                phase = jnp.pad(phase, ((0, row_pad), (0, 0)))
            phases.append(phase)
    return jnp.concatenate(phases, axis=0)


# ---------------------------------------------------------------------------
# Parameters: synthetic init in PyTorch layouts + conversion to kernel layouts
# ---------------------------------------------------------------------------
def init_params(key, L):
    """Deterministic synthetic parameters in the PyTorch layouts of CNN_Reg."""
    ks = jax.random.split(key, 14)

    def conv(k, cin, cout):                       # nn.Conv2d: [Cout, Cin, 5, 5]
        return jax.random.normal(k, (cout, cin, 5, 5), jnp.float32) / jnp.sqrt(25 * cin)

    def lin(k, fin, fout):                        # nn.Linear: [out, in]
        return jax.random.normal(k, (fout, fin), jnp.float32) / jnp.sqrt(fin)

    fc1_in = 128 * (L // 16) * (L // 16)
    p = {}
    for i, (cin, cout) in enumerate(_CONV_CFG, start=1):
        p[f"conv{i}_w"] = conv(ks[2 * i - 2], cin, cout)
        p[f"conv{i}_b"] = jax.random.normal(ks[2 * i - 1], (cout,), jnp.float32) * 0.01
    p["fc1_w"] = lin(ks[8], fc1_in, 200)
    p["fc1_b"] = jax.random.normal(ks[9], (200,), jnp.float32) * 0.01
    p["fc2_w"] = lin(ks[10], 200, 10)
    p["fc2_b"] = jax.random.normal(ks[11], (10,), jnp.float32) * 0.01
    p["fc3_w"] = lin(ks[12], 10, 1)
    p["fc3_b"] = jax.random.normal(ks[13], (1,), jnp.float32) * 0.01
    return p


def prepare_params(p):
    """Convert PyTorch-layout params to kernel layouts (done once, outside jit).

    conv: [Cout, Cin, 5, 5] -> [(dy, dx, cin), Cout], zero-padded to 128 lanes
          (GEMM N stays lane-dense; kernels store only the real Cout columns).
    fc  : nn.Linear [out, in] -> [in, out], zero-padded to 256/128/128 lanes.
          Zero padding keeps the math exact; FC intermediates never hit HBM.
    """
    def pad_cols(a, n):
        return jnp.pad(a, ((0, 0), (0, n - a.shape[1])))

    kp = {}
    for i, (cin, cout) in enumerate(_CONV_CFG, start=1):
        w = jnp.transpose(p[f"conv{i}_w"], (2, 3, 1, 0)).reshape(25 * cin, cout)
        kp[f"cw{i}"] = pad_cols(w, CPAD)
        kp[f"cb{i}"] = pad_cols(p[f"conv{i}_b"].reshape(1, -1), CPAD)
    kp["fw1"] = pad_cols(p["fc1_w"].T, FC1_PAD)
    kp["fb1"] = pad_cols(p["fc1_b"].reshape(1, -1), FC1_PAD)
    kp["fw2"] = jnp.pad(p["fc2_w"].T, ((0, FC1_PAD - 200), (0, FC2_PAD - 10)))
    kp["fb2"] = pad_cols(p["fc2_b"].reshape(1, -1), FC2_PAD)
    kp["fw3"] = jnp.pad(p["fc3_w"].T, ((0, FC2_PAD - 10), (0, FC2_PAD - 1)))
    kp["fb3"] = pad_cols(p["fc3_b"].reshape(1, -1), FC2_PAD)
    return kp


# ---------------------------------------------------------------------------
# Forward pass (mirrors CNN_Reg.forward)
# ---------------------------------------------------------------------------
def cnn_reg_forward(kp, x_nchw):
    x = jnp.transpose(x_nchw, (0, 2, 3, 1)).astype(jnp.float32)   # NCHW -> NHWC

    # conv1..conv3: phase-stacked im2col (XLA glue) + fused conv/pool kernel.
    for i in (1, 2, 3):
        cout = _CONV_CFG[i - 1][1]
        bsz, h, w, _ = x.shape
        ho, wo = h // 2, w // 2
        m = bsz * ho * wo
        mp = _round8(m)
        a = _phase_im2col(x, row_pad=mp - m)                      # [4*mp, 25*Cin]
        o = _conv_pool(a, kp[f"cw{i}"], kp[f"cb{i}"], mp, cout)   # [mp, Cout]
        x = o[:m].reshape(bsz, ho, wo, cout)                      # real channels

    # conv4 (+ MLP fused when its pooled spatial size is 1x1, i.e. L == 16).
    bsz, h, w, _ = x.shape
    ho, wo = h // 2, w // 2
    m = bsz * ho * wo
    mp = _round8(m)
    a = _phase_im2col(x, row_pad=mp - m)                          # [4*mp, 1600]
    if ho == 1 and wo == 1:
        out = _conv4_mlp(a, kp, mp)                               # [mp, 128]
        return out[:bsz, :1]                                      # real fc3 column

    # General-L fallback: separate conv4 kernel, NCHW flatten, MLP kernel.
    o = _conv_pool(a, kp["cw4"], kp["cb4"], mp, 128)
    x = o[:m].reshape(bsz, ho, wo, 128)
    feat = jnp.transpose(x, (0, 3, 1, 2)).reshape(bsz, -1)        # PyTorch flatten
    out = _mlp(feat, kp)
    return out[:, :1]


if __name__ == "__main__":
    L = 16                                                        # input spatial size
    B = 2
    key = jax.random.PRNGKey(0)
    k_param, k_x = jax.random.split(key)

    params = prepare_params(init_params(k_param, L))              # layout conv. once
    x = jax.random.normal(k_x, (B, 1, L, L), jnp.float32)         # NCHW like PyTorch

    out = jax.jit(cnn_reg_forward)(params, x)
    out = jax.block_until_ready(out)
    assert out.shape == (B, 1), out.shape
    print("KERNEL_OK")
</pallas_src>

<mosaic_0001>
module attributes {stable_mosaic.version = 11 : i64} {
  func.func @_conv_pool_kernel(%arg0: memref<512x25xf32, #tpu.memory_space<vmem>>, %arg1: memref<25x128xf32, #tpu.memory_space<vmem>>, %arg2: memref<1x128xf32, #tpu.memory_space<vmem>>, %arg3: memref<128x16xf32, #tpu.memory_space<vmem>>) attributes {dimension_semantics = [], scalar_prefetch = 0 : i64, scratch_operands = 0 : i64, tpu.core_type = #tpu.core_type<tc>} {
    %c0 = arith.constant 0 : index
    %c0_0 = arith.constant 0 : index
    %0 = vector.load %arg0[%c0, %c0_0] : memref<512x25xf32, #tpu.memory_space<vmem>>, vector<512x25xf32>
    %c0_1 = arith.constant 0 : index
    %c0_2 = arith.constant 0 : index
    %1 = vector.load %arg1[%c0_1, %c0_2] : memref<25x128xf32, #tpu.memory_space<vmem>>, vector<25x128xf32>
    %cst = arith.constant dense<0.000000e+00> : vector<512x128xf32>
    %2 = tpu.matmul %0, %1, %cst {dimension_numbers = #tpu.dot_dimension_numbers<[1], [0], [0], [1], [0, 0, 1, 1], [], []>} : vector<512x25xf32>, vector<25x128xf32>, vector<512x128xf32> -> vector<512x128xf32>
    %3 = vector.extract_strided_slice %2 {offsets = [0, 0], sizes = [128, 128], strides = [1, 1]} : vector<512x128xf32> to vector<128x128xf32>
    %4 = vector.extract_strided_slice %2 {offsets = [128, 0], sizes = [128, 128], strides = [1, 1]} : vector<512x128xf32> to vector<128x128xf32>
    %5 = arith.maximumf %3, %4 : vector<128x128xf32>
    %6 = vector.extract_strided_slice %2 {offsets = [256, 0], sizes = [128, 128], strides = [1, 1]} : vector<512x128xf32> to vector<128x128xf32>
    %7 = vector.extract_strided_slice %2 {offsets = [384, 0], sizes = [128, 128], strides = [1, 1]} : vector<512x128xf32> to vector<128x128xf32>
    %8 = arith.maximumf %6, %7 : vector<128x128xf32>
    %9 = arith.maximumf %5, %8 : vector<128x128xf32>
    %c0_3 = arith.constant 0 : index
    %c0_4 = arith.constant 0 : index
    %10 = vector.load %arg2[%c0_3, %c0_4] : memref<1x128xf32, #tpu.memory_space<vmem>>, vector<1x128xf32>
    %11 = vector.broadcast %10 : vector<1x128xf32> to vector<128x128xf32>
    %12 = arith.addf %9, %11 : vector<128x128xf32>
    %cst_5 = arith.constant 0.000000e+00 : f32
    %13 = vector.broadcast %cst_5 : f32 to vector<128x128xf32>
    %14 = arith.maximumf %12, %13 : vector<128x128xf32>
    %15 = vector.extract_strided_slice %14 {offsets = [0, 0], sizes = [128, 16], strides = [1, 1]} : vector<128x128xf32> to vector<128x16xf32>
    %c0_6 = arith.constant 0 : index
    %c0_7 = arith.constant 0 : index
    %16 = vector.load %arg3[%c0_6, %c0_7] : memref<128x16xf32, #tpu.memory_space<vmem>>, vector<128x16xf32>
    tpu.vector_store %arg3[%c0_6, %c0_7], %15 {strides = array<i32>} : memref<128x16xf32, #tpu.memory_space<vmem>>, vector<128x16xf32>,
    return
  }
}

module attributes {stable_mosaic.version = 11 : i64} {
  func.func @_conv_pool_kernel(%arg0: memref<128x400xf32, #tpu.memory_space<vmem>>, %arg1: memref<400x128xf32, #tpu.memory_space<vmem>>, %arg2: memref<1x128xf32, #tpu.memory_space<vmem>>, %arg3: memref<32x32xf32, #tpu.memory_space<vmem>>) attributes {dimension_semantics = [], scalar_prefetch = 0 : i64, scratch_operands = 0 : i64, tpu.core_type = #tpu.core_type<tc>} {
    %c0 = arith.constant 0 : index
    %c0_0 = arith.constant 0 : index
    %0 = vector.load %arg0[%c0, %c0_0] : memref<128x400xf32, #tpu.memory_space<vmem>>, vector<128x400xf32>
    %c0_1 = arith.constant 0 : index
    %c0_2 = arith.constant 0 : index
    %1 = vector.load %arg1[%c0_1, %c0_2] : memref<400x128xf32, #tpu.memory_space<vmem>>, vector<400x128xf32>
    %cst = arith.constant dense<0.000000e+00> : vector<128x128xf32>
    %2 = tpu.matmul %0, %1, %cst {dimension_numbers = #tpu.dot_dimension_numbers<[1], [0], [0], [1], [0, 0, 1, 1], [], []>} : vector<128x400xf32>, vector<400x128xf32>, vector<128x128xf32> -> vector<128x128xf32>
    %3 = vector.extract_strided_slice %2 {offsets = [0, 0], sizes = [32, 128], strides = [1, 1]} : vector<128x128xf32> to vector<32x128xf32>
    %4 = vector.extract_strided_slice %2 {offsets = [32, 0], sizes = [32, 128], strides = [1, 1]} : vector<128x128xf32> to vector<32x128xf32>
    %5 = arith.maximumf %3, %4 : vector<32x128xf32>
    %6 = vector.extract_strided_slice %2 {offsets = [64, 0], sizes = [32, 128], strides = [1, 1]} : vector<128x128xf32> to vector<32x128xf32>
    %7 = vector.extract_strided_slice %2 {offsets = [96, 0], sizes = [32, 128], strides = [1, 1]} : vector<128x128xf32> to vector<32x128xf32>
    %8 = arith.maximumf %6, %7 : vector<32x128xf32>
    %9 = arith.maximumf %5, %8 : vector<32x128xf32>
    %c0_3 = arith.constant 0 : index
    %c0_4 = arith.constant 0 : index
    %10 = vector.load %arg2[%c0_3, %c0_4] : memref<1x128xf32, #tpu.memory_space<vmem>>, vector<1x128xf32>
    %11 = vector.broadcast %10 : vector<1x128xf32> to vector<32x128xf32>
    %12 = arith.addf %9, %11 : vector<32x128xf32>
    %cst_5 = arith.constant 0.000000e+00 : f32
    %13 = vector.broadcast %cst_5 : f32 to vector<32x128xf32>
    %14 = arith.maximumf %12, %13 : vector<32x128xf32>
    %15 = vector.extract_strided_slice %14 {offsets = [0, 0], sizes = [32, 32], strides = [1, 1]} : vector<32x128xf32> to vector<32x32xf32>
    %c0_6 = arith.constant 0 : index
    %c0_7 = arith.constant 0 : index
    %16 = vector.load %arg3[%c0_6, %c0_7] : memref<32x32xf32, #tpu.memory_space<vmem>>, vector<32x32xf32>
    tpu.vector_store %arg3[%c0_6, %c0_7], %15 {strides = array<i32>} : memref<32x32xf32, #tpu.memory_space<vmem>>, vector<32x32xf32>,
    return
  }
}

module attributes {stable_mosaic.version = 11 : i64} {
  func.func @_conv_pool_kernel(%arg0: memref<32x800xf32, #tpu.memory_space<vmem>>, %arg1: memref<800x128xf32, #tpu.memory_space<vmem>>, %arg2: memref<1x128xf32, #tpu.memory_space<vmem>>, %arg3: memref<8x64xf32, #tpu.memory_space<vmem>>) attributes {dimension_semantics = [], scalar_prefetch = 0 : i64, scratch_operands = 0 : i64, tpu.core_type = #tpu.core_type<tc>} {
    %c0 = arith.constant 0 : index
    %c0_0 = arith.constant 0 : index
    %0 = vector.load %arg0[%c0, %c0_0] : memref<32x800xf32, #tpu.memory_space<vmem>>, vector<32x800xf32>
    %c0_1 = arith.constant 0 : index
    %c0_2 = arith.constant 0 : index
    %1 = vector.load %arg1[%c0_1, %c0_2] : memref<800x128xf32, #tpu.memory_space<vmem>>, vector<800x128xf32>
    %cst = arith.constant dense<0.000000e+00> : vector<32x128xf32>
    %2 = tpu.matmul %0, %1, %cst {dimension_numbers = #tpu.dot_dimension_numbers<[1], [0], [0], [1], [0, 0, 1, 1], [], []>} : vector<32x800xf32>, vector<800x128xf32>, vector<32x128xf32> -> vector<32x128xf32>
    %3 = vector.extract_strided_slice %2 {offsets = [0, 0], sizes = [8, 128], strides = [1, 1]} : vector<32x128xf32> to vector<8x128xf32>
    %4 = vector.extract_strided_slice %2 {offsets = [8, 0], sizes = [8, 128], strides = [1, 1]} : vector<32x128xf32> to vector<8x128xf32>
    %5 = arith.maximumf %3, %4 : vector<8x128xf32>
    %6 = vector.extract_strided_slice %2 {offsets = [16, 0], sizes = [8, 128], strides = [1, 1]} : vector<32x128xf32> to vector<8x128xf32>
    %7 = vector.extract_strided_slice %2 {offsets = [24, 0], sizes = [8, 128], strides = [1, 1]} : vector<32x128xf32> to vector<8x128xf32>
    %8 = arith.maximumf %6, %7 : vector<8x128xf32>
    %9 = arith.maximumf %5, %8 : vector<8x128xf32>
    %c0_3 = arith.constant 0 : index
    %c0_4 = arith.constant 0 : index
    %10 = vector.load %arg2[%c0_3, %c0_4] : memref<1x128xf32, #tpu.memory_space<vmem>>, vector<1x128xf32>
    %11 = vector.broadcast %10 : vector<1x128xf32> to vector<8x128xf32>
    %12 = arith.addf %9, %11 : vector<8x128xf32>
    %cst_5 = arith.constant 0.000000e+00 : f32
    %13 = vector.broadcast %cst_5 : f32 to vector<8x128xf32>
    %14 = arith.maximumf %12, %13 : vector<8x128xf32>
    %15 = vector.extract_strided_slice %14 {offsets = [0, 0], sizes = [8, 64], strides = [1, 1]} : vector<8x128xf32> to vector<8x64xf32>
    %c0_6 = arith.constant 0 : index
    %c0_7 = arith.constant 0 : index
    %16 = vector.load %arg3[%c0_6, %c0_7] : memref<8x64xf32, #tpu.memory_space<vmem>>, vector<8x64xf32>
    tpu.vector_store %arg3[%c0_6, %c0_7], %15 {strides = array<i32>} : memref<8x64xf32, #tpu.memory_space<vmem>>, vector<8x64xf32>,
    return
  }
}

module attributes {stable_mosaic.version = 11 : i64} {
  func.func @_conv4_mlp_kernel(%arg0: memref<32x1600xf32, #tpu.memory_space<vmem>>, %arg1: memref<1600x128xf32, #tpu.memory_space<vmem>>, %arg2: memref<1x128xf32, #tpu.memory_space<vmem>>, %arg3: memref<128x256xf32, #tpu.memory_space<vmem>>, %arg4: memref<1x256xf32, #tpu.memory_space<vmem>>, %arg5: memref<256x128xf32, #tpu.memory_space<vmem>>, %arg6: memref<1x128xf32, #tpu.memory_space<vmem>>, %arg7: memref<128x128xf32, #tpu.memory_space<vmem>>, %arg8: memref<1x128xf32, #tpu.memory_space<vmem>>, %arg9: memref<8x128xf32, #tpu.memory_space<vmem>>) attributes {dimension_semantics = [], scalar_prefetch = 0 : i64, scratch_operands = 0 : i64, tpu.core_type = #tpu.core_type<tc>} {
    %c0 = arith.constant 0 : index
    %c0_0 = arith.constant 0 : index
    %0 = vector.load %arg0[%c0, %c0_0] : memref<32x1600xf32, #tpu.memory_space<vmem>>, vector<32x1600xf32>
    %c0_1 = arith.constant 0 : index
    %c0_2 = arith.constant 0 : index
    %1 = vector.load %arg1[%c0_1, %c0_2] : memref<1600x128xf32, #tpu.memory_space<vmem>>, vector<1600x128xf32>
    %cst = arith.constant dense<0.000000e+00> : vector<32x128xf32>
    %2 = tpu.matmul %0, %1, %cst {dimension_numbers = #tpu.dot_dimension_numbers<[1], [0], [0], [1], [0, 0, 1, 1], [], []>} : vector<32x1600xf32>, vector<1600x128xf32>, vector<32x128xf32> -> vector<32x128xf32>
    %3 = vector.extract_strided_slice %2 {offsets = [0, 0], sizes = [8, 128], strides = [1, 1]} : vector<32x128xf32> to vector<8x128xf32>
    %4 = vector.extract_strided_slice %2 {offsets = [8, 0], sizes = [8, 128], strides = [1, 1]} : vector<32x128xf32> to vector<8x128xf32>
    %5 = arith.maximumf %3, %4 : vector<8x128xf32>
    %6 = vector.extract_strided_slice %2 {offsets = [16, 0], sizes = [8, 128], strides = [1, 1]} : vector<32x128xf32> to vector<8x128xf32>
    %7 = vector.extract_strided_slice %2 {offsets = [24, 0], sizes = [8, 128], strides = [1, 1]} : vector<32x128xf32> to vector<8x128xf32>
    %8 = arith.maximumf %6, %7 : vector<8x128xf32>
    %9 = arith.maximumf %5, %8 : vector<8x128xf32>
    %c0_3 = arith.constant 0 : index
    %c0_4 = arith.constant 0 : index
    %10 = vector.load %arg2[%c0_3, %c0_4] : memref<1x128xf32, #tpu.memory_space<vmem>>, vector<1x128xf32>
    %11 = vector.broadcast %10 : vector<1x128xf32> to vector<8x128xf32>
    %12 = arith.addf %9, %11 : vector<8x128xf32>
    %cst_5 = arith.constant 0.000000e+00 : f32
    %13 = vector.broadcast %cst_5 : f32 to vector<8x128xf32>
    %14 = arith.maximumf %12, %13 : vector<8x128xf32>
    %c0_6 = arith.constant 0 : index
    %c0_7 = arith.constant 0 : index
    %15 = vector.load %arg3[%c0_6, %c0_7] : memref<128x256xf32, #tpu.memory_space<vmem>>, vector<128x256xf32>
    %cst_8 = arith.constant dense<0.000000e+00> : vector<8x256xf32>
    %16 = tpu.matmul %14, %15, %cst_8 {dimension_numbers = #tpu.dot_dimension_numbers<[1], [0], [0], [1], [0, 0, 1, 1], [], []>} : vector<8x128xf32>, vector<128x256xf32>, vector<8x256xf32> -> vector<8x256xf32>
    %c0_9 = arith.constant 0 : index
    %c0_10 = arith.constant 0 : index
    %17 = vector.load %arg4[%c0_9, %c0_10] : memref<1x256xf32, #tpu.memory_space<vmem>>, vector<1x256xf32>
    %18 = vector.broadcast %17 : vector<1x256xf32> to vector<8x256xf32>
    %19 = arith.addf %16, %18 : vector<8x256xf32>
    %cst_11 = arith.constant 0.000000e+00 : f32
    %20 = vector.broadcast %cst_11 : f32 to vector<8x256xf32>
    %21 = arith.maximumf %19, %20 : vector<8x256xf32>
    %c0_12 = arith.constant 0 : index
    %c0_13 = arith.constant 0 : index
    %22 = vector.load %arg5[%c0_12, %c0_13] : memref<256x128xf32, #tpu.memory_space<vmem>>, vector<256x128xf32>
    %cst_14 = arith.constant dense<0.000000e+00> : vector<8x128xf32>
    %23 = tpu.matmul %21, %22, %cst_14 {dimension_numbers = #tpu.dot_dimension_numbers<[1], [0], [0], [1], [0, 0, 1, 1], [], []>} : vector<8x256xf32>, vector<256x128xf32>, vector<8x128xf32> -> vector<8x128xf32>
    %c0_15 = arith.constant 0 : index
    %c0_16 = arith.constant 0 : index
    %24 = vector.load %arg6[%c0_15, %c0_16] : memref<1x128xf32, #tpu.memory_space<vmem>>, vector<1x128xf32>
    %25 = vector.broadcast %24 : vector<1x128xf32> to vector<8x128xf32>
    %26 = arith.addf %23, %25 : vector<8x128xf32>
    %cst_17 = arith.constant 0.000000e+00 : f32
    %27 = vector.broadcast %cst_17 : f32 to vector<8x128xf32>
    %28 = arith.maximumf %26, %27 : vector<8x128xf32>
    %c0_18 = arith.constant 0 : index
    %c0_19 = arith.constant 0 : index
    %29 = vector.load %arg7[%c0_18, %c0_19] : memref<128x128xf32, #tpu.memory_space<vmem>>, vector<128x128xf32>
    %cst_20 = arith.constant dense<0.000000e+00> : vector<8x128xf32>
    %30 = tpu.matmul %28, %29, %cst_20 {dimension_numbers = #tpu.dot_dimension_numbers<[1], [0], [0], [1], [0, 0, 1, 1], [], []>} : vector<8x128xf32>, vector<128x128xf32>, vector<8x128xf32> -> vector<8x128xf32>
    %c0_21 = arith.constant 0 : index
    %c0_22 = arith.constant 0 : index
    %31 = vector.load %arg8[%c0_21, %c0_22] : memref<1x128xf32, #tpu.memory_space<vmem>>, vector<1x128xf32>
    %32 = vector.broadcast %31 : vector<1x128xf32> to vector<8x128xf32>
    %33 = arith.addf %30, %32 : vector<8x128xf32>
    %c0_23 = arith.constant 0 : index
    %c0_24 = arith.constant 0 : index
    %34 = vector.load %arg9[%c0_23, %c0_24] : memref<8x128xf32, #tpu.memory_space<vmem>>, vector<8x128xf32>
    tpu.vector_store %arg9[%c0_23, %c0_24], %33 {strides = array<i32>} : memref<8x128xf32, #tpu.memory_space<vmem>>, vector<8x128xf32>,
    return
  }
}

</mosaic_0001>

<bundles_post_ra>
// kernel: cnn_reg_forward.4
= control target key start
LH: loop header
LB: loop body
LE: loop exit
PB: predicated region body
PF: predicated region fallthrough
CT: control target
= control target key end

     0   :  { %vm275_vm0 = vcmask 1040384   ;;  %vm82_vm1 = vcmask 203776   ;;  %vm751_vm2 = vcmask 130048   ;;  %s1460_s1 = inlined_call_operand.vmem [shape: f32[25,128], index: 1, kind: input, shape index: {}]   ;;  %s1461_s0 = inlined_call_operand.vmem [shape: f32[512,25], index: 0, kind: input, shape index: {}]   ;;  %s1462_s2 = inlined_call_operand.vmem [shape: f32[1,128], index: 2, kind: input, shape index: {}]   ;;  %s1463_s3 = inlined_call_operand.vmem [shape: f32[128,16], index: 3, kind: output, shape index: {}]  }
   0x1   :  { %v81_v0 = vld [vmem:[%s1460_s1 + $0x18] sm:$0x1]  ;;  %v80_v1 = vld [vmem:[%s1460_s1 + $0x10] sm:$0xff]  ;;  %v79_v2 = vld [vmem:[%s1460_s1 + $0x8] sm:$0xff] }
   0x2   :  { %906 = vmatprep.subr.msk.mxu0 %vm275_vm0, %v81_v0  ;;  %1010 = vmatprep.subr.msk.mxu1 %vm275_vm0, %v81_v0  ;;  %v78_v3 = vld [vmem:[%s1460_s1] sm:$0xff]  ;;  %v15_v6 = vld [vmem:[%s1461_s0 + $0x8] sm:$0xff]  ;;  %v16_v8 = vld [vmem:[%s1461_s0 + $0x10] sm:$0xff] }
   0x3   :  { %907 = vmatpush3.msk.msra.mxu0 %vm275_vm0, %v81_v0  ;;  %1014 = vmatpush3.msk.msra.mxu1 %vm275_vm0, %v81_v0  ;;  %v14_v4 = vld [vmem:[%s1461_s0] sm:$0xff]  ;;  %v47_v7 = vld [vmem:[%s1461_s0 + $0x108] sm:$0xff]  ;;  %v48_v9 = vld [vmem:[%s1461_s0 + $0x110] sm:$0xff] }
   0x4   :  { %908 = vmatprep.subr.mxu0 %v80_v1  ;;  %1011 = vmatprep.subr.mxu1 %v80_v1  ;;  %v46_v5 = vld [vmem:[%s1461_s0 + $0x100] sm:$0xff]  ;;  %v17_v10 = vld [vmem:[%s1461_s0 + $0x18] sm:$0xff]  ;;  %v19_v14 = vld [vmem:[%s1461_s0 + $0x28] sm:$0xff] }
   0x5   :  { %909 = vmatpush3.msra.mxu0 %v80_v1  ;;  %1015 = vmatpush3.msra.mxu1 %v80_v1  ;;  %v49_v11 = vld [vmem:[%s1461_s0 + $0x118] sm:$0xff]  ;;  %v18_v12 = vld [vmem:[%s1461_s0 + $0x20] sm:$0xff]  ;;  %v51_v15 = vld [vmem:[%s1461_s0 + $0x128] sm:$0xff] }
   0x6   :  { %910 = vmatprep.subr.mxu0 %v79_v2  ;;  %1012 = vmatprep.subr.mxu1 %v79_v2  ;;  %v50_v13 = vld [vmem:[%s1461_s0 + $0x120] sm:$0xff]  ;;  %v20_v16 = vld [vmem:[%s1461_s0 + $0x30] sm:$0xff]  ;;  %v21_v18 = vld [vmem:[%s1461_s0 + $0x38] sm:$0xff] }
   0x7   :  { %911 = vmatpush3.msra.mxu0 %v79_v2  ;;  %1016 = vmatpush3.msra.mxu1 %v79_v2  ;;  %v52_v17 = vld [vmem:[%s1461_s0 + $0x130] sm:$0xff]  ;;  %v53_v19 = vld [vmem:[%s1461_s0 + $0x138] sm:$0xff]  ;;  %v22_v20 = vld [vmem:[%s1461_s0 + $0x40] sm:$0xff] }
   0x8   :  { %912 = vmatprep.subr.mxu0 %v78_v3  ;;  %1013 = vmatprep.subr.mxu1 %v78_v3  ;;  %v54_v21 = vld [vmem:[%s1461_s0 + $0x140] sm:$0xff]  ;;  %v23_v22 = vld [vmem:[%s1461_s0 + $0x48] sm:$0xff]  ;;  %v24_v24 = vld [vmem:[%s1461_s0 + $0x50] sm:$0xff] }
   0x9   :  { %913 = vmatpush3.msra.mxu0 %v78_v3  ;;  %1017 = vmatpush3.msra.mxu1 %v78_v3  ;;  %v55_v23 = vld [vmem:[%s1461_s0 + $0x148] sm:$0xff]  ;;  %v56_v25 = vld [vmem:[%s1461_s0 + $0x150] sm:$0xff]  ;;  %v25_v26 = vld [vmem:[%s1461_s0 + $0x58] sm:$0xff] }
   0xa   :  { %914 = vmatprep.mubr.msk.f32.mxu0 %vm82_vm1, %v14_v4  ;;  %962 = vmatprep.mubr.msk.f32.mxu1 %vm82_vm1, %v46_v5  ;;  %v57_v27 = vld [vmem:[%s1461_s0 + $0x158] sm:$0xff]  ;;  %v26_v28 = vld [vmem:[%s1461_s0 + $0x60] sm:$0xff]  ;;  %v27_v30 = vld [vmem:[%s1461_s0 + $0x68] sm:$0xff] }
   0xb   :  { %915 = vmatmul.mubr.msk.f32.vlgmr.msra.gmra.mxu0 %vm82_vm1, %v15_v6  ;;  %963 = vmatmul.mubr.msk.f32.vlgmr.msra.gmra.mxu1 %vm82_vm1, %v47_v7  ;;  %v58_v29 = vld [vmem:[%s1461_s0 + $0x160] sm:$0xff]  ;;  %v59_v31 = vld [vmem:[%s1461_s0 + $0x168] sm:$0xff]  ;;  %v28_v32 = vld [vmem:[%s1461_s0 + $0x70] sm:$0xff] }
   0xc   :  { %917 = vmatprep.mubr.msk.f32.mxu0 %vm82_vm1, %v16_v8  ;;  %965 = vmatprep.mubr.msk.f32.mxu1 %vm82_vm1, %v48_v9  ;;  %v60_v33 = vld [vmem:[%s1461_s0 + $0x170] sm:$0xff]  ;;  %v29_v34 = vld [vmem:[%s1461_s0 + $0x78] sm:$0xff]  ;;  %v30_v36 = vld [vmem:[%s1461_s0 + $0x80] sm:$0xff] }
   0xd   :  { %v61_v35 = vld [vmem:[%s1461_s0 + $0x178] sm:$0xff]  ;;  %v62_v37 = vld [vmem:[%s1461_s0 + $0x180] sm:$0xff]  ;;  %v31_v38 = vld [vmem:[%s1461_s0 + $0x88] sm:$0xff] }
   0xe   :  { %v63_v39 = vld [vmem:[%s1461_s0 + $0x188] sm:$0xff]  ;;  %v32_v40 = vld [vmem:[%s1461_s0 + $0x90] sm:$0xff]  ;;  %v33_v42 = vld [vmem:[%s1461_s0 + $0x98] sm:$0xff] }
   0xf   :  { %918 = vmatmul.mubr.msk.f32.gmra.mxu0 %vm82_vm1, %v17_v10  ;;  %966 = vmatmul.mubr.msk.f32.gmra.mxu1 %vm82_vm1, %v49_v11  ;;  %v64_v41 = vld [vmem:[%s1461_s0 + $0x190] sm:$0xff]  ;;  %v65_v43 = vld [vmem:[%s1461_s0 + $0x198] sm:$0xff]  ;;  %v34_v44 = vld [vmem:[%s1461_s0 + $0xa0] sm:$0xff] }
  0x10   :  { %920 = vmatprep.mubr.msk.f32.mxu0 %vm82_vm1, %v18_v12  ;;  %968 = vmatprep.mubr.msk.f32.mxu1 %vm82_vm1, %v50_v13  ;;  %v66_v45 = vld [vmem:[%s1461_s0 + $0x1a0] sm:$0xff]  ;;  %v35_v46 = vld [vmem:[%s1461_s0 + $0xa8] sm:$0xff]  ;;  %v36_v48 = vld [vmem:[%s1461_s0 + $0xb0] sm:$0xff] }
  0x11   :  { %v67_v47 = vld [vmem:[%s1461_s0 + $0x1a8] sm:$0xff]  ;;  %v68_v49 = vld [vmem:[%s1461_s0 + $0x1b0] sm:$0xff]  ;;  %v37_v50 = vld [vmem:[%s1461_s0 + $0xb8] sm:$0xff] }
  0x12   :  { %v69_v51 = vld [vmem:[%s1461_s0 + $0x1b8] sm:$0xff]  ;;  %v38_v52 = vld [vmem:[%s1461_s0 + $0xc0] sm:$0xff]  ;;  %v39_v54 = vld [vmem:[%s1461_s0 + $0xc8] sm:$0xff] }
  0x13   :  { %921 = vmatmul.mubr.msk.f32.gmra.mxu0 %vm82_vm1, %v19_v14  ;;  %969 = vmatmul.mubr.msk.f32.gmra.mxu1 %vm82_vm1, %v51_v15  ;;  %v70_v53 = vld [vmem:[%s1461_s0 + $0x1c0] sm:$0xff]  ;;  %v71_v55 = vld [vmem:[%s1461_s0 + $0x1c8] sm:$0xff]  ;;  %v40_v56 = vld [vmem:[%s1461_s0 + $0xd0] sm:$0xff] }
  0x14   :  { %923 = vmatprep.mubr.msk.f32.mxu0 %vm82_vm1, %v20_v16  ;;  %971 = vmatprep.mubr.msk.f32.mxu1 %vm82_vm1, %v52_v17  ;;  %v72_v57 = vld [vmem:[%s1461_s0 + $0x1d0] sm:$0xff]  ;;  %v41_v58 = vld [vmem:[%s1461_s0 + $0xd8] sm:$0xff]  ;;  %v42_v60 = vld [vmem:[%s1461_s0 + $0xe0] sm:$0xff] }
  0x15   :  { %v73_v59 = vld [vmem:[%s1461_s0 + $0x1d8] sm:$0xff]  ;;  %v74_v61 = vld [vmem:[%s1461_s0 + $0x1e0] sm:$0xff]  ;;  %v43_v62 = vld [vmem:[%s1461_s0 + $0xe8] sm:$0xff] }
  0x16   :  { %v75_v63 = vld [vmem:[%s1461_s0 + $0x1e8] sm:$0xff]  ;;  %v44_v0 = vld [vmem:[%s1461_s0 + $0xf0] sm:$0xff]  ;;  %v45_v2 = vld [vmem:[%s1461_s0 + $0xf8] sm:$0xff] }
  0x17   :  { %924 = vmatmul.mubr.msk.f32.gmra.mxu0 %vm82_vm1, %v21_v18  ;;  %972 = vmatmul.mubr.msk.f32.gmra.mxu1 %vm82_vm1, %v53_v19  ;;  %v76_v1 = vld [vmem:[%s1461_s0 + $0x1f0] sm:$0xff]  ;;  %v77_v3 = vld [vmem:[%s1461_s0 + $0x1f8] sm:$0xff] }
  0x18   :  { %926 = vmatprep.mubr.msk.f32.mxu0 %vm82_vm1, %v22_v20  ;;  %974 = vmatprep.mubr.msk.f32.mxu1 %vm82_vm1, %v54_v21 }
  0x1b   :  { %927 = vmatmul.mubr.msk.f32.gmra.mxu0 %vm82_vm1, %v23_v22  ;;  %975 = vmatmul.mubr.msk.f32.gmra.mxu1 %vm82_vm1, %v55_v23 }
  0x1c   :  { %929 = vmatprep.mubr.msk.f32.mxu0 %vm82_vm1, %v24_v24  ;;  %977 = vmatprep.mubr.msk.f32.mxu1 %vm82_vm1, %v56_v25 }
  0x1f   :  { %930 = vmatmul.mubr.msk.f32.gmra.mxu0 %vm82_vm1, %v25_v26  ;;  %978 = vmatmul.mubr.msk.f32.gmra.mxu1 %vm82_vm1, %v57_v27 }
  0x20   :  { %932 = vmatprep.mubr.msk.f32.mxu0 %vm82_vm1, %v26_v28  ;;  %980 = vmatprep.mubr.msk.f32.mxu1 %vm82_vm1, %v58_v29 }
  0x23   :  { %933 = vmatmul.mubr.msk.f32.gmra.mxu0 %vm82_vm1, %v27_v30  ;;  %981 = vmatmul.mubr.msk.f32.gmra.mxu1 %vm82_vm1, %v59_v31 }
  0x24   :  { %935 = vmatprep.mubr.msk.f32.mxu0 %vm82_vm1, %v28_v32  ;;  %983 = vmatprep.mubr.msk.f32.mxu1 %vm82_vm1, %v60_v33 }
  0x27   :  { %936 = vmatmul.mubr.msk.f32.gmra.mxu0 %vm82_vm1, %v29_v34  ;;  %984 = vmatmul.mubr.msk.f32.gmra.mxu1 %vm82_vm1, %v61_v35 }
  0x28   :  { %938 = vmatprep.mubr.msk.f32.mxu0 %vm82_vm1, %v30_v36  ;;  %986 = vmatprep.mubr.msk.f32.mxu1 %vm82_vm1, %v62_v37 }
  0x2b   :  { %939 = vmatmul.mubr.msk.f32.gmra.mxu0 %vm82_vm1, %v31_v38  ;;  %987 = vmatmul.mubr.msk.f32.gmra.mxu1 %vm82_vm1, %v63_v39 }
  0x2c   :  { %941 = vmatprep.mubr.msk.f32.mxu0 %vm82_vm1, %v32_v40  ;;  %989 = vmatprep.mubr.msk.f32.mxu1 %vm82_vm1, %v64_v41  ;;  %v1355_v40 = vld [vmem:[%s1462_s2] ss:$0 sm:$0xff] }
  0x2f   :  { %942 = vmatmul.mubr.msk.f32.gmra.mxu0 %vm82_vm1, %v33_v42  ;;  %990 = vmatmul.mubr.msk.f32.gmra.mxu1 %vm82_vm1, %v65_v43 }
  0x30   :  { %944 = vmatprep.mubr.msk.f32.mxu0 %vm82_vm1, %v34_v44  ;;  %992 = vmatprep.mubr.msk.f32.mxu1 %vm82_vm1, %v66_v45 }
  0x33   :  { %945 = vmatmul.mubr.msk.f32.gmra.mxu0 %vm82_vm1, %v35_v46  ;;  %993 = vmatmul.mubr.msk.f32.gmra.mxu1 %vm82_vm1, %v67_v47 }
  0x34   :  { %947 = vmatprep.mubr.msk.f32.mxu0 %vm82_vm1, %v36_v48  ;;  %995 = vmatprep.mubr.msk.f32.mxu1 %vm82_vm1, %v68_v49 }
  0x37   :  { %948 = vmatmul.mubr.msk.f32.gmra.mxu0 %vm82_vm1, %v37_v50  ;;  %996 = vmatmul.mubr.msk.f32.gmra.mxu1 %vm82_vm1, %v69_v51 }
  0x38   :  { %950 = vmatprep.mubr.msk.f32.mxu0 %vm82_vm1, %v38_v52  ;;  %998 = vmatprep.mubr.msk.f32.mxu1 %vm82_vm1, %v70_v53 }
  0x3b   :  { %951 = vmatmul.mubr.msk.f32.gmra.mxu0 %vm82_vm1, %v39_v54  ;;  %999 = vmatmul.mubr.msk.f32.gmra.mxu1 %vm82_vm1, %v71_v55 }
  0x3c   :  { %953 = vmatprep.mubr.msk.f32.mxu0 %vm82_vm1, %v40_v56  ;;  %1001 = vmatprep.mubr.msk.f32.mxu1 %vm82_vm1, %v72_v57 }
  0x3f   :  { %954 = vmatmul.mubr.msk.f32.gmra.mxu0 %vm82_vm1, %v41_v58  ;;  %1002 = vmatmul.mubr.msk.f32.gmra.mxu1 %vm82_vm1, %v73_v59 }
  0x40   :  { %956 = vmatprep.mubr.msk.f32.mxu0 %vm82_vm1, %v42_v60  ;;  %1004 = vmatprep.mubr.msk.f32.mxu1 %vm82_vm1, %v74_v61 }
  0x43   :  { %957 = vmatmul.mubr.msk.f32.gmra.mxu0 %vm82_vm1, %v43_v62  ;;  %1005 = vmatmul.mubr.msk.f32.gmra.mxu1 %vm82_vm1, %v75_v63 }
  0x44   :  { %959 = vmatprep.mubr.msk.f32.mxu0 %vm82_vm1, %v44_v0  ;;  %1007 = vmatprep.mubr.msk.f32.mxu1 %vm82_vm1, %v76_v1 }
  0x47   :  { %960 = vmatmul.mubr.msk.f32.gmra.mxu0 %vm82_vm1, %v45_v2  ;;  %1008 = vmatmul.mubr.msk.f32.gmra.mxu1 %vm82_vm1, %v77_v3 }
  0xcb   :  { %v916_v4 = vpop.f32.mrf.mxu0  ;;  %v964_v5 = vpop.f32.mrf.mxu1 }
  0xcd   :  { %v345_v6 = vpop.f32.mrf.mxu0  ;;  %v505_v7 = vpop.f32.mrf.mxu1 }
  0xcf   :  { %v919_v8 = vpop.f32.mrf.mxu0  ;;  %v967_v9 = vpop.f32.mrf.mxu1 }
  0xd1   :  { %v355_v10 = vpop.f32.mrf.mxu0  ;;  %v515_v11 = vpop.f32.mrf.mxu1 }
  0xd3   :  { %v1306_v12 = vpop.f32.mrf.mxu0  ;;  %v970_v13 = vpop.f32.mrf.mxu1 }
  0xd5   :  { %v1308_v14 = vpop.f32.mrf.mxu0  ;;  %v1310_v15 = vpop.f32.mrf.mxu1 }
  0xd7   :  { %v1312_v16 = vpop.f32.mrf.mxu0  ;;  %v1314_v17 = vpop.f32.mrf.mxu1 }
  0xd9   :  { %v1316_v18 = vpop.f32.mrf.mxu0  ;;  %v1318_v19 = vpop.f32.mrf.mxu1 }
  0xdb   :  { %v1320_v20 = vpop.f32.mrf.mxu0  ;;  %v1322_v21 = vpop.f32.mrf.mxu1 }
  0xdd   :  { %v1324_v22 = vpop.f32.mrf.mxu0  ;;  %v1326_v23 = vpop.f32.mrf.mxu1 }
  0xdf   :  { %v1328_v24 = vpop.f32.mrf.mxu0  ;;  %v1330_v25 = vpop.f32.mrf.mxu1 }
  0xe1   :  { %v1332_v26 = vpop.f32.mrf.mxu0  ;;  %v1334_v27 = vpop.f32.mrf.mxu1 }
  0xe3   :  { %v1336_v28 = vpop.f32.mrf.mxu0  ;;  %v1338_v29 = vpop.f32.mrf.mxu1 }
  0xe5   :  { %v1340_v30 = vpop.f32.mrf.mxu0  ;;  %v1342_v31 = vpop.f32.mrf.mxu1 }
  0xe7   :  { %v1344_v32 = vpop.f32.mrf.mxu0  ;;  %v1346_v33 = vpop.f32.mrf.mxu1 }
  0xe9   :  { %v1348_v34 = vpop.f32.mrf.mxu0  ;;  %v1350_v35 = vpop.f32.mrf.mxu1 }
  0xeb   :  { %v940_v36 = vpop.f32.mrf.mxu0  ;;  %v988_v37 = vpop.f32.mrf.mxu1 }
  0xec   :  { %v665_v38 = vmax.f32 %v916_v4, %v940_v36  ;;  %v681_v39 = vmax.f32 %v964_v5, %v988_v37 }
  0xed   :  { %v425_v41 = vpop.f32.mrf.mxu0  ;;  %v585_v42 = vpop.f32.mrf.mxu1 }
  0xee   :  { %v697_v43 = vmax.f32 %v665_v38, %v681_v39  ;;  %v664_v44 = vmax.f32 %v345_v6, %v425_v41  ;;  %v680_v45 = vmax.f32 %v505_v7, %v585_v42 }
  0xef   :  { %v943_v46 = vpop.f32.mrf.mxu0  ;;  %v991_v47 = vpop.f32.mrf.mxu1 }
  0xf0   :  { %v720_v48 = vadd.f32 %v1355_v40, %v697_v43  ;;  %v696_v49 = vmax.f32 %v664_v44, %v680_v45  ;;  %v667_v50 = vmax.f32 %v919_v8, %v943_v46  ;;  %v683_v51 = vmax.f32 %v967_v9, %v991_v47 }
  0xf1   :  { %v435_v52 = vpop.f32.mrf.mxu0  ;;  %v595_v53 = vpop.f32.mrf.mxu1 }
  0xf2   :  { %v736_v54 = vmax.f32 %v720_v48, 0.0  ;;  %v719_v55 = vadd.f32 %v1355_v40, %v696_v49  ;;  %v699_v56 = vmax.f32 %v667_v50, %v683_v51  ;;  %v666_v57 = vmax.f32 %v355_v10, %v435_v52 }
  0xf3   :  { %v682_v58 = vmax.f32 %v515_v11, %v595_v53  ;;  %v946_v59 = vpop.f32.mrf.mxu0  ;;  %v994_v60 = vpop.f32.mrf.mxu1 }
  0xf4   :  { %753 = vst.msk [vmem:[%s1463_s3 + $0x8] sm:$0xff] %vm751_vm2, %v736_v54  ;;  %v735_v61 = vmax.f32 %v719_v55, 0.0  ;;  %v722_v62 = vadd.f32 %v1355_v40, %v699_v56  ;;  %v669_v63 = vmax.f32 %v1306_v12, %v946_v59  ;;  %v685_v0 = vmax.f32 %v970_v13, %v994_v60 }
  0xf5   :  { %v698_v1 = vmax.f32 %v666_v57, %v682_v58  ;;  %v445_v2 = vpop.f32.mrf.mxu0  ;;  %v605_v3 = vpop.f32.mrf.mxu1 }
  0xf6   :  { %752 = vst.msk [vmem:[%s1463_s3] sm:$0xff] %vm751_vm2, %v735_v61  ;;  %v738_v4 = vmax.f32 %v722_v62, 0.0  ;;  %v701_v5 = vmax.f32 %v669_v63, %v685_v0  ;;  %v668_v6 = vmax.f32 %v1308_v14, %v445_v2  ;;  %v684_v7 = vmax.f32 %v1310_v15, %v605_v3 }
  0xf7   :  { %v721_v8 = vadd.f32 %v1355_v40, %v698_v1  ;;  %v949_v9 = vpop.f32.mrf.mxu0  ;;  %v997_v10 = vpop.f32.mrf.mxu1 }
  0xf8   :  { %755 = vst.msk [vmem:[%s1463_s3 + $0x18] sm:$0xff] %vm751_vm2, %v738_v4  ;;  %v724_v11 = vadd.f32 %v1355_v40, %v701_v5  ;;  %v700_v12 = vmax.f32 %v668_v6, %v684_v7  ;;  %v671_v13 = vmax.f32 %v1312_v16, %v949_v9  ;;  %v687_v36 = vmax.f32 %v1314_v17, %v997_v10 }
  0xf9   :  { %v737_v37 = vmax.f32 %v721_v8, 0.0  ;;  %v455_v14 = vpop.f32.mrf.mxu0  ;;  %v615_v38 = vpop.f32.mrf.mxu1 }
  0xfa   :  { %v740_v15 = vmax.f32 %v724_v11, 0.0  ;;  %v723_v39 = vadd.f32 %v1355_v40, %v700_v12  ;;  %v703_v41 = vmax.f32 %v671_v13, %v687_v36  ;;  %v670_v42 = vmax.f32 %v1316_v18, %v455_v14 }
  0xfb   :  { %754 = vst.msk [vmem:[%s1463_s3 + $0x10] sm:$0xff] %vm751_vm2, %v737_v37  ;;  %v686_v43 = vmax.f32 %v1318_v19, %v615_v38  ;;  %v952_v44 = vpop.f32.mrf.mxu0  ;;  %v1000_v16 = vpop.f32.mrf.mxu1 }
  0xfc   :  { %757 = vst.msk [vmem:[%s1463_s3 + $0x28] sm:$0xff] %vm751_vm2, %v740_v15  ;;  %v739_v17 = vmax.f32 %v723_v39, 0.0  ;;  %v726_v45 = vadd.f32 %v1355_v40, %v703_v41  ;;  %v673_v46 = vmax.f32 %v1320_v20, %v952_v44  ;;  %v689_v18 = vmax.f32 %v1322_v21, %v1000_v16 }
  0xfd   :  { %v702_v47 = vmax.f32 %v670_v42, %v686_v43  ;;  %v465_v48 = vpop.f32.mrf.mxu0  ;;  %v625_v49 = vpop.f32.mrf.mxu1 }
  0xfe   :  { %756 = vst.msk [vmem:[%s1463_s3 + $0x20] sm:$0xff] %vm751_vm2, %v739_v17  ;;  %v742_v19 = vmax.f32 %v726_v45, 0.0  ;;  %v705_v50 = vmax.f32 %v673_v46, %v689_v18  ;;  %v672_v51 = vmax.f32 %v1324_v22, %v465_v48  ;;  %v688_v52 = vmax.f32 %v1326_v23, %v625_v49 }
  0xff   :  { %v725_v53 = vadd.f32 %v1355_v40, %v702_v47  ;;  %v955_v54 = vpop.f32.mrf.mxu0  ;;  %v1003_v20 = vpop.f32.mrf.mxu1 }
 0x100   :  { %759 = vst.msk [vmem:[%s1463_s3 + $0x38] sm:$0xff] %vm751_vm2, %v742_v19  ;;  %v728_v21 = vadd.f32 %v1355_v40, %v705_v50  ;;  %v704_v55 = vmax.f32 %v672_v51, %v688_v52  ;;  %v675_v56 = vmax.f32 %v1328_v24, %v955_v54  ;;  %v691_v57 = vmax.f32 %v1330_v25, %v1003_v20 }
 0x101   :  { %v741_v58 = vmax.f32 %v725_v53, 0.0  ;;  %v475_v22 = vpop.f32.mrf.mxu0  ;;  %v635_v59 = vpop.f32.mrf.mxu1 }
 0x102   :  { %v744_v23 = vmax.f32 %v728_v21, 0.0  ;;  %v727_v60 = vadd.f32 %v1355_v40, %v704_v55  ;;  %v707_v61 = vmax.f32 %v675_v56, %v691_v57  ;;  %v674_v62 = vmax.f32 %v1332_v26, %v475_v22 }
 0x103   :  { %758 = vst.msk [vmem:[%s1463_s3 + $0x30] sm:$0xff] %vm751_vm2, %v741_v58  ;;  %v690_v63 = vmax.f32 %v1334_v27, %v635_v59  ;;  %v958_v0 = vpop.f32.mrf.mxu0  ;;  %v1006_v24 = vpop.f32.mrf.mxu1 }
 0x104   :  { %761 = vst.msk [vmem:[%s1463_s3 + $0x48] sm:$0xff] %vm751_vm2, %v744_v23  ;;  %v743_v25 = vmax.f32 %v727_v60, 0.0  ;;  %v730_v1 = vadd.f32 %v1355_v40, %v707_v61  ;;  %v677_v2 = vmax.f32 %v1336_v28, %v958_v0  ;;  %v693_v26 = vmax.f32 %v1338_v29, %v1006_v24 }
 0x105   :  { %v706_v3 = vmax.f32 %v674_v62, %v690_v63  ;;  %v485_v4 = vpop.f32.mrf.mxu0  ;;  %v645_v5 = vpop.f32.mrf.mxu1 }
 0x106   :  { %760 = vst.msk [vmem:[%s1463_s3 + $0x40] sm:$0xff] %vm751_vm2, %v743_v25  ;;  %v746_v27 = vmax.f32 %v730_v1, 0.0  ;;  %v709_v6 = vmax.f32 %v677_v2, %v693_v26  ;;  %v676_v7 = vmax.f32 %v1340_v30, %v485_v4  ;;  %v692_v8 = vmax.f32 %v1342_v31, %v645_v5 }
 0x107   :  { %v729_v9 = vadd.f32 %v1355_v40, %v706_v3  ;;  %v961_v10 = vpop.f32.mrf.mxu0  ;;  %v1009_v28 = vpop.f32.mrf.mxu1 }
 0x108   :  { %763 = vst.msk [vmem:[%s1463_s3 + $0x58] sm:$0xff] %vm751_vm2, %v746_v27  ;;  %v732_v29 = vadd.f32 %v1355_v40, %v709_v6  ;;  %v708_v11 = vmax.f32 %v676_v7, %v692_v8  ;;  %v679_v12 = vmax.f32 %v1344_v32, %v961_v10  ;;  %v695_v13 = vmax.f32 %v1346_v33, %v1009_v28 }
 0x109   :  { %v745_v36 = vmax.f32 %v729_v9, 0.0  ;;  %v495_v30 = vpop.f32.mrf.mxu0  ;;  %v655_v37 = vpop.f32.mrf.mxu1 }
 0x10a   :  { %v748_v31 = vmax.f32 %v732_v29, 0.0  ;;  %v731_v14 = vadd.f32 %v1355_v40, %v708_v11  ;;  %v711_v38 = vmax.f32 %v679_v12, %v695_v13  ;;  %v678_v15 = vmax.f32 %v1348_v34, %v495_v30 }
 0x10b   :  { %762 = vst.msk [vmem:[%s1463_s3 + $0x50] sm:$0xff] %vm751_vm2, %v745_v36  ;;  %v694_v39 = vmax.f32 %v1350_v35, %v655_v37 }
 0x10c   :  { %765 = vst.msk [vmem:[%s1463_s3 + $0x68] sm:$0xff] %vm751_vm2, %v748_v31  ;;  %v747_v32 = vmax.f32 %v731_v14, 0.0  ;;  %v734_v33 = vadd.f32 %v1355_v40, %v711_v38 }
 0x10d   :  { %v710_v41 = vmax.f32 %v678_v15, %v694_v39 }
 0x10e   :  { %764 = vst.msk [vmem:[%s1463_s3 + $0x60] sm:$0xff] %vm751_vm2, %v747_v32  ;;  %v750_v34 = vmax.f32 %v734_v33, 0.0 }
 0x10f   :  { %v733_v42 = vadd.f32 %v1355_v40, %v710_v41 }
 0x110   :  { %767 = vst.msk [vmem:[%s1463_s3 + $0x78] sm:$0xff] %vm751_vm2, %v750_v34 }
 0x111   :  { %v749_v35 = vmax.f32 %v733_v42, 0.0 }
 0x113   :  { %766 = vst.msk [vmem:[%s1463_s3 + $0x70] sm:$0xff] %vm751_vm2, %v749_v35 }

// kernel: cnn_reg_forward.5
= control target key start
LH: loop header
LB: loop body
LE: loop exit
PB: predicated region body
PF: predicated region fallthrough
CT: control target
= control target key end

     0   :  { %v601_v0 = vmov 0.0   ;;  %vm128_vm0 = vcmask 130048   ;;  %vm494_vm1 = vcmask 261120   ;;  %s1041_s1 = inlined_call_operand.vmem [shape: f32[400,128], index: 1, kind: input, shape index: {}]   ;;  %s1042_s0 = inlined_call_operand.vmem [shape: f32[128,400], index: 0, kind: input, shape index: {}]   ;;  %s1043_s2 = inlined_call_operand.vmem [shape: f32[1,128], index: 2, kind: input, shape index: {}]   ;;  %s1044_s3 = inlined_call_operand.vmem [shape: f32[32,32], index: 3, kind: output, shape index: {}]  }
   0x1   :  { %322 = vmatprep.subr.mxu1 %v601_v0  ;;  %v109_v1 = vld [vmem:[%s1041_s1 + $0xf8] sm:$0xff]  ;;  %v108_v4 = vld [vmem:[%s1041_s1 + $0xf0] sm:$0xff]  ;;  %v107_v7 = vld [vmem:[%s1041_s1 + $0xe8] sm:$0xff] }
   0x2   :  { %v125_v2 = vld [vmem:[%s1041_s1 + $0x178] sm:$0xff]  ;;  %520 = vmatprep.subr.mxu0 %v109_v1  ;;  %v124_v5 = vld [vmem:[%s1041_s1 + $0x170] sm:$0xff]  ;;  %v123_v8 = vld [vmem:[%s1041_s1 + $0x168] sm:$0xff] }
   0x3   :  { %v93_v3 = vld [vmem:[%s1041_s1 + $0x78] sm:$0xff]  ;;  %323 = vmatpush1.msra.mxu1 %v125_v2  ;;  %v92_v6 = vld [vmem:[%s1041_s1 + $0x70] sm:$0xff]  ;;  %v91_v9 = vld [vmem:[%s1041_s1 + $0x68] sm:$0xff] }
   0x4   :  { %521 = vmatpush3.msra.mxu0 %v93_v3  ;;  %324 = vmatprep.subr.mxu1 %v601_v0  ;;  %v106_v10 = vld [vmem:[%s1041_s1 + $0xe0] sm:$0xff]  ;;  %v105_v13 = vld [vmem:[%s1041_s1 + $0xd8] sm:$0xff]  ;;  %v104_v16 = vld [vmem:[%s1041_s1 + $0xd0] sm:$0xff] }
   0x5   :  { %522 = vmatprep.subr.mxu0 %v108_v4  ;;  %325 = vmatpush1.msra.mxu1 %v124_v5  ;;  %v122_v11 = vld [vmem:[%s1041_s1 + $0x160] sm:$0xff]  ;;  %v121_v14 = vld [vmem:[%s1041_s1 + $0x158] sm:$0xff]  ;;  %v120_v17 = vld [vmem:[%s1041_s1 + $0x150] sm:$0xff] }
   0x6   :  { %523 = vmatpush3.msra.mxu0 %v92_v6  ;;  %326 = vmatprep.subr.mxu1 %v601_v0  ;;  %v90_v12 = vld [vmem:[%s1041_s1 + $0x60] sm:$0xff]  ;;  %v89_v15 = vld [vmem:[%s1041_s1 + $0x58] sm:$0xff]  ;;  %v88_v18 = vld [vmem:[%s1041_s1 + $0x50] sm:$0xff] }
   0x7   :  { %524 = vmatprep.subr.mxu0 %v107_v7  ;;  %327 = vmatpush1.msra.mxu1 %v123_v8  ;;  %v103_v19 = vld [vmem:[%s1041_s1 + $0xc8] sm:$0xff]  ;;  %v102_v22 = vld [vmem:[%s1041_s1 + $0xc0] sm:$0xff]  ;;  %v101_v25 = vld [vmem:[%s1041_s1 + $0xb8] sm:$0xff] }
   0x8   :  { %525 = vmatpush3.msra.mxu0 %v91_v9  ;;  %328 = vmatprep.subr.mxu1 %v601_v0  ;;  %v119_v20 = vld [vmem:[%s1041_s1 + $0x148] sm:$0xff]  ;;  %v118_v23 = vld [vmem:[%s1041_s1 + $0x140] sm:$0xff]  ;;  %v117_v26 = vld [vmem:[%s1041_s1 + $0x138] sm:$0xff] }
   0x9   :  { %526 = vmatprep.subr.mxu0 %v106_v10  ;;  %329 = vmatpush1.msra.mxu1 %v122_v11  ;;  %v87_v21 = vld [vmem:[%s1041_s1 + $0x48] sm:$0xff]  ;;  %v86_v24 = vld [vmem:[%s1041_s1 + $0x40] sm:$0xff]  ;;  %v85_v27 = vld [vmem:[%s1041_s1 + $0x38] sm:$0xff] }
   0xa   :  { %527 = vmatpush3.msra.mxu0 %v90_v12  ;;  %330 = vmatprep.subr.mxu1 %v601_v0  ;;  %v100_v28 = vld [vmem:[%s1041_s1 + $0xb0] sm:$0xff]  ;;  %v99_v31 = vld [vmem:[%s1041_s1 + $0xa8] sm:$0xff]  ;;  %v98_v34 = vld [vmem:[%s1041_s1 + $0xa0] sm:$0xff] }
   0xb   :  { %528 = vmatprep.subr.mxu0 %v105_v13  ;;  %331 = vmatpush1.msra.mxu1 %v121_v14  ;;  %v116_v29 = vld [vmem:[%s1041_s1 + $0x130] sm:$0xff]  ;;  %v115_v32 = vld [vmem:[%s1041_s1 + $0x128] sm:$0xff]  ;;  %v114_v35 = vld [vmem:[%s1041_s1 + $0x120] sm:$0xff] }
   0xc   :  { %529 = vmatpush3.msra.mxu0 %v89_v15  ;;  %332 = vmatprep.subr.mxu1 %v601_v0  ;;  %v84_v30 = vld [vmem:[%s1041_s1 + $0x30] sm:$0xff]  ;;  %v83_v33 = vld [vmem:[%s1041_s1 + $0x28] sm:$0xff]  ;;  %v82_v36 = vld [vmem:[%s1041_s1 + $0x20] sm:$0xff] }
   0xd   :  { %530 = vmatprep.subr.mxu0 %v104_v16  ;;  %333 = vmatpush1.msra.mxu1 %v120_v17  ;;  %v97_v37 = vld [vmem:[%s1041_s1 + $0x98] sm:$0xff]  ;;  %v96_v40 = vld [vmem:[%s1041_s1 + $0x90] sm:$0xff]  ;;  %v95_v43 = vld [vmem:[%s1041_s1 + $0x88] sm:$0xff] }
   0xe   :  { %531 = vmatpush3.msra.mxu0 %v88_v18  ;;  %334 = vmatprep.subr.mxu1 %v601_v0  ;;  %v113_v38 = vld [vmem:[%s1041_s1 + $0x118] sm:$0xff]  ;;  %v112_v41 = vld [vmem:[%s1041_s1 + $0x110] sm:$0xff]  ;;  %v111_v44 = vld [vmem:[%s1041_s1 + $0x108] sm:$0xff] }
   0xf   :  { %532 = vmatprep.subr.mxu0 %v103_v19  ;;  %335 = vmatpush1.msra.mxu1 %v119_v20  ;;  %v81_v39 = vld [vmem:[%s1041_s1 + $0x18] sm:$0xff]  ;;  %v80_v42 = vld [vmem:[%s1041_s1 + $0x10] sm:$0xff]  ;;  %v79_v45 = vld [vmem:[%s1041_s1 + $0x8] sm:$0xff] }
  0x10   :  { %533 = vmatpush3.msra.mxu0 %v87_v21  ;;  %336 = vmatprep.subr.mxu1 %v601_v0  ;;  %v94_v46 = vld [vmem:[%s1041_s1 + $0x80] sm:$0xff]  ;;  %v15_v49 = vld [vmem:[%s1042_s0 + $0x8] sm:$0xff]  ;;  %v17_v52 = vld [vmem:[%s1042_s0 + $0x18] sm:$0xff] }
  0x11   :  { %534 = vmatprep.subr.mxu0 %v102_v22  ;;  %337 = vmatpush1.msra.mxu1 %v118_v23  ;;  %v110_v47 = vld [vmem:[%s1041_s1 + $0x100] sm:$0xff]  ;;  %v127_v51 = vld [vmem:[%s1041_s1 + $0x188] sm:$0xff]  ;;  %v16_v55 = vld [vmem:[%s1042_s0 + $0x10] sm:$0xff] }
  0x12   :  { %535 = vmatpush3.msra.mxu0 %v86_v24  ;;  %338 = vmatprep.subr.mxu1 %v601_v0  ;;  %v78_v48 = vld [vmem:[%s1041_s1] sm:$0xff]  ;;  %v19_v53 = vld [vmem:[%s1042_s0 + $0x28] sm:$0xff]  ;;  %v21_v57 = vld [vmem:[%s1042_s0 + $0x38] sm:$0xff] }
  0x13   :  { %536 = vmatprep.subr.mxu0 %v101_v25  ;;  %339 = vmatpush1.msra.mxu1 %v117_v26  ;;  %v14_v50 = vld [vmem:[%s1042_s0] sm:$0xff]  ;;  %v23_v58 = vld [vmem:[%s1042_s0 + $0x48] sm:$0xff]  ;;  %v20_v59 = vld [vmem:[%s1042_s0 + $0x30] sm:$0xff] }
  0x14   :  { %537 = vmatpush3.msra.mxu0 %v85_v27  ;;  %340 = vmatprep.subr.mxu1 %v601_v0  ;;  %v126_v54 = vld [vmem:[%s1041_s1 + $0x180] sm:$0xff]  ;;  %v25_v61 = vld [vmem:[%s1042_s0 + $0x58] sm:$0xff]  ;;  %v27_v62 = vld [vmem:[%s1042_s0 + $0x68] sm:$0xff] }
  0x15   :  { %538 = vmatprep.subr.mxu0 %v100_v28  ;;  %341 = vmatpush1.msra.mxu1 %v116_v29  ;;  %v18_v56 = vld [vmem:[%s1042_s0 + $0x20] sm:$0xff]  ;;  %v24_v63 = vld [vmem:[%s1042_s0 + $0x50] sm:$0xff]  ;;  %v29_v1 = vld [vmem:[%s1042_s0 + $0x78] sm:$0xff] }
  0x16   :  { %539 = vmatpush3.msra.mxu0 %v84_v30  ;;  %342 = vmatprep.subr.mxu1 %v601_v0  ;;  %v22_v60 = vld [vmem:[%s1042_s0 + $0x40] sm:$0xff]  ;;  %v31_v2 = vld [vmem:[%s1042_s0 + $0x88] sm:$0xff]  ;;  %v28_v3 = vld [vmem:[%s1042_s0 + $0x70] sm:$0xff] }
  0x17   :  { %540 = vmatprep.subr.mxu0 %v99_v31  ;;  %343 = vmatpush1.msra.mxu1 %v115_v32  ;;  %v30_v4 = vld [vmem:[%s1042_s0 + $0x80] sm:$0xff]  ;;  %v33_v5 = vld [vmem:[%s1042_s0 + $0x98] sm:$0xff]  ;;  %v35_v6 = vld [vmem:[%s1042_s0 + $0xa8] sm:$0xff] }
  0x18   :  { %541 = vmatpush3.msra.mxu0 %v83_v33  ;;  %344 = vmatprep.subr.mxu1 %v601_v0  ;;  %v32_v7 = vld [vmem:[%s1042_s0 + $0x90] sm:$0xff]  ;;  %v34_v8 = vld [vmem:[%s1042_s0 + $0xa0] sm:$0xff]  ;;  %v37_v9 = vld [vmem:[%s1042_s0 + $0xb8] sm:$0xff] }
  0x19   :  { %542 = vmatprep.subr.mxu0 %v98_v34  ;;  %345 = vmatpush1.msra.mxu1 %v114_v35  ;;  %v39_v10 = vld [vmem:[%s1042_s0 + $0xc8] sm:$0xff]  ;;  %v36_v11 = vld [vmem:[%s1042_s0 + $0xb0] sm:$0xff]  ;;  %v38_v12 = vld [vmem:[%s1042_s0 + $0xc0] sm:$0xff] }
  0x1a   :  { %543 = vmatpush3.msra.mxu0 %v82_v36  ;;  %346 = vmatprep.subr.mxu1 %v601_v0  ;;  %v41_v13 = vld [vmem:[%s1042_s0 + $0xd8] sm:$0xff]  ;;  %v43_v14 = vld [vmem:[%s1042_s0 + $0xe8] sm:$0xff]  ;;  %v40_v15 = vld [vmem:[%s1042_s0 + $0xd0] sm:$0xff] }
  0x1b   :  { %544 = vmatprep.subr.mxu0 %v97_v37  ;;  %347 = vmatpush1.msra.mxu1 %v113_v38  ;;  %v42_v16 = vld [vmem:[%s1042_s0 + $0xe0] sm:$0xff]  ;;  %v45_v17 = vld [vmem:[%s1042_s0 + $0xf8] sm:$0xff]  ;;  %v47_v18 = vld [vmem:[%s1042_s0 + $0x108] sm:$0xff] }
  0x1c   :  { %545 = vmatpush3.msra.mxu0 %v81_v39  ;;  %348 = vmatprep.subr.mxu1 %v601_v0  ;;  %v44_v19 = vld [vmem:[%s1042_s0 + $0xf0] sm:$0xff]  ;;  %v46_v20 = vld [vmem:[%s1042_s0 + $0x100] sm:$0xff]  ;;  %v49_v21 = vld [vmem:[%s1042_s0 + $0x118] sm:$0xff] }
  0x1d   :  { %546 = vmatprep.subr.mxu0 %v96_v40  ;;  %349 = vmatpush1.msra.mxu1 %v112_v41  ;;  %v51_v22 = vld [vmem:[%s1042_s0 + $0x128] sm:$0xff]  ;;  %v48_v23 = vld [vmem:[%s1042_s0 + $0x110] sm:$0xff]  ;;  %v50_v24 = vld [vmem:[%s1042_s0 + $0x120] sm:$0xff] }
  0x1e   :  { %547 = vmatpush3.msra.mxu0 %v80_v42  ;;  %350 = vmatprep.subr.mxu1 %v601_v0  ;;  %v53_v25 = vld [vmem:[%s1042_s0 + $0x138] sm:$0xff]  ;;  %v55_v26 = vld [vmem:[%s1042_s0 + $0x148] sm:$0xff]  ;;  %v52_v27 = vld [vmem:[%s1042_s0 + $0x130] sm:$0xff] }
  0x1f   :  { %548 = vmatprep.subr.mxu0 %v95_v43  ;;  %351 = vmatpush1.msra.mxu1 %v111_v44  ;;  %v54_v28 = vld [vmem:[%s1042_s0 + $0x140] sm:$0xff]  ;;  %v57_v29 = vld [vmem:[%s1042_s0 + $0x158] sm:$0xff]  ;;  %v59_v30 = vld [vmem:[%s1042_s0 + $0x168] sm:$0xff] }
  0x20   :  { %549 = vmatpush3.msra.mxu0 %v79_v45  ;;  %352 = vmatprep.subr.mxu1 %v601_v0  ;;  %v56_v31 = vld [vmem:[%s1042_s0 + $0x150] sm:$0xff]  ;;  %v58_v32 = vld [vmem:[%s1042_s0 + $0x160] sm:$0xff]  ;;  %v61_v33 = vld [vmem:[%s1042_s0 + $0x178] sm:$0xff] }
  0x21   :  { %550 = vmatprep.subr.mxu0 %v94_v46  ;;  %353 = vmatpush1.msra.mxu1 %v110_v47  ;;  %v63_v34 = vld [vmem:[%s1042_s0 + $0x188] sm:$0xff]  ;;  %v60_v35 = vld [vmem:[%s1042_s0 + $0x170] sm:$0xff]  ;;  %v62_v36 = vld [vmem:[%s1042_s0 + $0x180] sm:$0xff] }
  0x22   :  { %551 = vmatpush3.msra.mxu0 %v78_v48  ;;  %241 = vmatprep.mubr.f32.mxu0 %v15_v49  ;;  %v65_v37 = vld [vmem:[%s1042_s0 + $0x198] sm:$0xff]  ;;  %v67_v38 = vld [vmem:[%s1042_s0 + $0x1a8] sm:$0xff]  ;;  %v64_v39 = vld [vmem:[%s1042_s0 + $0x190] sm:$0xff] }
  0x23   :  { %382 = vmatprep.subr.mxu1 %v601_v0  ;;  %242 = vmatmul.mubr.f32.vlgmr.msra.gmra.mxu0 %v14_v50  ;;  %v66_v40 = vld [vmem:[%s1042_s0 + $0x1a0] sm:$0xff]  ;;  %v69_v41 = vld [vmem:[%s1042_s0 + $0x1b8] sm:$0xff]  ;;  %v71_v42 = vld [vmem:[%s1042_s0 + $0x1c8] sm:$0xff] }
  0x24   :  { %383 = vmatpush2.msra.mxu1 %v127_v51  ;;  %503 = vmatprep.mubr.msk.f32.mxu1 %vm128_vm0, %v17_v52  ;;  %v68_v43 = vld [vmem:[%s1042_s0 + $0x1b0] sm:$0xff]  ;;  %v70_v44 = vld [vmem:[%s1042_s0 + $0x1c0] sm:$0xff]  ;;  %v73_v45 = vld [vmem:[%s1042_s0 + $0x1d8] sm:$0xff] }
  0x25   :  { %384 = vmatprep.subr.mxu1 %v601_v0  ;;  %246 = vmatprep.mubr.f32.mxu0 %v19_v53  ;;  %v26_v0 = vld [vmem:[%s1042_s0 + $0x60] sm:$0xff]  ;;  %v75_v46 = vld [vmem:[%s1042_s0 + $0x1e8] sm:$0xff]  ;;  %v72_v47 = vld [vmem:[%s1042_s0 + $0x1d0] sm:$0xff] }
  0x26   :  { %385 = vmatpush2.msra.mxu1 %v126_v54  ;;  %v74_v48 = vld [vmem:[%s1042_s0 + $0x1e0] sm:$0xff]  ;;  %v77_v49 = vld [vmem:[%s1042_s0 + $0x1f8] sm:$0xff]  ;;  %v76_v50 = vld [vmem:[%s1042_s0 + $0x1f0] sm:$0xff] }
  0x27   :  { %387 = vmatmul.mubr.f32.vlgmr.msra.gmra.mxu1 %v16_v55  ;;  %247 = vmatmul.mubr.f32.gmra.mxu0 %v18_v56 }
  0x28   :  { %504 = vmatprep.mubr.msk.f32.mxu1 %vm128_vm0, %v21_v57  ;;  %251 = vmatprep.mubr.f32.mxu0 %v23_v58 }
  0x2b   :  { %392 = vmatmul.mubr.f32.gmra.mxu1 %v20_v59  ;;  %252 = vmatmul.mubr.f32.gmra.mxu0 %v22_v60 }
  0x2c   :  { %505 = vmatprep.mubr.msk.f32.mxu1 %vm128_vm0, %v25_v61  ;;  %256 = vmatprep.mubr.f32.mxu0 %v27_v62 }
  0x2f   :  { %397 = vmatmul.mubr.f32.gmra.mxu1 %v24_v63  ;;  %257 = vmatmul.mubr.f32.gmra.mxu0 %v26_v0 }
  0x30   :  { %506 = vmatprep.mubr.msk.f32.mxu1 %vm128_vm0, %v29_v1  ;;  %261 = vmatprep.mubr.f32.mxu0 %v31_v2 }
  0x33   :  { %402 = vmatmul.mubr.f32.gmra.mxu1 %v28_v3  ;;  %262 = vmatmul.mubr.f32.gmra.mxu0 %v30_v4 }
  0x34   :  { %507 = vmatprep.mubr.msk.f32.mxu1 %vm128_vm0, %v33_v5  ;;  %266 = vmatprep.mubr.f32.mxu0 %v35_v6 }
  0x37   :  { %407 = vmatmul.mubr.f32.gmra.mxu1 %v32_v7  ;;  %267 = vmatmul.mubr.f32.gmra.mxu0 %v34_v8 }
  0x38   :  { %508 = vmatprep.mubr.msk.f32.mxu1 %vm128_vm0, %v37_v9  ;;  %271 = vmatprep.mubr.f32.mxu0 %v39_v10 }
  0x3b   :  { %412 = vmatmul.mubr.f32.gmra.mxu1 %v36_v11  ;;  %272 = vmatmul.mubr.f32.gmra.mxu0 %v38_v12 }
  0x3c   :  { %509 = vmatprep.mubr.msk.f32.mxu1 %vm128_vm0, %v41_v13  ;;  %276 = vmatprep.mubr.f32.mxu0 %v43_v14 }
  0x3f   :  { %417 = vmatmul.mubr.f32.gmra.mxu1 %v40_v15  ;;  %277 = vmatmul.mubr.f32.gmra.mxu0 %v42_v16 }
  0x40   :  { %510 = vmatprep.mubr.msk.f32.mxu1 %vm128_vm0, %v45_v17  ;;  %281 = vmatprep.mubr.f32.mxu0 %v47_v18 }
  0x43   :  { %422 = vmatmul.mubr.f32.gmra.mxu1 %v44_v19  ;;  %282 = vmatmul.mubr.f32.gmra.mxu0 %v46_v20 }
  0x44   :  { %511 = vmatprep.mubr.msk.f32.mxu1 %vm128_vm0, %v49_v21  ;;  %286 = vmatprep.mubr.f32.mxu0 %v51_v22 }
  0x47   :  { %427 = vmatmul.mubr.f32.gmra.mxu1 %v48_v23  ;;  %287 = vmatmul.mubr.f32.gmra.mxu0 %v50_v24 }
  0x48   :  { %512 = vmatprep.mubr.msk.f32.mxu1 %vm128_vm0, %v53_v25  ;;  %291 = vmatprep.mubr.f32.mxu0 %v55_v26 }
  0x4b   :  { %432 = vmatmul.mubr.f32.gmra.mxu1 %v52_v27  ;;  %292 = vmatmul.mubr.f32.gmra.mxu0 %v54_v28 }
  0x4c   :  { %513 = vmatprep.mubr.msk.f32.mxu1 %vm128_vm0, %v57_v29  ;;  %296 = vmatprep.mubr.f32.mxu0 %v59_v30 }
  0x4f   :  { %437 = vmatmul.mubr.f32.gmra.mxu1 %v56_v31  ;;  %297 = vmatmul.mubr.f32.gmra.mxu0 %v58_v32 }
  0x50   :  { %514 = vmatprep.mubr.msk.f32.mxu1 %vm128_vm0, %v61_v33  ;;  %301 = vmatprep.mubr.f32.mxu0 %v63_v34 }
  0x53   :  { %442 = vmatmul.mubr.f32.gmra.mxu1 %v60_v35  ;;  %302 = vmatmul.mubr.f32.gmra.mxu0 %v62_v36 }
  0x54   :  { %515 = vmatprep.mubr.msk.f32.mxu1 %vm128_vm0, %v65_v37  ;;  %306 = vmatprep.mubr.f32.mxu0 %v67_v38 }
  0x57   :  { %447 = vmatmul.mubr.f32.gmra.mxu1 %v64_v39  ;;  %307 = vmatmul.mubr.f32.gmra.mxu0 %v66_v40 }
  0x58   :  { %516 = vmatprep.mubr.msk.f32.mxu1 %vm128_vm0, %v69_v41  ;;  %311 = vmatprep.mubr.f32.mxu0 %v71_v42 }
  0x5b   :  { %452 = vmatmul.mubr.f32.gmra.mxu1 %v68_v43  ;;  %312 = vmatmul.mubr.f32.gmra.mxu0 %v70_v44 }
  0x5c   :  { %517 = vmatprep.mubr.msk.f32.mxu1 %vm128_vm0, %v73_v45  ;;  %316 = vmatprep.mubr.f32.mxu0 %v75_v46 }
  0x5f   :  { %457 = vmatmul.mubr.f32.gmra.mxu1 %v72_v47  ;;  %317 = vmatmul.mubr.f32.gmra.mxu0 %v74_v48 }
  0x60   :  { %518 = vmatprep.mubr.msk.f32.mxu1 %vm128_vm0, %v77_v49 }
  0x63   :  { %462 = vmatmul.mubr.f32.gmra.mxu1 %v76_v50 }
  0xe3   :  { %v552_v51 = vpop.f32.mrf.mxu0 }
  0xe5   :  { %v553_v52 = vpop.f32.mrf.mxu0 }
  0xe6   :  { %v554_v36 = vadd.f32 %v553_v52, %v552_v51 }
  0xe7   :  { %v388_v53 = vpop.f32.mrf.mxu1  ;;  %v555_v54 = vpop.f32.mrf.mxu0 }
  0xe8   :  { %v389_v46 = vadd.f32 %v554_v36, %v388_v53  ;;  %v519_v53 = vld [vmem:[%s1043_s2] ss:$0 sm:$0xff] }
  0xe9   :  { %v390_v55 = vpop.f32.mrf.mxu1  ;;  %v556_v56 = vpop.f32.mrf.mxu0 }
  0xea   :  { %v557_v43 = vadd.f32 %v556_v56, %v555_v54 }
  0xeb   :  { %v998_v57 = vpop.f32.mrf.mxu1  ;;  %v1000_v58 = vpop.f32.mrf.mxu0 }
  0xec   :  { %v394_v52 = vadd.f32 %v557_v43, %v998_v57 }
  0xed   :  { %v395_v59 = vpop.f32.mrf.mxu1  ;;  %v1002_v60 = vpop.f32.mrf.mxu0 }
  0xef   :  { %v1004_v61 = vpop.f32.mrf.mxu1  ;;  %v1006_v62 = vpop.f32.mrf.mxu0 }
  0xf1   :  { %v400_v63 = vpop.f32.mrf.mxu1  ;;  %v1008_v0 = vpop.f32.mrf.mxu0 }
  0xf3   :  { %v1010_v1 = vpop.f32.mrf.mxu1  ;;  %v564_v2 = vpop.f32.mrf.mxu0 }
  0xf5   :  { %v405_v3 = vpop.f32.mrf.mxu1  ;;  %v565_v4 = vpop.f32.mrf.mxu0 }
  0xf6   :  { %v566_v33 = vadd.f32 %v565_v4, %v564_v2  ;;  %v560_v4 = vadd.f32 %v1002_v60, %v1000_v58  ;;  %v563_v60 = vadd.f32 %v1008_v0, %v1006_v62 }
  0xf7   :  { %v408_v5 = vpop.f32.mrf.mxu1  ;;  %v567_v6 = vpop.f32.mrf.mxu0 }
  0xf8   :  { %v409_v41 = vadd.f32 %v566_v33, %v408_v5  ;;  %v399_v58 = vadd.f32 %v560_v4, %v1004_v61 }
  0xf9   :  { %v410_v7 = vpop.f32.mrf.mxu1  ;;  %v568_v8 = vpop.f32.mrf.mxu0 }
  0xfa   :  { %v569_v38 = vadd.f32 %v568_v8, %v567_v6  ;;  %v467_v2 = vmax.f32 %v389_v46, %v409_v41 }
  0xfb   :  { %v413_v9 = vpop.f32.mrf.mxu1  ;;  %v570_v10 = vpop.f32.mrf.mxu0 }
  0xfc   :  { %v414_v50 = vadd.f32 %v569_v38, %v413_v9 }
  0xfd   :  { %v415_v11 = vpop.f32.mrf.mxu1  ;;  %v571_v12 = vpop.f32.mrf.mxu0 }
  0xfe   :  { %v572_v55 = vadd.f32 %v571_v12, %v570_v10  ;;  %v468_v9 = vmax.f32 %v394_v52, %v414_v50 }
  0xff   :  { %v418_v13 = vpop.f32.mrf.mxu1  ;;  %v573_v14 = vpop.f32.mrf.mxu0 }
 0x100   :  { %v419_v10 = vadd.f32 %v572_v55, %v418_v13 }
 0x101   :  { %v420_v15 = vpop.f32.mrf.mxu1  ;;  %v574_v16 = vpop.f32.mrf.mxu0 }
 0x102   :  { %v575_v15 = vadd.f32 %v574_v16, %v573_v14  ;;  %v469_v13 = vmax.f32 %v399_v58, %v419_v10  ;;  %v404_v16 = vadd.f32 %v563_v60, %v1010_v1 }
 0x103   :  { %v1012_v17 = vpop.f32.mrf.mxu1  ;;  %v576_v18 = vpop.f32.mrf.mxu0 }
 0x104   :  { %v424_v14 = vadd.f32 %v575_v15, %v1012_v17 }
 0x105   :  { %v425_v19 = vpop.f32.mrf.mxu1  ;;  %v577_v20 = vpop.f32.mrf.mxu0 }
 0x106   :  { %v578_v37 = vadd.f32 %v577_v20, %v576_v18  ;;  %v470_v36 = vmax.f32 %v404_v16, %v424_v14 }
 0x107   :  { %v428_v21 = vpop.f32.mrf.mxu1  ;;  %v579_v22 = vpop.f32.mrf.mxu0 }
 0x108   :  { %v429_v47 = vadd.f32 %v578_v37, %v428_v21 }
 0x109   :  { %v430_v23 = vpop.f32.mrf.mxu1  ;;  %v580_v24 = vpop.f32.mrf.mxu0 }
 0x10a   :  { %v581_v48 = vadd.f32 %v580_v24, %v579_v22 }
 0x10b   :  { %v433_v25 = vpop.f32.mrf.mxu1  ;;  %v582_v26 = vpop.f32.mrf.mxu0 }
 0x10c   :  { %v434_v6 = vadd.f32 %v581_v48, %v433_v25 }
 0x10d   :  { %v435_v27 = vpop.f32.mrf.mxu1  ;;  %v583_v28 = vpop.f32.mrf.mxu0 }
 0x10e   :  { %v584_v5 = vadd.f32 %v583_v28, %v582_v26 }
 0x10f   :  { %v438_v29 = vpop.f32.mrf.mxu1  ;;  %v585_v30 = vpop.f32.mrf.mxu0 }
 0x110   :  { %v439_v20 = vadd.f32 %v584_v5, %v438_v29 }
 0x111   :  { %v440_v31 = vpop.f32.mrf.mxu1  ;;  %v586_v32 = vpop.f32.mrf.mxu0 }
 0x112   :  { %v587_v23 = vadd.f32 %v586_v32, %v585_v30 }
 0x113   :  { %v443_v34 = vpop.f32.mrf.mxu1  ;;  %v588_v35 = vpop.f32.mrf.mxu0 }
 0x114   :  { %v444_v30 = vadd.f32 %v587_v23, %v443_v34 }
 0x115   :  { %v445_v39 = vpop.f32.mrf.mxu1  ;;  %v589_v40 = vpop.f32.mrf.mxu0 }
 0x116   :  { %v590_v42 = vadd.f32 %v589_v40, %v588_v35 }
 0x117   :  { %v448_v44 = vpop.f32.mrf.mxu1  ;;  %v591_v45 = vpop.f32.mrf.mxu0 }
 0x118   :  { %v449_v49 = vadd.f32 %v590_v42, %v448_v44 }
 0x119   :  { %v450_v59 = vpop.f32.mrf.mxu1  ;;  %v592_v63 = vpop.f32.mrf.mxu0 }
 0x11a   :  { %v471_v3 = vmax.f32 %v429_v47, %v449_v49  ;;  %v593_v51 = vadd.f32 %v592_v63, %v591_v45 }
 0x11b   :  { %v453_v54 = vpop.f32.mrf.mxu1  ;;  %v594_v56 = vpop.f32.mrf.mxu0 }
 0x11c   :  { %v475_v7 = vmax.f32 %v467_v2, %v471_v3  ;;  %v454_v8 = vadd.f32 %v593_v51, %v453_v54 }
 0x11d   :  { %v455_v11 = vpop.f32.mrf.mxu1  ;;  %v595_v12 = vpop.f32.mrf.mxu0 }
 0x11e   :  { %v486_v18 = vadd.f32 %v519_v53, %v475_v7  ;;  %v472_v57 = vmax.f32 %v434_v6, %v454_v8  ;;  %v596_v19 = vadd.f32 %v595_v12, %v594_v56 }
 0x11f   :  { %v458_v21 = vpop.f32.mrf.mxu1  ;;  %v597_v22 = vpop.f32.mrf.mxu0 }
 0x120   :  { %v490_v24 = vmax.f32 %v486_v18, 0.0  ;;  %v476_v25 = vmax.f32 %v468_v9, %v472_v57  ;;  %v459_v26 = vadd.f32 %v596_v19, %v458_v21 }
 0x121   :  { %v460_v27 = vpop.f32.mrf.mxu1  ;;  %v598_v28 = vpop.f32.mrf.mxu0 }
 0x122   :  { %495 = vst.msk [vmem:[%s1044_s3] sm:$0xff] %vm494_vm1, %v490_v24  ;;  %v487_v61 = vadd.f32 %v519_v53, %v476_v25  ;;  %v473_v62 = vmax.f32 %v439_v20, %v459_v26  ;;  %v599_v0 = vadd.f32 %v598_v28, %v597_v22 }
 0x123   :  { %v463_v29 = vpop.f32.mrf.mxu1 }
 0x124   :  { %v491_v31 = vmax.f32 %v487_v61, 0.0  ;;  %v477_v32 = vmax.f32 %v469_v13, %v473_v62  ;;  %v464_v33 = vadd.f32 %v599_v0, %v463_v29 }
 0x125   :  { %v465_v35 = vpop.f32.mrf.mxu1 }
 0x126   :  { %496 = vst.msk [vmem:[%s1044_s3 + $0x8] sm:$0xff] %vm494_vm1, %v491_v31  ;;  %v488_v17 = vadd.f32 %v519_v53, %v477_v32  ;;  %v474_v37 = vmax.f32 %v444_v30, %v464_v33 }
 0x128   :  { %v492_v38 = vmax.f32 %v488_v17, 0.0  ;;  %v478_v39 = vmax.f32 %v470_v36, %v474_v37 }
 0x12a   :  { %497 = vst.msk [vmem:[%s1044_s3 + $0x10] sm:$0xff] %vm494_vm1, %v492_v38  ;;  %v489_v1 = vadd.f32 %v519_v53, %v478_v39 }
 0x12c   :  { %v493_v34 = vmax.f32 %v489_v1, 0.0 }
 0x12e   :  { %498 = vst.msk [vmem:[%s1044_s3 + $0x18] sm:$0xff] %vm494_vm1, %v493_v34 }

// kernel: cnn_reg_forward.6
= control target key start
LH: loop header
LB: loop body
LE: loop exit
PB: predicated region body
PF: predicated region fallthrough
CT: control target
= control target key end

     0   :  { %vm142_vm0 = vcmask 261120   ;;  %vm507_vm1 = vcmask 523264   ;;  %s1086_s1 = inlined_call_operand.vmem [shape: f32[800,128], index: 1, kind: input, shape index: {}]   ;;  %s1087_s0 = inlined_call_operand.vmem [shape: f32[32,800], index: 0, kind: input, shape index: {}]   ;;  %s1088_s2 = inlined_call_operand.vmem [shape: f32[1,128], index: 2, kind: input, shape index: {}]   ;;  %s1089_s3 = inlined_call_operand.vmem [shape: f32[8,64], index: 3, kind: output, shape index: {}]  }
   0x1   :  { %v73_v0 = vld [vmem:[%s1086_s1 + $0xf8] sm:$0xff]  ;;  %v72_v4 = vld [vmem:[%s1086_s1 + $0xf0] sm:$0xff]  ;;  %v71_v8 = vld [vmem:[%s1086_s1 + $0xe8] sm:$0xff] }
   0x2   :  { %v105_v1 = vld [vmem:[%s1086_s1 + $0x1f8] sm:$0xff]  ;;  %518 = vmatprep.subr.mxu0 %v73_v0  ;;  %v104_v5 = vld [vmem:[%s1086_s1 + $0x1f0] sm:$0xff]  ;;  %v103_v9 = vld [vmem:[%s1086_s1 + $0x1e8] sm:$0xff] }
   0x3   :  { %v57_v2 = vld [vmem:[%s1086_s1 + $0x78] sm:$0xff]  ;;  %562 = vmatprep.subr.mxu1 %v105_v1  ;;  %v56_v6 = vld [vmem:[%s1086_s1 + $0x70] sm:$0xff]  ;;  %v55_v10 = vld [vmem:[%s1086_s1 + $0x68] sm:$0xff] }
   0x4   :  { %v89_v3 = vld [vmem:[%s1086_s1 + $0x178] sm:$0xff]  ;;  %519 = vmatpush3.msra.mxu0 %v57_v2  ;;  %v88_v7 = vld [vmem:[%s1086_s1 + $0x170] sm:$0xff]  ;;  %v87_v11 = vld [vmem:[%s1086_s1 + $0x168] sm:$0xff] }
   0x5   :  { %563 = vmatpush3.msra.mxu1 %v89_v3  ;;  %520 = vmatprep.subr.mxu0 %v72_v4  ;;  %v70_v12 = vld [vmem:[%s1086_s1 + $0xe0] sm:$0xff]  ;;  %v69_v16 = vld [vmem:[%s1086_s1 + $0xd8] sm:$0xff]  ;;  %v68_v20 = vld [vmem:[%s1086_s1 + $0xd0] sm:$0xff] }
   0x6   :  { %564 = vmatprep.subr.mxu1 %v104_v5  ;;  %521 = vmatpush3.msra.mxu0 %v56_v6  ;;  %v102_v13 = vld [vmem:[%s1086_s1 + $0x1e0] sm:$0xff]  ;;  %v101_v17 = vld [vmem:[%s1086_s1 + $0x1d8] sm:$0xff]  ;;  %v100_v21 = vld [vmem:[%s1086_s1 + $0x1d0] sm:$0xff] }
   0x7   :  { %565 = vmatpush3.msra.mxu1 %v88_v7  ;;  %522 = vmatprep.subr.mxu0 %v71_v8  ;;  %v54_v14 = vld [vmem:[%s1086_s1 + $0x60] sm:$0xff]  ;;  %v53_v18 = vld [vmem:[%s1086_s1 + $0x58] sm:$0xff]  ;;  %v52_v22 = vld [vmem:[%s1086_s1 + $0x50] sm:$0xff] }
   0x8   :  { %566 = vmatprep.subr.mxu1 %v103_v9  ;;  %v86_v15 = vld [vmem:[%s1086_s1 + $0x160] sm:$0xff]  ;;  %523 = vmatpush3.msra.mxu0 %v55_v10  ;;  %v85_v19 = vld [vmem:[%s1086_s1 + $0x158] sm:$0xff]  ;;  %v84_v23 = vld [vmem:[%s1086_s1 + $0x150] sm:$0xff] }
   0x9   :  { %567 = vmatpush3.msra.mxu1 %v87_v11  ;;  %524 = vmatprep.subr.mxu0 %v70_v12  ;;  %v67_v24 = vld [vmem:[%s1086_s1 + $0xc8] sm:$0xff]  ;;  %v66_v28 = vld [vmem:[%s1086_s1 + $0xc0] sm:$0xff]  ;;  %v65_v32 = vld [vmem:[%s1086_s1 + $0xb8] sm:$0xff] }
   0xa   :  { %568 = vmatprep.subr.mxu1 %v102_v13  ;;  %525 = vmatpush3.msra.mxu0 %v54_v14  ;;  %v99_v25 = vld [vmem:[%s1086_s1 + $0x1c8] sm:$0xff]  ;;  %v98_v29 = vld [vmem:[%s1086_s1 + $0x1c0] sm:$0xff]  ;;  %v97_v33 = vld [vmem:[%s1086_s1 + $0x1b8] sm:$0xff] }
   0xb   :  { %569 = vmatpush3.msra.mxu1 %v86_v15  ;;  %526 = vmatprep.subr.mxu0 %v69_v16  ;;  %v51_v26 = vld [vmem:[%s1086_s1 + $0x48] sm:$0xff]  ;;  %v50_v30 = vld [vmem:[%s1086_s1 + $0x40] sm:$0xff]  ;;  %v49_v34 = vld [vmem:[%s1086_s1 + $0x38] sm:$0xff] }
   0xc   :  { %570 = vmatprep.subr.mxu1 %v101_v17  ;;  %527 = vmatpush3.msra.mxu0 %v53_v18  ;;  %v83_v27 = vld [vmem:[%s1086_s1 + $0x148] sm:$0xff]  ;;  %v82_v31 = vld [vmem:[%s1086_s1 + $0x140] sm:$0xff]  ;;  %v81_v35 = vld [vmem:[%s1086_s1 + $0x138] sm:$0xff] }
   0xd   :  { %571 = vmatpush3.msra.mxu1 %v85_v19  ;;  %528 = vmatprep.subr.mxu0 %v68_v20  ;;  %v64_v36 = vld [vmem:[%s1086_s1 + $0xb0] sm:$0xff]  ;;  %v63_v40 = vld [vmem:[%s1086_s1 + $0xa8] sm:$0xff]  ;;  %v62_v44 = vld [vmem:[%s1086_s1 + $0xa0] sm:$0xff] }
   0xe   :  { %572 = vmatprep.subr.mxu1 %v100_v21  ;;  %529 = vmatpush3.msra.mxu0 %v52_v22  ;;  %v96_v37 = vld [vmem:[%s1086_s1 + $0x1b0] sm:$0xff]  ;;  %v95_v41 = vld [vmem:[%s1086_s1 + $0x1a8] sm:$0xff]  ;;  %v94_v45 = vld [vmem:[%s1086_s1 + $0x1a0] sm:$0xff] }
   0xf   :  { %573 = vmatpush3.msra.mxu1 %v84_v23  ;;  %530 = vmatprep.subr.mxu0 %v67_v24  ;;  %v48_v38 = vld [vmem:[%s1086_s1 + $0x30] sm:$0xff]  ;;  %v47_v42 = vld [vmem:[%s1086_s1 + $0x28] sm:$0xff]  ;;  %v46_v46 = vld [vmem:[%s1086_s1 + $0x20] sm:$0xff] }
  0x10   :  { %574 = vmatprep.subr.mxu1 %v99_v25  ;;  %531 = vmatpush3.msra.mxu0 %v51_v26  ;;  %v80_v39 = vld [vmem:[%s1086_s1 + $0x130] sm:$0xff]  ;;  %v79_v43 = vld [vmem:[%s1086_s1 + $0x128] sm:$0xff]  ;;  %v78_v47 = vld [vmem:[%s1086_s1 + $0x120] sm:$0xff] }
  0x11   :  { %575 = vmatpush3.msra.mxu1 %v83_v27  ;;  %532 = vmatprep.subr.mxu0 %v66_v28  ;;  %v61_v48 = vld [vmem:[%s1086_s1 + $0x98] sm:$0xff]  ;;  %v60_v52 = vld [vmem:[%s1086_s1 + $0x90] sm:$0xff]  ;;  %v59_v56 = vld [vmem:[%s1086_s1 + $0x88] sm:$0xff] }
  0x12   :  { %576 = vmatprep.subr.mxu1 %v98_v29  ;;  %533 = vmatpush3.msra.mxu0 %v50_v30  ;;  %v93_v49 = vld [vmem:[%s1086_s1 + $0x198] sm:$0xff]  ;;  %v92_v53 = vld [vmem:[%s1086_s1 + $0x190] sm:$0xff]  ;;  %v91_v57 = vld [vmem:[%s1086_s1 + $0x188] sm:$0xff] }
  0x13   :  { %577 = vmatpush3.msra.mxu1 %v82_v31  ;;  %534 = vmatprep.subr.mxu0 %v65_v32  ;;  %v45_v50 = vld [vmem:[%s1086_s1 + $0x18] sm:$0xff]  ;;  %v44_v54 = vld [vmem:[%s1086_s1 + $0x10] sm:$0xff]  ;;  %v43_v58 = vld [vmem:[%s1086_s1 + $0x8] sm:$0xff] }
  0x14   :  { %578 = vmatprep.subr.mxu1 %v97_v33  ;;  %535 = vmatpush3.msra.mxu0 %v49_v34  ;;  %v77_v51 = vld [vmem:[%s1086_s1 + $0x118] sm:$0xff]  ;;  %v76_v55 = vld [vmem:[%s1086_s1 + $0x110] sm:$0xff]  ;;  %v75_v59 = vld [vmem:[%s1086_s1 + $0x108] sm:$0xff] }
  0x15   :  { %579 = vmatpush3.msra.mxu1 %v81_v35  ;;  %536 = vmatprep.subr.mxu0 %v64_v36  ;;  %v58_v60 = vld [vmem:[%s1086_s1 + $0x80] sm:$0xff]  ;;  %v15_v63 = vld [vmem:[%s1087_s0 + $0x8] sm:$0xff]  ;;  %v17_v1 = vld [vmem:[%s1087_s0 + $0x18] sm:$0xff] }
  0x16   :  { %580 = vmatprep.subr.mxu1 %v96_v37  ;;  %537 = vmatpush3.msra.mxu0 %v48_v38  ;;  %v90_v61 = vld [vmem:[%s1086_s1 + $0x180] sm:$0xff]  ;;  %v16_v3 = vld [vmem:[%s1087_s0 + $0x10] sm:$0xff]  ;;  %v137_v4 = vld [vmem:[%s1086_s1 + $0x2f8] sm:$0xff] }
  0x17   :  { %581 = vmatpush3.msra.mxu1 %v80_v39  ;;  %538 = vmatprep.subr.mxu0 %v63_v40  ;;  %v42_v62 = vld [vmem:[%s1086_s1] sm:$0xff]  ;;  %v121_v6 = vld [vmem:[%s1086_s1 + $0x278] sm:$0xff]  ;;  %v24_v7 = vld [vmem:[%s1087_s0 + $0x50] sm:$0xff] }
  0x18   :  { %582 = vmatprep.subr.mxu1 %v95_v41  ;;  %539 = vmatpush3.msra.mxu0 %v47_v42  ;;  %v74_v0 = vld [vmem:[%s1086_s1 + $0x100] sm:$0xff]  ;;  %v136_v8 = vld [vmem:[%s1086_s1 + $0x2f0] sm:$0xff]  ;;  %v23_v10 = vld [vmem:[%s1087_s0 + $0x48] sm:$0xff] }
  0x19   :  { %583 = vmatpush3.msra.mxu1 %v79_v43  ;;  %540 = vmatprep.subr.mxu0 %v62_v44  ;;  %v14_v2 = vld [vmem:[%s1087_s0] sm:$0xff]  ;;  %v120_v9 = vld [vmem:[%s1086_s1 + $0x270] sm:$0xff]  ;;  %v135_v11 = vld [vmem:[%s1086_s1 + $0x2e8] sm:$0xff] }
  0x1a   :  { %584 = vmatprep.subr.mxu1 %v94_v45  ;;  %541 = vmatpush3.msra.mxu0 %v46_v46  ;;  %v22_v5 = vld [vmem:[%s1087_s0 + $0x40] sm:$0xff]  ;;  %v21_v12 = vld [vmem:[%s1087_s0 + $0x38] sm:$0xff]  ;;  %v119_v14 = vld [vmem:[%s1086_s1 + $0x268] sm:$0xff] }
  0x1b   :  { %585 = vmatpush3.msra.mxu1 %v78_v47  ;;  %542 = vmatprep.subr.mxu0 %v61_v48  ;;  %v141_v13 = vld [vmem:[%s1086_s1 + $0x318] sm:$0xff]  ;;  %v134_v16 = vld [vmem:[%s1086_s1 + $0x2e0] sm:$0xff]  ;;  %v31_v17 = vld [vmem:[%s1087_s0 + $0x88] sm:$0xff] }
  0x1c   :  { %586 = vmatprep.subr.mxu1 %v93_v49  ;;  %543 = vmatpush3.msra.mxu0 %v45_v50  ;;  %v29_v15 = vld [vmem:[%s1087_s0 + $0x78] sm:$0xff]  ;;  %v118_v18 = vld [vmem:[%s1086_s1 + $0x260] sm:$0xff]  ;;  %v28_v21 = vld [vmem:[%s1087_s0 + $0x70] sm:$0xff] }
  0x1d   :  { %587 = vmatpush3.msra.mxu1 %v77_v51  ;;  %544 = vmatprep.subr.mxu0 %v60_v52  ;;  %v30_v19 = vld [vmem:[%s1087_s0 + $0x80] sm:$0xff]  ;;  %v133_v20 = vld [vmem:[%s1086_s1 + $0x2d8] sm:$0xff]  ;;  %v36_v23 = vld [vmem:[%s1087_s0 + $0xb0] sm:$0xff] }
  0x1e   :  { %588 = vmatprep.subr.mxu1 %v92_v53  ;;  %545 = vmatpush3.msra.mxu0 %v44_v54  ;;  %v117_v22 = vld [vmem:[%s1086_s1 + $0x258] sm:$0xff]  ;;  %v132_v24 = vld [vmem:[%s1086_s1 + $0x2d0] sm:$0xff]  ;;  %v38_v25 = vld [vmem:[%s1087_s0 + $0xc0] sm:$0xff] }
  0x1f   :  { %589 = vmatpush3.msra.mxu1 %v76_v55  ;;  %546 = vmatprep.subr.mxu0 %v59_v56  ;;  %v116_v26 = vld [vmem:[%s1086_s1 + $0x250] sm:$0xff]  ;;  %v37_v27 = vld [vmem:[%s1087_s0 + $0xb8] sm:$0xff]  ;;  %v131_v28 = vld [vmem:[%s1086_s1 + $0x2c8] sm:$0xff] }
  0x20   :  { %590 = vmatprep.subr.mxu1 %v91_v57  ;;  %547 = vmatpush3.msra.mxu0 %v43_v58  ;;  %v35_v29 = vld [vmem:[%s1087_s0 + $0xa8] sm:$0xff]  ;;  %v130_v31 = vld [vmem:[%s1086_s1 + $0x2c0] sm:$0xff]  ;;  %v140_v32 = vld [vmem:[%s1086_s1 + $0x310] sm:$0xff] }
  0x21   :  { %591 = vmatpush3.msra.mxu1 %v75_v59  ;;  %548 = vmatprep.subr.mxu0 %v58_v60  ;;  %v115_v30 = vld [vmem:[%s1086_s1 + $0x248] sm:$0xff]  ;;  %v114_v33 = vld [vmem:[%s1086_s1 + $0x240] sm:$0xff]  ;;  %v129_v35 = vld [vmem:[%s1086_s1 + $0x2b8] sm:$0xff] }
  0x22   :  { %592 = vmatprep.subr.mxu1 %v90_v61  ;;  %549 = vmatpush3.msra.mxu0 %v42_v62  ;;  %v19_v34 = vld [vmem:[%s1087_s0 + $0x28] sm:$0xff]  ;;  %v113_v36 = vld [vmem:[%s1086_s1 + $0x238] sm:$0xff]  ;;  %v128_v38 = vld [vmem:[%s1086_s1 + $0x2b0] sm:$0xff] }
  0x23   :  { %219 = vmatprep.mubr.f32.mxu0 %v15_v63  ;;  %593 = vmatpush3.msra.mxu1 %v74_v0  ;;  %v139_v37 = vld [vmem:[%s1086_s1 + $0x308] sm:$0xff]  ;;  %v112_v39 = vld [vmem:[%s1086_s1 + $0x230] sm:$0xff]  ;;  %v138_v40 = vld [vmem:[%s1086_s1 + $0x300] sm:$0xff] }
  0x24   :  { %304 = vmatprep.mubr.f32.mxu1 %v17_v1  ;;  %220 = vmatmul.mubr.f32.vlgmr.msra.gmra.mxu0 %v14_v2  ;;  %v127_v41 = vld [vmem:[%s1086_s1 + $0x2a8] sm:$0xff]  ;;  %v20_v43 = vld [vmem:[%s1087_s0 + $0x30] sm:$0xff]  ;;  %v126_v44 = vld [vmem:[%s1086_s1 + $0x2a0] sm:$0xff] }
  0x25   :  { %305 = vmatmul.mubr.f32.vlgmr.msra.gmra.mxu1 %v16_v3  ;;  %606 = vmatprep.subr.mxu0 %v137_v4  ;;  %v111_v42 = vld [vmem:[%s1086_s1 + $0x228] sm:$0xff]  ;;  %v110_v46 = vld [vmem:[%s1086_s1 + $0x220] sm:$0xff]  ;;  %v125_v48 = vld [vmem:[%s1086_s1 + $0x298] sm:$0xff] }
  0x26   :  { %224 = vmatprep.mubr.f32.mxu0 %v22_v5  ;;  %607 = vmatpush3.msra.mxu0 %v121_v6  ;;  %v27_v45 = vld [vmem:[%s1087_s0 + $0x68] sm:$0xff]  ;;  %v34_v47 = vld [vmem:[%s1087_s0 + $0xa0] sm:$0xff]  ;;  %v109_v49 = vld [vmem:[%s1086_s1 + $0x218] sm:$0xff] }
  0x27   :  { %309 = vmatprep.mubr.f32.mxu1 %v24_v7  ;;  %608 = vmatprep.subr.mxu0 %v136_v8  ;;  %v124_v50 = vld [vmem:[%s1086_s1 + $0x290] sm:$0xff]  ;;  %v41_v51 = vld [vmem:[%s1087_s0 + $0xd8] sm:$0xff]  ;;  %v123_v53 = vld [vmem:[%s1086_s1 + $0x288] sm:$0xff] }
  0x28   :  { %658 = vmatprep.subr.mxu1 %v141_v13  ;;  %609 = vmatpush3.msra.mxu0 %v120_v9  ;;  %v108_v52 = vld [vmem:[%s1086_s1 + $0x210] sm:$0xff]  ;;  %v107_v54 = vld [vmem:[%s1086_s1 + $0x208] sm:$0xff]  ;;  %v122_v55 = vld [vmem:[%s1086_s1 + $0x280] sm:$0xff] }
  0x29   :  { %310 = vmatmul.mubr.f32.gmra.mxu1 %v23_v10  ;;  %610 = vmatprep.subr.mxu0 %v135_v11  ;;  %v106_v56 = vld [vmem:[%s1086_s1 + $0x200] sm:$0xff]  ;;  %v25_v59 = vld [vmem:[%s1087_s0 + $0x58] sm:$0xff]  ;;  %v32_v61 = vld [vmem:[%s1087_s0 + $0x90] sm:$0xff] }
  0x2a   :  { %225 = vmatmul.mubr.f32.gmra.mxu0 %v21_v12  ;;  %314 = vmatprep.mubr.f32.mxu1 %v31_v17  ;;  %v18_v57 = vld [vmem:[%s1087_s0 + $0x20] sm:$0xff]  ;;  %v33_v60 = vld [vmem:[%s1087_s0 + $0x98] sm:$0xff]  ;;  %v40_v62 = vld [vmem:[%s1087_s0 + $0xd0] sm:$0xff] }
  0x2b   :  { %611 = vmatpush3.msra.mxu0 %v119_v14  ;;  %229 = vmatprep.mubr.f32.mxu0 %v29_v15  ;;  %v26_v58 = vld [vmem:[%s1087_s0 + $0x60] sm:$0xff]  ;;  %v39_v63 = vld [vmem:[%s1087_s0 + $0xc8] sm:$0xff] }
  0x2c   :  { %612 = vmatprep.subr.mxu0 %v134_v16  ;;  %659 = vmatpush3.msra.mxu1 %v141_v13 }
  0x2d   :  { %613 = vmatpush3.msra.mxu0 %v118_v18  ;;  %315 = vmatmul.mubr.f32.gmra.mxu1 %v30_v19 }
  0x2e   :  { %614 = vmatprep.subr.mxu0 %v133_v20  ;;  %230 = vmatmul.mubr.f32.gmra.mxu0 %v28_v21 }
  0x2f   :  { %615 = vmatpush3.msra.mxu0 %v117_v22  ;;  %234 = vmatprep.mubr.f32.mxu0 %v36_v23 }
  0x30   :  { %616 = vmatprep.subr.mxu0 %v132_v24  ;;  %319 = vmatprep.mubr.f32.mxu1 %v38_v25 }
  0x31   :  { %617 = vmatpush3.msra.mxu0 %v116_v26  ;;  %320 = vmatmul.mubr.f32.gmra.mxu1 %v37_v27 }
  0x32   :  { %618 = vmatprep.subr.mxu0 %v131_v28  ;;  %235 = vmatmul.mubr.f32.gmra.mxu0 %v35_v29 }
  0x33   :  { %619 = vmatpush3.msra.mxu0 %v115_v30  ;;  %660 = vmatprep.subr.mxu1 %v140_v32 }
  0x34   :  { %620 = vmatprep.subr.mxu0 %v130_v31  ;;  %389 = vmatprep.mubr.f32.mxu0 %v19_v34 }
  0x35   :  { %621 = vmatpush3.msra.mxu0 %v114_v33  ;;  %661 = vmatpush3.msra.mxu1 %v140_v32 }
  0x36   :  { %622 = vmatprep.subr.mxu0 %v129_v35  ;;  %662 = vmatprep.subr.mxu1 %v139_v37 }
  0x37   :  { %623 = vmatpush3.msra.mxu0 %v113_v36  ;;  %663 = vmatpush3.msra.mxu1 %v139_v37 }
  0x38   :  { %624 = vmatprep.subr.mxu0 %v128_v38  ;;  %664 = vmatprep.subr.mxu1 %v138_v40 }
  0x39   :  { %625 = vmatpush3.msra.mxu0 %v112_v39  ;;  %665 = vmatpush3.msra.mxu1 %v138_v40 }
  0x3a   :  { %626 = vmatprep.subr.mxu0 %v127_v41  ;;  %666 = vmatprep.mubr.msk.f32.mxu1 %vm142_vm0, %v20_v43 }
  0x3b   :  { %627 = vmatpush3.msra.mxu0 %v111_v42  ;;  %667 = vmatmul.mubr.msk.f32.vlgmr.msra.gmra.mxu1 %vm142_vm0, %v27_v45 }
  0x3c   :  { %628 = vmatprep.subr.mxu0 %v126_v44  ;;  %669 = vmatprep.mubr.msk.f32.mxu1 %vm142_vm0, %v34_v47 }
  0x3d   :  { %629 = vmatpush3.msra.mxu0 %v110_v46 }
  0x3e   :  { %630 = vmatprep.subr.mxu0 %v125_v48 }
  0x3f   :  { %631 = vmatpush3.msra.mxu0 %v109_v49  ;;  %670 = vmatmul.mubr.msk.f32.gmra.mxu1 %vm142_vm0, %v41_v51 }
  0x40   :  { %632 = vmatprep.subr.mxu0 %v124_v50 }
  0x41   :  { %633 = vmatpush3.msra.mxu0 %v108_v52 }
  0x42   :  { %634 = vmatprep.subr.mxu0 %v123_v53 }
  0x43   :  { %635 = vmatpush3.msra.mxu0 %v107_v54  ;;  %v517_v54 = vld [vmem:[%s1088_s2] ss:$0 sm:$0xff] }
  0x44   :  { %636 = vmatprep.subr.mxu0 %v122_v55 }
  0x45   :  { %637 = vmatpush3.msra.mxu0 %v106_v56 }
  0x46   :  { %390 = vmatmul.mubr.f32.vlgmr.msra.gmra.mxu0 %v18_v57 }
  0x47   :  { %394 = vmatprep.mubr.f32.mxu0 %v26_v58 }
  0x4a   :  { %395 = vmatmul.mubr.f32.gmra.mxu0 %v25_v59 }
  0x4b   :  { %399 = vmatprep.mubr.f32.mxu0 %v33_v60 }
  0x4e   :  { %400 = vmatmul.mubr.f32.gmra.mxu0 %v32_v61 }
  0x4f   :  { %404 = vmatprep.mubr.f32.mxu0 %v40_v62 }
  0x52   :  { %405 = vmatmul.mubr.f32.gmra.mxu0 %v39_v63 }
  0xe4   :  { %v550_v0 = vpop.f32.mrf.mxu0 }
  0xe5   :  { %v594_v2 = vpop.f32.mrf.mxu1 }
  0xe6   :  { %v551_v1 = vpop.f32.mrf.mxu0 }
  0xe7   :  { %v595_v4 = vpop.f32.mrf.mxu1  ;;  %v552_v23 = vadd.f32 %v551_v1, %v550_v0 }
  0xe8   :  { %v596_v25 = vadd.f32 %v595_v4, %v594_v2 }
  0xe9   :  { %v597_v6 = vpop.f32.mrf.mxu1 }
  0xea   :  { %v553_v3 = vpop.f32.mrf.mxu0  ;;  %v307_v38 = vadd.f32 %v596_v25, %v552_v23 }
  0xeb   :  { %v598_v8 = vpop.f32.mrf.mxu1 }
  0xec   :  { %v554_v5 = vpop.f32.mrf.mxu0  ;;  %v599_v20 = vadd.f32 %v598_v8, %v597_v6 }
  0xed   :  { %v600_v10 = vpop.f32.mrf.mxu1  ;;  %v555_v19 = vadd.f32 %v554_v5, %v553_v3 }
  0xee   :  { %v556_v7 = vpop.f32.mrf.mxu0 }
  0xef   :  { %v601_v12 = vpop.f32.mrf.mxu1  ;;  %v312_v29 = vadd.f32 %v599_v20, %v555_v19 }
  0xf0   :  { %v557_v9 = vpop.f32.mrf.mxu0  ;;  %v602_v27 = vadd.f32 %v601_v12, %v600_v10 }
  0xf1   :  { %v603_v14 = vpop.f32.mrf.mxu1  ;;  %v558_v26 = vadd.f32 %v557_v9, %v556_v7 }
  0xf2   :  { %v559_v11 = vpop.f32.mrf.mxu0 }
  0xf3   :  { %v604_v17 = vpop.f32.mrf.mxu1  ;;  %v317_v39 = vadd.f32 %v602_v27, %v558_v26 }
  0xf4   :  { %v560_v13 = vpop.f32.mrf.mxu0  ;;  %v605_v33 = vadd.f32 %v604_v17, %v603_v14 }
  0xf5   :  { %v561_v32 = vadd.f32 %v560_v13, %v559_v11 }
  0xf7   :  { %v322_v42 = vadd.f32 %v605_v33, %v561_v32 }
  0xfb   :  { %v668_v21 = vpop.f32.mrf.mxu1 }
  0xfd   :  { %v476_v30 = vpop.f32.mrf.mxu1 }
  0xff   :  { %v671_v37 = vpop.f32.mrf.mxu1 }
 0x101   :  { %v486_v46 = vpop.f32.mrf.mxu1 }
 0x106   :  { %v638_v15 = vpop.f32.mrf.mxu0 }
 0x108   :  { %v639_v16 = vpop.f32.mrf.mxu0 }
 0x109   :  { %v640_v34 = vadd.f32 %v639_v16, %v638_v15 }
 0x10a   :  { %v641_v18 = vpop.f32.mrf.mxu0 }
 0x10b   :  { %v392_v43 = vadd.f32 %v640_v34, %v307_v38 }
 0x10c   :  { %v642_v22 = vpop.f32.mrf.mxu0 }
 0x10d   :  { %v643_v28 = vadd.f32 %v642_v22, %v641_v18  ;;  %v477_v49 = vadd.f32 %v476_v30, %v392_v43 }
 0x10e   :  { %v644_v24 = vpop.f32.mrf.mxu0 }
 0x10f   :  { %v397_v40 = vadd.f32 %v643_v28, %v312_v29 }
 0x110   :  { %v645_v31 = vpop.f32.mrf.mxu0 }
 0x111   :  { %v646_v35 = vadd.f32 %v645_v31, %v644_v24  ;;  %v482_v47 = vadd.f32 %v668_v21, %v397_v40 }
 0x112   :  { %v647_v36 = vpop.f32.mrf.mxu0 }
 0x113   :  { %v402_v45 = vadd.f32 %v646_v35, %v317_v39  ;;  %v495_v52 = vmax.f32 %v477_v49, %v482_v47 }
 0x114   :  { %v648_v41 = vpop.f32.mrf.mxu0 }
 0x115   :  { %v649_v44 = vadd.f32 %v648_v41, %v647_v36  ;;  %v487_v50 = vadd.f32 %v486_v46, %v402_v45 }
 0x117   :  { %v407_v48 = vadd.f32 %v649_v44, %v322_v42 }
 0x119   :  { %v492_v51 = vadd.f32 %v671_v37, %v407_v48 }
 0x11b   :  { %v496_v53 = vmax.f32 %v487_v50, %v492_v51 }
 0x11d   :  { %v497_v55 = vmax.f32 %v495_v52, %v496_v53 }
 0x11f   :  { %v505_v56 = vadd.f32 %v517_v54, %v497_v55 }
 0x121   :  { %v506_v57 = vmax.f32 %v505_v56, 0.0 }
 0x123   :  { %508 = vst.msk [vmem:[%s1089_s3] sm:$0xff] %vm507_vm1, %v506_v57 }

// kernel: cnn_reg_forward.7
= control target key start
LH: loop header
LB: loop body
LE: loop exit
PB: predicated region body
PF: predicated region fallthrough
CT: control target
= control target key end

     0   :  { %vm284_vm0 = vcmask 523264   ;;  %vm1624_vm1 = vmmov 0   ;;  %s2704_s1 = inlined_call_operand.vmem [shape: f32[1600,128], index: 1, kind: input, shape index: {}]   ;;  %s2705_s0 = inlined_call_operand.vmem [shape: f32[32,1600], index: 0, kind: input, shape index: {}]   ;;  %s2706_s3 = inlined_call_operand.vmem [shape: f32[128,256], index: 3, kind: input, shape index: {}]   ;;  %s2707_s5 = inlined_call_operand.vmem [shape: f32[256,128], index: 5, kind: input, shape index: {}]   ;;  %s2708_s2 = inlined_call_operand.vmem [shape: f32[1,128], index: 2, kind: input, shape index: {}]   ;;  %s2709_s7 = inlined_call_operand.vmem [shape: f32[128,128], index: 7, kind: input, shape index: {}]   ;;  %s2710_s4 = inlined_call_operand.vmem [shape: f32[1,256], index: 4, kind: input, shape index: {}]   ;;  %s2711_s6 = inlined_call_operand.vmem [shape: f32[1,128], index: 6, kind: input, shape index: {}]   ;;  %s2712_s8 = inlined_call_operand.vmem [shape: f32[1,128], index: 8, kind: input, shape index: {}]   ;;  %s2713_s9 = inlined_call_operand.vmem [shape: f32[8,128], index: 9, kind: output, shape index: {}]  }
   0x1   :  { %v115_v0 = vld [vmem:[%s2704_s1 + $0xf8] sm:$0xff]  ;;  %v114_v4 = vld [vmem:[%s2704_s1 + $0xf0] sm:$0xff]  ;;  %v113_v8 = vld [vmem:[%s2704_s1 + $0xe8] sm:$0xff] }
   0x2   :  { %v147_v1 = vld [vmem:[%s2704_s1 + $0x1f8] sm:$0xff]  ;;  %1236 = vmatprep.subr.mxu0 %v115_v0  ;;  %v146_v5 = vld [vmem:[%s2704_s1 + $0x1f0] sm:$0xff]  ;;  %v145_v9 = vld [vmem:[%s2704_s1 + $0x1e8] sm:$0xff] }
   0x3   :  { %v99_v2 = vld [vmem:[%s2704_s1 + $0x78] sm:$0xff]  ;;  %1280 = vmatprep.subr.mxu1 %v147_v1  ;;  %v98_v6 = vld [vmem:[%s2704_s1 + $0x70] sm:$0xff]  ;;  %v97_v10 = vld [vmem:[%s2704_s1 + $0x68] sm:$0xff] }
   0x4   :  { %v131_v3 = vld [vmem:[%s2704_s1 + $0x178] sm:$0xff]  ;;  %1237 = vmatpush3.msra.mxu0 %v99_v2  ;;  %v130_v7 = vld [vmem:[%s2704_s1 + $0x170] sm:$0xff]  ;;  %v129_v11 = vld [vmem:[%s2704_s1 + $0x168] sm:$0xff] }
   0x5   :  { %1281 = vmatpush3.msra.mxu1 %v131_v3  ;;  %1238 = vmatprep.subr.mxu0 %v114_v4  ;;  %v112_v12 = vld [vmem:[%s2704_s1 + $0xe0] sm:$0xff]  ;;  %v111_v16 = vld [vmem:[%s2704_s1 + $0xd8] sm:$0xff]  ;;  %v110_v20 = vld [vmem:[%s2704_s1 + $0xd0] sm:$0xff] }
   0x6   :  { %1282 = vmatprep.subr.mxu1 %v146_v5  ;;  %1239 = vmatpush3.msra.mxu0 %v98_v6  ;;  %v144_v13 = vld [vmem:[%s2704_s1 + $0x1e0] sm:$0xff]  ;;  %v143_v17 = vld [vmem:[%s2704_s1 + $0x1d8] sm:$0xff]  ;;  %v142_v21 = vld [vmem:[%s2704_s1 + $0x1d0] sm:$0xff] }
   0x7   :  { %1283 = vmatpush3.msra.mxu1 %v130_v7  ;;  %1240 = vmatprep.subr.mxu0 %v113_v8  ;;  %v96_v14 = vld [vmem:[%s2704_s1 + $0x60] sm:$0xff]  ;;  %v95_v18 = vld [vmem:[%s2704_s1 + $0x58] sm:$0xff]  ;;  %v94_v22 = vld [vmem:[%s2704_s1 + $0x50] sm:$0xff] }
   0x8   :  { %1284 = vmatprep.subr.mxu1 %v145_v9  ;;  %v128_v15 = vld [vmem:[%s2704_s1 + $0x160] sm:$0xff]  ;;  %1241 = vmatpush3.msra.mxu0 %v97_v10  ;;  %v127_v19 = vld [vmem:[%s2704_s1 + $0x158] sm:$0xff]  ;;  %v126_v23 = vld [vmem:[%s2704_s1 + $0x150] sm:$0xff] }
   0x9   :  { %1285 = vmatpush3.msra.mxu1 %v129_v11  ;;  %1242 = vmatprep.subr.mxu0 %v112_v12  ;;  %v109_v24 = vld [vmem:[%s2704_s1 + $0xc8] sm:$0xff]  ;;  %v108_v28 = vld [vmem:[%s2704_s1 + $0xc0] sm:$0xff]  ;;  %v107_v32 = vld [vmem:[%s2704_s1 + $0xb8] sm:$0xff] }
   0xa   :  { %1286 = vmatprep.subr.mxu1 %v144_v13  ;;  %1243 = vmatpush3.msra.mxu0 %v96_v14  ;;  %v141_v25 = vld [vmem:[%s2704_s1 + $0x1c8] sm:$0xff]  ;;  %v140_v29 = vld [vmem:[%s2704_s1 + $0x1c0] sm:$0xff]  ;;  %v139_v33 = vld [vmem:[%s2704_s1 + $0x1b8] sm:$0xff] }
   0xb   :  { %1287 = vmatpush3.msra.mxu1 %v128_v15  ;;  %1244 = vmatprep.subr.mxu0 %v111_v16  ;;  %v93_v26 = vld [vmem:[%s2704_s1 + $0x48] sm:$0xff]  ;;  %v92_v30 = vld [vmem:[%s2704_s1 + $0x40] sm:$0xff]  ;;  %v91_v34 = vld [vmem:[%s2704_s1 + $0x38] sm:$0xff] }
   0xc   :  { %1288 = vmatprep.subr.mxu1 %v143_v17  ;;  %1245 = vmatpush3.msra.mxu0 %v95_v18  ;;  %v125_v27 = vld [vmem:[%s2704_s1 + $0x148] sm:$0xff]  ;;  %v124_v31 = vld [vmem:[%s2704_s1 + $0x140] sm:$0xff]  ;;  %v123_v35 = vld [vmem:[%s2704_s1 + $0x138] sm:$0xff] }
   0xd   :  { %1289 = vmatpush3.msra.mxu1 %v127_v19  ;;  %1246 = vmatprep.subr.mxu0 %v110_v20  ;;  %v106_v36 = vld [vmem:[%s2704_s1 + $0xb0] sm:$0xff]  ;;  %v105_v40 = vld [vmem:[%s2704_s1 + $0xa8] sm:$0xff]  ;;  %v104_v44 = vld [vmem:[%s2704_s1 + $0xa0] sm:$0xff] }
   0xe   :  { %1290 = vmatprep.subr.mxu1 %v142_v21  ;;  %1247 = vmatpush3.msra.mxu0 %v94_v22  ;;  %v138_v37 = vld [vmem:[%s2704_s1 + $0x1b0] sm:$0xff]  ;;  %v137_v41 = vld [vmem:[%s2704_s1 + $0x1a8] sm:$0xff]  ;;  %v136_v45 = vld [vmem:[%s2704_s1 + $0x1a0] sm:$0xff] }
   0xf   :  { %1291 = vmatpush3.msra.mxu1 %v126_v23  ;;  %1248 = vmatprep.subr.mxu0 %v109_v24  ;;  %v90_v38 = vld [vmem:[%s2704_s1 + $0x30] sm:$0xff]  ;;  %v89_v42 = vld [vmem:[%s2704_s1 + $0x28] sm:$0xff]  ;;  %v88_v46 = vld [vmem:[%s2704_s1 + $0x20] sm:$0xff] }
  0x10   :  { %1292 = vmatprep.subr.mxu1 %v141_v25  ;;  %1249 = vmatpush3.msra.mxu0 %v93_v26  ;;  %v122_v39 = vld [vmem:[%s2704_s1 + $0x130] sm:$0xff]  ;;  %v121_v43 = vld [vmem:[%s2704_s1 + $0x128] sm:$0xff]  ;;  %v120_v47 = vld [vmem:[%s2704_s1 + $0x120] sm:$0xff] }
  0x11   :  { %1293 = vmatpush3.msra.mxu1 %v125_v27  ;;  %1250 = vmatprep.subr.mxu0 %v108_v28  ;;  %v103_v48 = vld [vmem:[%s2704_s1 + $0x98] sm:$0xff]  ;;  %v102_v52 = vld [vmem:[%s2704_s1 + $0x90] sm:$0xff]  ;;  %v101_v56 = vld [vmem:[%s2704_s1 + $0x88] sm:$0xff] }
  0x12   :  { %1294 = vmatprep.subr.mxu1 %v140_v29  ;;  %1251 = vmatpush3.msra.mxu0 %v92_v30  ;;  %v135_v49 = vld [vmem:[%s2704_s1 + $0x198] sm:$0xff]  ;;  %v134_v53 = vld [vmem:[%s2704_s1 + $0x190] sm:$0xff]  ;;  %v133_v57 = vld [vmem:[%s2704_s1 + $0x188] sm:$0xff] }
  0x13   :  { %1295 = vmatpush3.msra.mxu1 %v124_v31  ;;  %1252 = vmatprep.subr.mxu0 %v107_v32  ;;  %v87_v50 = vld [vmem:[%s2704_s1 + $0x18] sm:$0xff]  ;;  %v86_v54 = vld [vmem:[%s2704_s1 + $0x10] sm:$0xff]  ;;  %v85_v58 = vld [vmem:[%s2704_s1 + $0x8] sm:$0xff] }
  0x14   :  { %1296 = vmatprep.subr.mxu1 %v139_v33  ;;  %1253 = vmatpush3.msra.mxu0 %v91_v34  ;;  %v119_v51 = vld [vmem:[%s2704_s1 + $0x118] sm:$0xff]  ;;  %v118_v55 = vld [vmem:[%s2704_s1 + $0x110] sm:$0xff]  ;;  %v117_v59 = vld [vmem:[%s2704_s1 + $0x108] sm:$0xff] }
  0x15   :  { %1297 = vmatpush3.msra.mxu1 %v123_v35  ;;  %1254 = vmatprep.subr.mxu0 %v106_v36  ;;  %v100_v60 = vld [vmem:[%s2704_s1 + $0x80] sm:$0xff]  ;;  %v33_v63 = vld [vmem:[%s2705_s0 + $0x8] sm:$0xff]  ;;  %v35_v1 = vld [vmem:[%s2705_s0 + $0x18] sm:$0xff] }
  0x16   :  { %1298 = vmatprep.subr.mxu1 %v138_v37  ;;  %1255 = vmatpush3.msra.mxu0 %v90_v38  ;;  %v132_v61 = vld [vmem:[%s2704_s1 + $0x180] sm:$0xff]  ;;  %v34_v3 = vld [vmem:[%s2705_s0 + $0x10] sm:$0xff]  ;;  %v179_v4 = vld [vmem:[%s2704_s1 + $0x2f8] sm:$0xff] }
  0x17   :  { %1299 = vmatpush3.msra.mxu1 %v122_v39  ;;  %1256 = vmatprep.subr.mxu0 %v105_v40  ;;  %v84_v62 = vld [vmem:[%s2704_s1] sm:$0xff]  ;;  %v211_v5 = vld [vmem:[%s2704_s1 + $0x3f8] sm:$0xff]  ;;  %v178_v8 = vld [vmem:[%s2704_s1 + $0x2f0] sm:$0xff] }
  0x18   :  { %1300 = vmatprep.subr.mxu1 %v137_v41  ;;  %1257 = vmatpush3.msra.mxu0 %v89_v42  ;;  %v116_v0 = vld [vmem:[%s2704_s1 + $0x100] sm:$0xff]  ;;  %v163_v6 = vld [vmem:[%s2704_s1 + $0x278] sm:$0xff]  ;;  %v210_v9 = vld [vmem:[%s2704_s1 + $0x3f0] sm:$0xff] }
  0x19   :  { %1301 = vmatpush3.msra.mxu1 %v121_v43  ;;  %1258 = vmatprep.subr.mxu0 %v104_v44  ;;  %v32_v2 = vld [vmem:[%s2705_s0] sm:$0xff]  ;;  %v195_v7 = vld [vmem:[%s2704_s1 + $0x378] sm:$0xff]  ;;  %v162_v10 = vld [vmem:[%s2704_s1 + $0x270] sm:$0xff] }
  0x1a   :  { %1302 = vmatprep.subr.mxu1 %v136_v45  ;;  %1259 = vmatpush3.msra.mxu0 %v88_v46  ;;  %v194_v11 = vld [vmem:[%s2704_s1 + $0x370] sm:$0xff]  ;;  %v177_v12 = vld [vmem:[%s2704_s1 + $0x2e8] sm:$0xff]  ;;  %v176_v16 = vld [vmem:[%s2704_s1 + $0x2e0] sm:$0xff] }
  0x1b   :  { %1303 = vmatpush3.msra.mxu1 %v120_v47  ;;  %1260 = vmatprep.subr.mxu0 %v103_v48  ;;  %v209_v13 = vld [vmem:[%s2704_s1 + $0x3e8] sm:$0xff]  ;;  %v208_v17 = vld [vmem:[%s2704_s1 + $0x3e0] sm:$0xff]  ;;  %v175_v20 = vld [vmem:[%s2704_s1 + $0x2d8] sm:$0xff] }
  0x1c   :  { %1304 = vmatprep.subr.mxu1 %v135_v49  ;;  %1261 = vmatpush3.msra.mxu0 %v87_v50  ;;  %v161_v14 = vld [vmem:[%s2704_s1 + $0x268] sm:$0xff]  ;;  %v160_v18 = vld [vmem:[%s2704_s1 + $0x260] sm:$0xff]  ;;  %v207_v21 = vld [vmem:[%s2704_s1 + $0x3d8] sm:$0xff] }
  0x1d   :  { %1305 = vmatpush3.msra.mxu1 %v119_v51  ;;  %1262 = vmatprep.subr.mxu0 %v102_v52  ;;  %v193_v15 = vld [vmem:[%s2704_s1 + $0x368] sm:$0xff]  ;;  %v192_v19 = vld [vmem:[%s2704_s1 + $0x360] sm:$0xff]  ;;  %v159_v22 = vld [vmem:[%s2704_s1 + $0x258] sm:$0xff] }
  0x1e   :  { %1306 = vmatprep.subr.mxu1 %v134_v53  ;;  %1263 = vmatpush3.msra.mxu0 %v86_v54  ;;  %v191_v23 = vld [vmem:[%s2704_s1 + $0x358] sm:$0xff]  ;;  %v174_v24 = vld [vmem:[%s2704_s1 + $0x2d0] sm:$0xff]  ;;  %v173_v28 = vld [vmem:[%s2704_s1 + $0x2c8] sm:$0xff] }
  0x1f   :  { %1307 = vmatpush3.msra.mxu1 %v118_v55  ;;  %1264 = vmatprep.subr.mxu0 %v101_v56  ;;  %v206_v25 = vld [vmem:[%s2704_s1 + $0x3d0] sm:$0xff]  ;;  %v205_v29 = vld [vmem:[%s2704_s1 + $0x3c8] sm:$0xff]  ;;  %v172_v32 = vld [vmem:[%s2704_s1 + $0x2c0] sm:$0xff] }
  0x20   :  { %1308 = vmatprep.subr.mxu1 %v133_v57  ;;  %1265 = vmatpush3.msra.mxu0 %v85_v58  ;;  %v158_v26 = vld [vmem:[%s2704_s1 + $0x250] sm:$0xff]  ;;  %v157_v30 = vld [vmem:[%s2704_s1 + $0x248] sm:$0xff]  ;;  %v204_v33 = vld [vmem:[%s2704_s1 + $0x3c0] sm:$0xff] }
  0x21   :  { %1309 = vmatpush3.msra.mxu1 %v117_v59  ;;  %1266 = vmatprep.subr.mxu0 %v100_v60  ;;  %v190_v27 = vld [vmem:[%s2704_s1 + $0x350] sm:$0xff]  ;;  %v189_v31 = vld [vmem:[%s2704_s1 + $0x348] sm:$0xff]  ;;  %v156_v34 = vld [vmem:[%s2704_s1 + $0x240] sm:$0xff] }
  0x22   :  { %1310 = vmatprep.subr.mxu1 %v132_v61  ;;  %1267 = vmatpush3.msra.mxu0 %v84_v62  ;;  %v188_v35 = vld [vmem:[%s2704_s1 + $0x340] sm:$0xff]  ;;  %v171_v36 = vld [vmem:[%s2704_s1 + $0x2b8] sm:$0xff]  ;;  %v46_v37 = vld [vmem:[%s2705_s0 + $0x70] sm:$0xff] }
  0x23   :  { %361 = vmatprep.mubr.f32.mxu0 %v33_v63  ;;  %1311 = vmatpush3.msra.mxu1 %v116_v0  ;;  %v155_v38 = vld [vmem:[%s2704_s1 + $0x238] sm:$0xff]  ;;  %v48_v39 = vld [vmem:[%s2705_s0 + $0x80] sm:$0xff]  ;;  %v170_v40 = vld [vmem:[%s2704_s1 + $0x2b0] sm:$0xff] }
  0x24   :  { %446 = vmatprep.mubr.f32.mxu1 %v35_v1  ;;  %362 = vmatmul.mubr.f32.vlgmr.msra.gmra.mxu0 %v32_v2  ;;  %v203_v41 = vld [vmem:[%s2704_s1 + $0x3b8] sm:$0xff]  ;;  %v45_v42 = vld [vmem:[%s2705_s0 + $0x68] sm:$0xff]  ;;  %v154_v44 = vld [vmem:[%s2704_s1 + $0x230] sm:$0xff] }
  0x25   :  { %447 = vmatmul.mubr.f32.vlgmr.msra.gmra.mxu1 %v34_v3  ;;  %1324 = vmatprep.subr.mxu0 %v179_v4  ;;  %v47_v43 = vld [vmem:[%s2705_s0 + $0x78] sm:$0xff]  ;;  %v169_v46 = vld [vmem:[%s2704_s1 + $0x2a8] sm:$0xff]  ;;  %v202_v47 = vld [vmem:[%s2704_s1 + $0x3b0] sm:$0xff] }
  0x26   :  { %1368 = vmatprep.subr.mxu1 %v211_v5  ;;  %1325 = vmatpush3.msra.mxu0 %v163_v6  ;;  %v187_v45 = vld [vmem:[%s2704_s1 + $0x338] sm:$0xff]  ;;  %v153_v48 = vld [vmem:[%s2704_s1 + $0x228] sm:$0xff]  ;;  %v186_v49 = vld [vmem:[%s2704_s1 + $0x330] sm:$0xff] }
  0x27   :  { %1369 = vmatpush3.msra.mxu1 %v195_v7  ;;  %1326 = vmatprep.subr.mxu0 %v178_v8  ;;  %v59_v50 = vld [vmem:[%s2705_s0 + $0xd8] sm:$0xff]  ;;  %v61_v51 = vld [vmem:[%s2705_s0 + $0xe8] sm:$0xff]  ;;  %v168_v52 = vld [vmem:[%s2704_s1 + $0x2a0] sm:$0xff] }
  0x28   :  { %1370 = vmatprep.subr.mxu1 %v210_v9  ;;  %1327 = vmatpush3.msra.mxu0 %v162_v10  ;;  %v201_v53 = vld [vmem:[%s2704_s1 + $0x3a8] sm:$0xff]  ;;  %v58_v54 = vld [vmem:[%s2705_s0 + $0xd0] sm:$0xff]  ;;  %v60_v55 = vld [vmem:[%s2705_s0 + $0xe0] sm:$0xff] }
  0x29   :  { %1371 = vmatpush3.msra.mxu1 %v194_v11  ;;  %1328 = vmatprep.subr.mxu0 %v177_v12  ;;  %v152_v56 = vld [vmem:[%s2704_s1 + $0x220] sm:$0xff]  ;;  %v185_v57 = vld [vmem:[%s2704_s1 + $0x328] sm:$0xff]  ;;  %v167_v58 = vld [vmem:[%s2704_s1 + $0x298] sm:$0xff] }
  0x2a   :  { %1372 = vmatprep.subr.mxu1 %v209_v13  ;;  %1329 = vmatpush3.msra.mxu0 %v161_v14  ;;  %v200_v59 = vld [vmem:[%s2704_s1 + $0x3a0] sm:$0xff]  ;;  %v151_v60 = vld [vmem:[%s2704_s1 + $0x218] sm:$0xff]  ;;  %v74_v63 = vld [vmem:[%s2705_s0 + $0x150] sm:$0xff] }
  0x2b   :  { %1373 = vmatpush3.msra.mxu1 %v193_v15  ;;  %1330 = vmatprep.subr.mxu0 %v176_v16  ;;  %v184_v61 = vld [vmem:[%s2704_s1 + $0x320] sm:$0xff]  ;;  %v166_v0 = vld [vmem:[%s2704_s1 + $0x290] sm:$0xff]  ;;  %v199_v1 = vld [vmem:[%s2704_s1 + $0x398] sm:$0xff] }
  0x2c   :  { %1374 = vmatprep.subr.mxu1 %v208_v17  ;;  %1331 = vmatpush3.msra.mxu0 %v160_v18  ;;  %v72_v62 = vld [vmem:[%s2705_s0 + $0x140] sm:$0xff]  ;;  %v71_v2 = vld [vmem:[%s2705_s0 + $0x138] sm:$0xff]  ;;  %v73_v3 = vld [vmem:[%s2705_s0 + $0x148] sm:$0xff] }
  0x2d   :  { %1375 = vmatpush3.msra.mxu1 %v192_v19  ;;  %1332 = vmatprep.subr.mxu0 %v175_v20  ;;  %v150_v4 = vld [vmem:[%s2704_s1 + $0x210] sm:$0xff]  ;;  %v183_v5 = vld [vmem:[%s2704_s1 + $0x318] sm:$0xff]  ;;  %v165_v6 = vld [vmem:[%s2704_s1 + $0x288] sm:$0xff] }
  0x2e   :  { %1376 = vmatprep.subr.mxu1 %v207_v21  ;;  %1333 = vmatpush3.msra.mxu0 %v159_v22  ;;  %v198_v7 = vld [vmem:[%s2704_s1 + $0x390] sm:$0xff]  ;;  %v149_v8 = vld [vmem:[%s2704_s1 + $0x208] sm:$0xff]  ;;  %v164_v10 = vld [vmem:[%s2704_s1 + $0x280] sm:$0xff] }
  0x2f   :  { %1377 = vmatpush3.msra.mxu1 %v191_v23  ;;  %1334 = vmatprep.subr.mxu0 %v174_v24  ;;  %v182_v9 = vld [vmem:[%s2704_s1 + $0x310] sm:$0xff]  ;;  %v197_v11 = vld [vmem:[%s2704_s1 + $0x388] sm:$0xff]  ;;  %v148_v12 = vld [vmem:[%s2704_s1 + $0x200] sm:$0xff] }
  0x30   :  { %1378 = vmatprep.subr.mxu1 %v206_v25  ;;  %1335 = vmatpush3.msra.mxu0 %v158_v26  ;;  %v37_v13 = vld [vmem:[%s2705_s0 + $0x28] sm:$0xff]  ;;  %v36_v15 = vld [vmem:[%s2705_s0 + $0x20] sm:$0xff]  ;;  %v243_v17 = vld [vmem:[%s2704_s1 + $0x4f8] sm:$0xff] }
  0x31   :  { %1379 = vmatpush3.msra.mxu1 %v190_v27  ;;  %1336 = vmatprep.subr.mxu0 %v173_v28  ;;  %v181_v14 = vld [vmem:[%s2704_s1 + $0x308] sm:$0xff]  ;;  %v196_v16 = vld [vmem:[%s2704_s1 + $0x380] sm:$0xff]  ;;  %v39_v19 = vld [vmem:[%s2705_s0 + $0x38] sm:$0xff] }
  0x32   :  { %1380 = vmatprep.subr.mxu1 %v205_v29  ;;  %1337 = vmatpush3.msra.mxu0 %v157_v30  ;;  %v180_v18 = vld [vmem:[%s2704_s1 + $0x300] sm:$0xff]  ;;  %v227_v20 = vld [vmem:[%s2704_s1 + $0x478] sm:$0xff]  ;;  %v38_v21 = vld [vmem:[%s2705_s0 + $0x30] sm:$0xff] }
  0x33   :  { %1381 = vmatpush3.msra.mxu1 %v189_v31  ;;  %1338 = vmatprep.subr.mxu0 %v172_v32  ;;  %v242_v22 = vld [vmem:[%s2704_s1 + $0x4f0] sm:$0xff]  ;;  %v275_v23 = vld [vmem:[%s2704_s1 + $0x5f8] sm:$0xff]  ;;  %v49_v27 = vld [vmem:[%s2705_s0 + $0x88] sm:$0xff] }
  0x34   :  { %1382 = vmatprep.subr.mxu1 %v204_v33  ;;  %1339 = vmatpush3.msra.mxu0 %v156_v34  ;;  %v50_v24 = vld [vmem:[%s2705_s0 + $0x90] sm:$0xff]  ;;  %v259_v26 = vld [vmem:[%s2704_s1 + $0x578] sm:$0xff]  ;;  %v241_v28 = vld [vmem:[%s2704_s1 + $0x4e8] sm:$0xff] }
  0x35   :  { %1383 = vmatpush3.msra.mxu1 %v188_v35  ;;  %1340 = vmatprep.subr.mxu0 %v171_v36  ;;  %v226_v25 = vld [vmem:[%s2704_s1 + $0x470] sm:$0xff]  ;;  %v52_v30 = vld [vmem:[%s2705_s0 + $0xa0] sm:$0xff]  ;;  %v225_v31 = vld [vmem:[%s2704_s1 + $0x468] sm:$0xff] }
  0x36   :  { %366 = vmatprep.mubr.f32.mxu0 %v46_v37  ;;  %1341 = vmatpush3.msra.mxu0 %v155_v38  ;;  %v274_v29 = vld [vmem:[%s2704_s1 + $0x5f0] sm:$0xff]  ;;  %v240_v33 = vld [vmem:[%s2704_s1 + $0x4e0] sm:$0xff]  ;;  %v51_v34 = vld [vmem:[%s2705_s0 + $0x98] sm:$0xff] }
  0x37   :  { %451 = vmatprep.mubr.f32.mxu1 %v48_v39  ;;  %1342 = vmatprep.subr.mxu0 %v170_v40  ;;  %v258_v32 = vld [vmem:[%s2704_s1 + $0x570] sm:$0xff]  ;;  %v273_v35 = vld [vmem:[%s2704_s1 + $0x5e8] sm:$0xff]  ;;  %v63_v36 = vld [vmem:[%s2705_s0 + $0xf8] sm:$0xff] }
  0x38   :  { %1384 = vmatprep.subr.mxu1 %v203_v41  ;;  %367 = vmatmul.mubr.f32.gmra.mxu0 %v45_v42  ;;  %v224_v37 = vld [vmem:[%s2704_s1 + $0x460] sm:$0xff]  ;;  %v257_v38 = vld [vmem:[%s2704_s1 + $0x568] sm:$0xff]  ;;  %v62_v39 = vld [vmem:[%s2705_s0 + $0xf0] sm:$0xff] }
  0x39   :  { %452 = vmatmul.mubr.f32.gmra.mxu1 %v47_v43  ;;  %1343 = vmatpush3.msra.mxu0 %v154_v44  ;;  %v239_v40 = vld [vmem:[%s2704_s1 + $0x4d8] sm:$0xff]  ;;  %v272_v41 = vld [vmem:[%s2704_s1 + $0x5e0] sm:$0xff]  ;;  %v65_v42 = vld [vmem:[%s2705_s0 + $0x108] sm:$0xff] }
  0x3a   :  { %1385 = vmatpush3.msra.mxu1 %v187_v45  ;;  %1344 = vmatprep.subr.mxu0 %v169_v46  ;;  %v223_v43 = vld [vmem:[%s2704_s1 + $0x458] sm:$0xff]  ;;  %v256_v44 = vld [vmem:[%s2704_s1 + $0x560] sm:$0xff]  ;;  %v238_v45 = vld [vmem:[%s2704_s1 + $0x4d0] sm:$0xff] }
  0x3b   :  { %1386 = vmatprep.subr.mxu1 %v202_v47  ;;  %1345 = vmatpush3.msra.mxu0 %v153_v48  ;;  %v64_v46 = vld [vmem:[%s2705_s0 + $0x100] sm:$0xff]  ;;  %v271_v47 = vld [vmem:[%s2704_s1 + $0x5d8] sm:$0xff] }
  0x3c   :  { %1387 = vmatpush3.msra.mxu1 %v186_v49  ;;  %371 = vmatprep.mubr.f32.mxu0 %v59_v50  ;;  %v76_v48 = vld [vmem:[%s2705_s0 + $0x160] sm:$0xff]  ;;  %v222_v49 = vld [vmem:[%s2704_s1 + $0x450] sm:$0xff]  ;;  %v255_v50 = vld [vmem:[%s2704_s1 + $0x558] sm:$0xff] }
  0x3d   :  { %456 = vmatprep.mubr.f32.mxu1 %v61_v51  ;;  %1346 = vmatprep.subr.mxu0 %v168_v52  ;;  %v75_v51 = vld [vmem:[%s2705_s0 + $0x158] sm:$0xff]  ;;  %v237_v52 = vld [vmem:[%s2704_s1 + $0x4c8] sm:$0xff] }
  0x3e   :  { %1388 = vmatprep.subr.mxu1 %v201_v53  ;;  %372 = vmatmul.mubr.f32.gmra.mxu0 %v58_v54  ;;  %v270_v53 = vld [vmem:[%s2704_s1 + $0x5d0] sm:$0xff] }
  0x3f   :  { %457 = vmatmul.mubr.f32.gmra.mxu1 %v60_v55  ;;  %1347 = vmatpush3.msra.mxu0 %v152_v56  ;;  %v78_v54 = vld [vmem:[%s2705_s0 + $0x170] sm:$0xff]  ;;  %v221_v55 = vld [vmem:[%s2704_s1 + $0x448] sm:$0xff] }
  0x40   :  { %1389 = vmatpush3.msra.mxu1 %v185_v57  ;;  %1348 = vmatprep.subr.mxu0 %v167_v58  ;;  %v254_v56 = vld [vmem:[%s2704_s1 + $0x550] sm:$0xff]  ;;  %v236_v57 = vld [vmem:[%s2704_s1 + $0x4c0] sm:$0xff]  ;;  %v77_v58 = vld [vmem:[%s2705_s0 + $0x168] sm:$0xff] }
  0x41   :  { %1390 = vmatprep.subr.mxu1 %v200_v59  ;;  %1349 = vmatpush3.msra.mxu0 %v151_v60  ;;  %v269_v59 = vld [vmem:[%s2704_s1 + $0x5c8] sm:$0xff]  ;;  %v220_v60 = vld [vmem:[%s2704_s1 + $0x440] sm:$0xff] }
  0x42   :  { %1391 = vmatpush3.msra.mxu1 %v184_v61  ;;  %376 = vmatprep.mubr.f32.mxu0 %v72_v62  ;;  %v253_v61 = vld [vmem:[%s2704_s1 + $0x548] sm:$0xff]  ;;  %v235_v62 = vld [vmem:[%s2704_s1 + $0x4b8] sm:$0xff] }
  0x43   :  { %461 = vmatprep.mubr.f32.mxu1 %v74_v63  ;;  %1350 = vmatprep.subr.mxu0 %v166_v0  ;;  %v268_v63 = vld [vmem:[%s2704_s1 + $0x5c0] sm:$0xff]  ;;  %v219_v0 = vld [vmem:[%s2704_s1 + $0x438] sm:$0xff] }
  0x44   :  { %1392 = vmatprep.subr.mxu1 %v199_v1  ;;  %377 = vmatmul.mubr.f32.gmra.mxu0 %v71_v2  ;;  %v252_v1 = vld [vmem:[%s2704_s1 + $0x540] sm:$0xff]  ;;  %v234_v2 = vld [vmem:[%s2704_s1 + $0x4b0] sm:$0xff] }
  0x45   :  { %462 = vmatmul.mubr.f32.gmra.mxu1 %v73_v3  ;;  %1351 = vmatpush3.msra.mxu0 %v150_v4  ;;  %v267_v3 = vld [vmem:[%s2704_s1 + $0x5b8] sm:$0xff]  ;;  %v218_v4 = vld [vmem:[%s2704_s1 + $0x430] sm:$0xff] }
  0x46   :  { %1393 = vmatpush3.msra.mxu1 %v183_v5  ;;  %1352 = vmatprep.subr.mxu0 %v165_v6  ;;  %v251_v5 = vld [vmem:[%s2704_s1 + $0x538] sm:$0xff]  ;;  %v233_v6 = vld [vmem:[%s2704_s1 + $0x4a8] sm:$0xff] }
  0x47   :  { %1394 = vmatprep.subr.mxu1 %v198_v7  ;;  %1353 = vmatpush3.msra.mxu0 %v149_v8  ;;  %v266_v7 = vld [vmem:[%s2704_s1 + $0x5b0] sm:$0xff]  ;;  %v217_v8 = vld [vmem:[%s2704_s1 + $0x428] sm:$0xff] }
  0x48   :  { %1395 = vmatpush3.msra.mxu1 %v182_v9  ;;  %1354 = vmatprep.subr.mxu0 %v164_v10  ;;  %v250_v9 = vld [vmem:[%s2704_s1 + $0x530] sm:$0xff]  ;;  %v232_v10 = vld [vmem:[%s2704_s1 + $0x4a0] sm:$0xff] }
  0x49   :  { %1396 = vmatprep.subr.mxu1 %v197_v11  ;;  %1355 = vmatpush3.msra.mxu0 %v148_v12  ;;  %v265_v11 = vld [vmem:[%s2704_s1 + $0x5a8] sm:$0xff]  ;;  %v216_v12 = vld [vmem:[%s2704_s1 + $0x420] sm:$0xff] }
  0x4a   :  { %531 = vmatprep.mubr.f32.mxu0 %v37_v13  ;;  %1397 = vmatpush3.msra.mxu1 %v181_v14  ;;  %v249_v13 = vld [vmem:[%s2704_s1 + $0x528] sm:$0xff]  ;;  %v231_v14 = vld [vmem:[%s2704_s1 + $0x498] sm:$0xff] }
  0x4b   :  { %532 = vmatmul.mubr.f32.vlgmr.msra.gmra.mxu0 %v36_v15  ;;  %1398 = vmatprep.subr.mxu1 %v196_v16  ;;  %v264_v15 = vld [vmem:[%s2704_s1 + $0x5a0] sm:$0xff]  ;;  %v215_v16 = vld [vmem:[%s2704_s1 + $0x418] sm:$0xff] }
  0x4c   :  { %1412 = vmatprep.subr.mxu0 %v243_v17  ;;  %1399 = vmatpush3.msra.mxu1 %v180_v18  ;;  %v248_v17 = vld [vmem:[%s2704_s1 + $0x520] sm:$0xff]  ;;  %v230_v18 = vld [vmem:[%s2704_s1 + $0x490] sm:$0xff] }
  0x4d   :  { %616 = vmatprep.mubr.f32.mxu1 %v39_v19  ;;  %1413 = vmatpush3.msra.mxu0 %v227_v20  ;;  %v263_v19 = vld [vmem:[%s2704_s1 + $0x598] sm:$0xff]  ;;  %v214_v20 = vld [vmem:[%s2704_s1 + $0x410] sm:$0xff] }
  0x4e   :  { %617 = vmatmul.mubr.f32.vlgmr.msra.gmra.mxu1 %v38_v21  ;;  %1414 = vmatprep.subr.mxu0 %v242_v22  ;;  %v247_v21 = vld [vmem:[%s2704_s1 + $0x518] sm:$0xff]  ;;  %v229_v22 = vld [vmem:[%s2704_s1 + $0x488] sm:$0xff] }
  0x4f   :  { %1456 = vmatprep.subr.mxu1 %v275_v23  ;;  %536 = vmatprep.mubr.f32.mxu0 %v50_v24  ;;  %v262_v23 = vld [vmem:[%s2704_s1 + $0x590] sm:$0xff]  ;;  %v213_v24 = vld [vmem:[%s2704_s1 + $0x408] sm:$0xff] }
  0x50   :  { %1415 = vmatpush3.msra.mxu0 %v226_v25  ;;  %1457 = vmatpush3.msra.mxu1 %v259_v26  ;;  %v246_v25 = vld [vmem:[%s2704_s1 + $0x510] sm:$0xff]  ;;  %v228_v26 = vld [vmem:[%s2704_s1 + $0x480] sm:$0xff] }
  0x51   :  { %537 = vmatmul.mubr.f32.gmra.mxu0 %v49_v27  ;;  %1416 = vmatprep.subr.mxu0 %v241_v28  ;;  %v261_v27 = vld [vmem:[%s2704_s1 + $0x588] sm:$0xff]  ;;  %v212_v28 = vld [vmem:[%s2704_s1 + $0x400] sm:$0xff] }
  0x52   :  { %1458 = vmatprep.subr.mxu1 %v274_v29  ;;  %621 = vmatprep.mubr.f32.mxu1 %v52_v30  ;;  %v41_v29 = vld [vmem:[%s2705_s0 + $0x48] sm:$0xff] }
  0x53   :  { %1417 = vmatpush3.msra.mxu0 %v225_v31  ;;  %1459 = vmatpush3.msra.mxu1 %v258_v32  ;;  %v245_v30 = vld [vmem:[%s2704_s1 + $0x508] sm:$0xff]  ;;  %v40_v31 = vld [vmem:[%s2705_s0 + $0x40] sm:$0xff] }
  0x54   :  { %1418 = vmatprep.subr.mxu0 %v240_v33  ;;  %622 = vmatmul.mubr.f32.gmra.mxu1 %v51_v34  ;;  %v260_v32 = vld [vmem:[%s2704_s1 + $0x580] sm:$0xff]  ;;  %v283_v33 = vld [vmem:[%s2704_s1 + $0x638] sm:$0xff] }
  0x55   :  { %1460 = vmatprep.subr.mxu1 %v273_v35  ;;  %541 = vmatprep.mubr.f32.mxu0 %v63_v36  ;;  %v244_v34 = vld [vmem:[%s2704_s1 + $0x500] sm:$0xff]  ;;  %v43_v35 = vld [vmem:[%s2705_s0 + $0x58] sm:$0xff]  ;;  %v42_v36 = vld [vmem:[%s2705_s0 + $0x50] sm:$0xff] }
  0x56   :  { %1419 = vmatpush3.msra.mxu0 %v224_v37  ;;  %1461 = vmatpush3.msra.mxu1 %v257_v38  ;;  %v282_v37 = vld [vmem:[%s2704_s1 + $0x630] sm:$0xff] }
  0x57   :  { %542 = vmatmul.mubr.f32.gmra.mxu0 %v62_v39  ;;  %1420 = vmatprep.subr.mxu0 %v239_v40  ;;  %v54_v38 = vld [vmem:[%s2705_s0 + $0xb0] sm:$0xff]  ;;  %v56_v39 = vld [vmem:[%s2705_s0 + $0xc0] sm:$0xff]  ;;  %v53_v40 = vld [vmem:[%s2705_s0 + $0xa8] sm:$0xff] }
  0x58   :  { %1462 = vmatprep.subr.mxu1 %v272_v41  ;;  %626 = vmatprep.mubr.f32.mxu1 %v65_v42  ;;  %v281_v41 = vld [vmem:[%s2704_s1 + $0x628] sm:$0xff]  ;;  %v55_v42 = vld [vmem:[%s2705_s0 + $0xb8] sm:$0xff] }
  0x59   :  { %1421 = vmatpush3.msra.mxu0 %v223_v43  ;;  %1463 = vmatpush3.msra.mxu1 %v256_v44  ;;  %v280_v43 = vld [vmem:[%s2704_s1 + $0x620] sm:$0xff]  ;;  %v67_v44 = vld [vmem:[%s2705_s0 + $0x118] sm:$0xff] }
  0x5a   :  { %1422 = vmatprep.subr.mxu0 %v238_v45  ;;  %627 = vmatmul.mubr.f32.gmra.mxu1 %v64_v46  ;;  %v69_v45 = vld [vmem:[%s2705_s0 + $0x128] sm:$0xff]  ;;  %v66_v46 = vld [vmem:[%s2705_s0 + $0x110] sm:$0xff] }
  0x5b   :  { %1464 = vmatprep.subr.mxu1 %v271_v47  ;;  %546 = vmatprep.mubr.f32.mxu0 %v76_v48  ;;  %v279_v47 = vld [vmem:[%s2704_s1 + $0x618] sm:$0xff]  ;;  %v68_v48 = vld [vmem:[%s2705_s0 + $0x120] sm:$0xff] }
  0x5c   :  { %1423 = vmatpush3.msra.mxu0 %v222_v49  ;;  %1465 = vmatpush3.msra.mxu1 %v255_v50  ;;  %v278_v49 = vld [vmem:[%s2704_s1 + $0x610] sm:$0xff]  ;;  %v80_v50 = vld [vmem:[%s2705_s0 + $0x180] sm:$0xff] }
  0x5d   :  { %547 = vmatmul.mubr.f32.gmra.mxu0 %v75_v51  ;;  %1424 = vmatprep.subr.mxu0 %v237_v52  ;;  %v82_v51 = vld [vmem:[%s2705_s0 + $0x190] sm:$0xff]  ;;  %v79_v52 = vld [vmem:[%s2705_s0 + $0x178] sm:$0xff] }
  0x5e   :  { %1466 = vmatprep.subr.mxu1 %v270_v53  ;;  %631 = vmatprep.mubr.f32.mxu1 %v78_v54  ;;  %v277_v53 = vld [vmem:[%s2704_s1 + $0x608] sm:$0xff] }
  0x5f   :  { %1425 = vmatpush3.msra.mxu0 %v221_v55  ;;  %1467 = vmatpush3.msra.mxu1 %v254_v56  ;;  %v81_v54 = vld [vmem:[%s2705_s0 + $0x188] sm:$0xff]  ;;  %v276_v55 = vld [vmem:[%s2704_s1 + $0x600] sm:$0xff] }
  0x60   :  { %1426 = vmatprep.subr.mxu0 %v236_v57  ;;  %632 = vmatmul.mubr.f32.gmra.mxu1 %v77_v58  ;;  %v44_v56 = vld [vmem:[%s2705_s0 + $0x60] sm:$0xff]  ;;  %v57_v57 = vld [vmem:[%s2705_s0 + $0xc8] sm:$0xff]  ;;  %v70_v58 = vld [vmem:[%s2705_s0 + $0x130] sm:$0xff] }
  0x61   :  { %1468 = vmatprep.subr.mxu1 %v269_v59  ;;  %1427 = vmatpush3.msra.mxu0 %v220_v60  ;;  %v83_v59 = vld [vmem:[%s2705_s0 + $0x198] sm:$0xff] }
  0x62   :  { %1469 = vmatpush3.msra.mxu1 %v253_v61  ;;  %1428 = vmatprep.subr.mxu0 %v235_v62  ;;  %v935_v60 = vld [vmem:[%s2706_s3 + $0xf8] sm:$0xff]  ;;  %v934_v61 = vld [vmem:[%s2706_s3 + $0xf0] sm:$0xff]  ;;  %v933_v62 = vld [vmem:[%s2706_s3 + $0xe8] sm:$0xff] }
  0x63   :  { %1470 = vmatprep.subr.mxu1 %v268_v63  ;;  %1429 = vmatpush3.msra.mxu0 %v219_v0  ;;  %v932_v63 = vld [vmem:[%s2706_s3 + $0xe0] sm:$0xff]  ;;  %v931_v0 = vld [vmem:[%s2706_s3 + $0xd8] sm:$0xff] }
  0x64   :  { %1471 = vmatpush3.msra.mxu1 %v252_v1  ;;  %1430 = vmatprep.subr.mxu0 %v234_v2  ;;  %v930_v1 = vld [vmem:[%s2706_s3 + $0xd0] sm:$0xff]  ;;  %v929_v2 = vld [vmem:[%s2706_s3 + $0xc8] sm:$0xff] }
  0x65   :  { %1472 = vmatprep.subr.mxu1 %v267_v3  ;;  %1431 = vmatpush3.msra.mxu0 %v218_v4  ;;  %v928_v3 = vld [vmem:[%s2706_s3 + $0xc0] sm:$0xff]  ;;  %v927_v4 = vld [vmem:[%s2706_s3 + $0xb8] sm:$0xff] }
  0x66   :  { %1473 = vmatpush3.msra.mxu1 %v251_v5  ;;  %1432 = vmatprep.subr.mxu0 %v233_v6  ;;  %v926_v5 = vld [vmem:[%s2706_s3 + $0xb0] sm:$0xff]  ;;  %v925_v6 = vld [vmem:[%s2706_s3 + $0xa8] sm:$0xff] }
  0x67   :  { %1474 = vmatprep.subr.mxu1 %v266_v7  ;;  %1433 = vmatpush3.msra.mxu0 %v217_v8  ;;  %v924_v7 = vld [vmem:[%s2706_s3 + $0xa0] sm:$0xff]  ;;  %v923_v8 = vld [vmem:[%s2706_s3 + $0x98] sm:$0xff] }
  0x68   :  { %1475 = vmatpush3.msra.mxu1 %v250_v9  ;;  %1434 = vmatprep.subr.mxu0 %v232_v10  ;;  %v922_v9 = vld [vmem:[%s2706_s3 + $0x90] sm:$0xff]  ;;  %v921_v10 = vld [vmem:[%s2706_s3 + $0x88] sm:$0xff] }
  0x69   :  { %1476 = vmatprep.subr.mxu1 %v265_v11  ;;  %1435 = vmatpush3.msra.mxu0 %v216_v12  ;;  %v920_v11 = vld [vmem:[%s2706_s3 + $0x80] sm:$0xff]  ;;  %v919_v12 = vld [vmem:[%s2706_s3 + $0x78] sm:$0xff] }
  0x6a   :  { %1477 = vmatpush3.msra.mxu1 %v249_v13  ;;  %1436 = vmatprep.subr.mxu0 %v231_v14  ;;  %v918_v13 = vld [vmem:[%s2706_s3 + $0x70] sm:$0xff]  ;;  %v917_v14 = vld [vmem:[%s2706_s3 + $0x68] sm:$0xff] }
  0x6b   :  { %1478 = vmatprep.subr.mxu1 %v264_v15  ;;  %1437 = vmatpush3.msra.mxu0 %v215_v16  ;;  %v916_v15 = vld [vmem:[%s2706_s3 + $0x60] sm:$0xff]  ;;  %v915_v16 = vld [vmem:[%s2706_s3 + $0x58] sm:$0xff] }
  0x6c   :  { %1479 = vmatpush3.msra.mxu1 %v248_v17  ;;  %1438 = vmatprep.subr.mxu0 %v230_v18  ;;  %v914_v17 = vld [vmem:[%s2706_s3 + $0x50] sm:$0xff]  ;;  %v913_v18 = vld [vmem:[%s2706_s3 + $0x48] sm:$0xff] }
  0x6d   :  { %1480 = vmatprep.subr.mxu1 %v263_v19  ;;  %1439 = vmatpush3.msra.mxu0 %v214_v20  ;;  %v912_v19 = vld [vmem:[%s2706_s3 + $0x40] sm:$0xff]  ;;  %v911_v20 = vld [vmem:[%s2706_s3 + $0x38] sm:$0xff] }
  0x6e   :  { %1481 = vmatpush3.msra.mxu1 %v247_v21  ;;  %1440 = vmatprep.subr.mxu0 %v229_v22  ;;  %v910_v21 = vld [vmem:[%s2706_s3 + $0x30] sm:$0xff]  ;;  %v909_v22 = vld [vmem:[%s2706_s3 + $0x28] sm:$0xff] }
  0x6f   :  { %1482 = vmatprep.subr.mxu1 %v262_v23  ;;  %1441 = vmatpush3.msra.mxu0 %v213_v24  ;;  %v908_v23 = vld [vmem:[%s2706_s3 + $0x20] sm:$0xff]  ;;  %v907_v24 = vld [vmem:[%s2706_s3 + $0x18] sm:$0xff] }
  0x70   :  { %1483 = vmatpush3.msra.mxu1 %v246_v25  ;;  %1442 = vmatprep.subr.mxu0 %v228_v26  ;;  %v906_v25 = vld [vmem:[%s2706_s3 + $0x10] sm:$0xff]  ;;  %v905_v26 = vld [vmem:[%s2706_s3 + $0x8] sm:$0xff] }
  0x71   :  { %1484 = vmatprep.subr.mxu1 %v261_v27  ;;  %1443 = vmatpush3.msra.mxu0 %v212_v28  ;;  %v904_v27 = vld [vmem:[%s2706_s3] sm:$0xff]  ;;  %v1623_v28 = vmov 0.0  }
  0x72   :  { %701 = vmatprep.mubr.f32.mxu0 %v41_v29  ;;  %1485 = vmatpush3.msra.mxu1 %v245_v30  ;;  %v1052_v29 = vld [vmem:[%s2707_s5 + $0xf8] sm:$0xff] }
  0x73   :  { %702 = vmatmul.mubr.f32.vlgmr.msra.gmra.mxu0 %v40_v31  ;;  %1486 = vmatprep.subr.mxu1 %v260_v32  ;;  %v1036_v30 = vld [vmem:[%s2707_s5 + $0x78] sm:$0xff]  ;;  %v1051_v31 = vld [vmem:[%s2707_s5 + $0xf0] sm:$0xff] }
  0x74   :  { %1564 = vmatprep.subr.mxu0 %v283_v33  ;;  %1487 = vmatpush3.msra.mxu1 %v244_v34  ;;  %v1035_v32 = vld [vmem:[%s2707_s5 + $0x70] sm:$0xff]  ;;  %v1034_v34 = vld [vmem:[%s2707_s5 + $0x68] sm:$0xff] }
  0x75   :  { %786 = vmatprep.mubr.f32.mxu1 %v43_v35  ;;  %1565 = vmatpush3.msra.mxu0 %v283_v33  ;;  %v1050_v33 = vld [vmem:[%s2707_s5 + $0xe8] sm:$0xff]  ;;  %v1049_v35 = vld [vmem:[%s2707_s5 + $0xe0] sm:$0xff] }
  0x76   :  { %787 = vmatmul.mubr.f32.vlgmr.msra.gmra.mxu1 %v42_v36  ;;  %1566 = vmatprep.subr.mxu0 %v282_v37  ;;  %v1033_v36 = vld [vmem:[%s2707_s5 + $0x60] sm:$0xff] }
  0x77   :  { %706 = vmatprep.mubr.f32.mxu0 %v54_v38  ;;  %1567 = vmatpush3.msra.mxu0 %v282_v37  ;;  %v1048_v37 = vld [vmem:[%s2707_s5 + $0xd8] sm:$0xff] }
  0x78   :  { %791 = vmatprep.mubr.f32.mxu1 %v56_v39  ;;  %707 = vmatmul.mubr.f32.gmra.mxu0 %v53_v40  ;;  %v1032_v38 = vld [vmem:[%s2707_s5 + $0x58] sm:$0xff]  ;;  %v1047_v39 = vld [vmem:[%s2707_s5 + $0xd0] sm:$0xff] }
  0x79   :  { %1568 = vmatprep.subr.mxu0 %v281_v41  ;;  %711 = vmatprep.mubr.f32.mxu0 %v67_v44  ;;  %v1031_v40 = vld [vmem:[%s2707_s5 + $0x50] sm:$0xff]  ;;  %v1029_v44 = vld [vmem:[%s2707_s5 + $0x40] sm:$0xff] }
  0x7a   :  { %1569 = vmatpush3.msra.mxu0 %v281_v41  ;;  %792 = vmatmul.mubr.f32.gmra.mxu1 %v55_v42  ;;  %v1046_v41 = vld [vmem:[%s2707_s5 + $0xc8] sm:$0xff] }
  0x7b   :  { %1570 = vmatprep.subr.mxu0 %v280_v43  ;;  %796 = vmatprep.mubr.f32.mxu1 %v69_v45  ;;  %v1030_v42 = vld [vmem:[%s2707_s5 + $0x48] sm:$0xff]  ;;  %v1044_v45 = vld [vmem:[%s2707_s5 + $0xb8] sm:$0xff] }
  0x7c   :  { %1571 = vmatpush3.msra.mxu0 %v280_v43  ;;  %948 = vmatprep.subr.mxu1 %v935_v60  ;;  %v1045_v43 = vld [vmem:[%s2707_s5 + $0xc0] sm:$0xff] }
  0x7d   :  { %712 = vmatmul.mubr.f32.gmra.mxu0 %v66_v46  ;;  %1572 = vmatprep.subr.mxu0 %v279_v47  ;;  %v1028_v46 = vld [vmem:[%s2707_s5 + $0x38] sm:$0xff] }
  0x7e   :  { %1573 = vmatpush3.msra.mxu0 %v279_v47  ;;  %797 = vmatmul.mubr.f32.gmra.mxu1 %v68_v48  ;;  %v1043_v47 = vld [vmem:[%s2707_s5 + $0xb0] sm:$0xff] }
  0x7f   :  { %1574 = vmatprep.subr.mxu0 %v278_v49  ;;  %716 = vmatprep.mubr.f32.mxu0 %v80_v50  ;;  %v1027_v48 = vld [vmem:[%s2707_s5 + $0x30] sm:$0xff]  ;;  %v1026_v50 = vld [vmem:[%s2707_s5 + $0x28] sm:$0xff] }
  0x80   :  { %1575 = vmatpush3.msra.mxu0 %v278_v49  ;;  %801 = vmatprep.mubr.f32.mxu1 %v82_v51  ;;  %v1042_v49 = vld [vmem:[%s2707_s5 + $0xa8] sm:$0xff]  ;;  %v1041_v51 = vld [vmem:[%s2707_s5 + $0xa0] sm:$0xff] }
  0x81   :  { %717 = vmatmul.mubr.f32.gmra.mxu0 %v79_v52  ;;  %1576 = vmatprep.subr.mxu0 %v277_v53  ;;  %v1025_v52 = vld [vmem:[%s2707_s5 + $0x20] sm:$0xff] }
  0x82   :  { %1577 = vmatpush3.msra.mxu0 %v277_v53  ;;  %802 = vmatmul.mubr.f32.gmra.mxu1 %v81_v54 }
  0x83   :  { %1578 = vmatprep.subr.mxu0 %v276_v55  ;;  %1580 = vmatprep.mubr.msk.f32.mxu0 %vm284_vm0, %v44_v56 }
  0x84   :  { %1579 = vmatpush3.msra.mxu0 %v276_v55  ;;  %949 = vmatpush1.msra.mxu1 %v934_v61 }
  0x85   :  { %1581 = vmatmul.mubr.msk.f32.vlgmr.msra.gmra.mxu0 %vm284_vm0, %v57_v57  ;;  %950 = vmatprep.subr.mxu1 %v933_v62 }
  0x86   :  { %1583 = vmatprep.mubr.msk.f32.mxu0 %vm284_vm0, %v70_v58  ;;  %951 = vmatpush1.msra.mxu1 %v932_v63 }
  0x87   :  { %952 = vmatprep.subr.mxu1 %v931_v0  ;;  %1012 = vmatprep.mubr.f32.mxu1 %v1623_v28 }
  0x88   :  { %953 = vmatpush1.msra.mxu1 %v930_v1  ;;  %1512 = vmatprep.subr.mxu0 %v1052_v29 }
  0x89   :  { %1584 = vmatmul.mubr.msk.f32.gmra.mxu0 %vm284_vm0, %v83_v59  ;;  %954 = vmatprep.subr.mxu1 %v929_v2 }
  0x8a   :  { %955 = vmatpush1.msra.mxu1 %v928_v3  ;;  %1513 = vmatpush3.msra.mxu0 %v1036_v30 }
  0x8b   :  { %956 = vmatprep.subr.mxu1 %v927_v4  ;;  %1514 = vmatprep.subr.mxu0 %v1051_v31 }
  0x8c   :  { %957 = vmatpush1.msra.mxu1 %v926_v5  ;;  %1515 = vmatpush3.msra.mxu0 %v1035_v32 }
  0x8d   :  { %958 = vmatprep.subr.mxu1 %v925_v6  ;;  %1516 = vmatprep.subr.mxu0 %v1050_v33 }
  0x8e   :  { %959 = vmatpush1.msra.mxu1 %v924_v7  ;;  %1517 = vmatpush3.msra.mxu0 %v1034_v34 }
  0x8f   :  { %960 = vmatprep.subr.mxu1 %v923_v8  ;;  %1518 = vmatprep.subr.mxu0 %v1049_v35 }
  0x90   :  { %961 = vmatpush1.msra.mxu1 %v922_v9  ;;  %1519 = vmatpush3.msra.mxu0 %v1033_v36 }
  0x91   :  { %962 = vmatprep.subr.mxu1 %v921_v10  ;;  %1520 = vmatprep.subr.mxu0 %v1048_v37 }
  0x92   :  { %963 = vmatpush1.msra.mxu1 %v920_v11  ;;  %1521 = vmatpush3.msra.mxu0 %v1032_v38 }
  0x93   :  { %964 = vmatprep.subr.mxu1 %v919_v12  ;;  %1522 = vmatprep.subr.mxu0 %v1047_v39 }
  0x94   :  { %965 = vmatpush1.msra.mxu1 %v918_v13  ;;  %1523 = vmatpush3.msra.mxu0 %v1031_v40 }
  0x95   :  { %966 = vmatprep.subr.mxu1 %v917_v14  ;;  %1524 = vmatprep.subr.mxu0 %v1046_v41 }
  0x96   :  { %967 = vmatpush1.msra.mxu1 %v916_v15  ;;  %1525 = vmatpush3.msra.mxu0 %v1030_v42 }
  0x97   :  { %968 = vmatprep.subr.mxu1 %v915_v16  ;;  %1526 = vmatprep.subr.mxu0 %v1045_v43 }
  0x98   :  { %969 = vmatpush1.msra.mxu1 %v914_v17  ;;  %1527 = vmatpush3.msra.mxu0 %v1029_v44 }
  0x99   :  { %970 = vmatprep.subr.mxu1 %v913_v18  ;;  %1528 = vmatprep.subr.mxu0 %v1044_v45 }
  0x9a   :  { %971 = vmatpush1.msra.mxu1 %v912_v19  ;;  %1529 = vmatpush3.msra.mxu0 %v1028_v46 }
  0x9b   :  { %972 = vmatprep.subr.mxu1 %v911_v20  ;;  %1530 = vmatprep.subr.mxu0 %v1043_v47 }
  0x9c   :  { %973 = vmatpush1.msra.mxu1 %v910_v21  ;;  %1531 = vmatpush3.msra.mxu0 %v1027_v48 }
  0x9d   :  { %974 = vmatprep.subr.mxu1 %v909_v22  ;;  %1532 = vmatprep.subr.mxu0 %v1042_v49 }
  0x9e   :  { %975 = vmatpush1.msra.mxu1 %v908_v23  ;;  %1533 = vmatpush3.msra.mxu0 %v1026_v50 }
  0x9f   :  { %976 = vmatprep.subr.mxu1 %v907_v24  ;;  %1534 = vmatprep.subr.mxu0 %v1041_v51 }
  0xa0   :  { %977 = vmatpush1.msra.mxu1 %v906_v25  ;;  %1535 = vmatpush3.msra.mxu0 %v1025_v52 }
  0xa1   :  { %978 = vmatprep.subr.mxu1 %v905_v26 }
  0xa2   :  { %979 = vmatpush1.msra.mxu1 %v904_v27 }
  0xa3   :  { %1586 = vmatprep.subr.mxu1 %v1623_v28 }
  0xe4   :  { %v1268_v53 = vpop.f32.mrf.mxu0 }
  0xe5   :  { %v1312_v55 = vpop.f32.mrf.mxu1 }
  0xe6   :  { %v1269_v54 = vpop.f32.mrf.mxu0 }
  0xe7   :  { %v1313_v57 = vpop.f32.mrf.mxu1  ;;  %v1270_v24 = vadd.f32 %v1269_v54, %v1268_v53 }
  0xe8   :  { %v1314_v25 = vadd.f32 %v1313_v57, %v1312_v55 }
  0xea   :  { %v449_v40 = vadd.f32 %v1314_v25, %v1270_v24 }
  0xf8   :  { %v1271_v56 = vpop.f32.mrf.mxu0 }
  0xf9   :  { %v1315_v59 = vpop.f32.mrf.mxu1 }
  0xfa   :  { %v1272_v58 = vpop.f32.mrf.mxu0 }
  0xfb   :  { %v1316_v61 = vpop.f32.mrf.mxu1  ;;  %v1273_v27 = vadd.f32 %v1272_v58, %v1271_v56 }
  0xfc   :  { %v1317_v29 = vadd.f32 %v1316_v61, %v1315_v59 }
  0xfe   :  { %v1274_v60 = vpop.f32.mrf.mxu0  ;;  %v454_v43 = vadd.f32 %v1317_v29, %v1273_v27  ;;  %v1233_v29 = vld [vmem:[%s2708_s2] ss:$0 sm:$0xff] }
  0xff   :  { %v1318_v63 = vpop.f32.mrf.mxu1 }
 0x100   :  { %v1275_v62 = vpop.f32.mrf.mxu0 }
 0x101   :  { %v1319_v1 = vpop.f32.mrf.mxu1  ;;  %v1276_v30 = vadd.f32 %v1275_v62, %v1274_v60 }
 0x102   :  { %v1320_v31 = vadd.f32 %v1319_v1, %v1318_v63 }
 0x104   :  { %v1277_v0 = vpop.f32.mrf.mxu0  ;;  %v459_v44 = vadd.f32 %v1320_v31, %v1276_v30 }
 0x105   :  { %v1321_v3 = vpop.f32.mrf.mxu1 }
 0x106   :  { %v1278_v2 = vpop.f32.mrf.mxu0 }
 0x107   :  { %v1322_v5 = vpop.f32.mrf.mxu1  ;;  %v1279_v33 = vadd.f32 %v1278_v2, %v1277_v0 }
 0x108   :  { %v1323_v34 = vadd.f32 %v1322_v5, %v1321_v3 }
 0x10a   :  { %v464_v46 = vadd.f32 %v1323_v34, %v1279_v33  ;;  %v1040_v33 = vld [vmem:[%s2707_s5 + $0x98] sm:$0xff] }
 0x10b   :  { %v1356_v4 = vpop.f32.mrf.mxu0  ;;  %1536 = vmatprep.subr.mxu0 %v1040_v33  ;;  %v1024_v34 = vld [vmem:[%s2707_s5 + $0x18] sm:$0xff] }
 0x10c   :  { %1537 = vmatpush3.msra.mxu0 %v1024_v34 }
 0x10d   :  { %v1357_v7 = vpop.f32.mrf.mxu0 }
 0x10e   :  { %v1400_v6 = vpop.f32.mrf.mxu1  ;;  %v1358_v35 = vadd.f32 %v1357_v7, %v1356_v4 }
 0x110   :  { %v1401_v8 = vpop.f32.mrf.mxu1  ;;  %v534_v47 = vadd.f32 %v1358_v35, %v449_v40  ;;  %v1039_v35 = vld [vmem:[%s2707_s5 + $0x90] sm:$0xff]  ;;  %v1021_v40 = vld [vmem:[%s2707_s5] sm:$0xff] }
 0x111   :  { %v1359_v9 = vpop.f32.mrf.mxu0  ;;  %v1402_v48 = vadd.f32 %v1401_v8, %v1400_v6  ;;  %1538 = vmatprep.subr.mxu0 %v1039_v35 }
 0x113   :  { %v1360_v11 = vpop.f32.mrf.mxu0  ;;  %v619_v60 = vadd.f32 %v1402_v48, %v534_v47  ;;  %v1140_v47 = vld [vmem:[%s2709_s7 + $0x48] sm:$0xff]  ;;  %v1139_v48 = vld [vmem:[%s2709_s7 + $0x40] sm:$0xff] }
 0x114   :  { %v1403_v10 = vpop.f32.mrf.mxu1  ;;  %v1361_v37 = vadd.f32 %v1360_v11, %v1359_v9 }
 0x116   :  { %v1404_v12 = vpop.f32.mrf.mxu1  ;;  %v539_v50 = vadd.f32 %v1361_v37, %v454_v43  ;;  %v1038_v37 = vld [vmem:[%s2707_s5 + $0x88] sm:$0xff] }
 0x117   :  { %v1362_v13 = vpop.f32.mrf.mxu0  ;;  %v1405_v51 = vadd.f32 %v1404_v12, %v1403_v10  ;;  %v1144_v43 = vld [vmem:[%s2709_s7 + $0x68] sm:$0xff] }
 0x119   :  { %v1363_v15 = vpop.f32.mrf.mxu0  ;;  %v624_v0 = vadd.f32 %v1405_v51, %v539_v50  ;;  %v1137_v50 = vld [vmem:[%s2709_s7 + $0x30] sm:$0xff]  ;;  %v1136_v51 = vld [vmem:[%s2709_s7 + $0x28] sm:$0xff] }
 0x11a   :  { %v1406_v14 = vpop.f32.mrf.mxu1  ;;  %v1364_v38 = vadd.f32 %v1363_v15, %v1362_v13 }
 0x11c   :  { %v1407_v16 = vpop.f32.mrf.mxu1  ;;  %v544_v52 = vadd.f32 %v1364_v38, %v459_v44  ;;  %v1022_v38 = vld [vmem:[%s2707_s5 + $0x8] sm:$0xff]  ;;  %v1143_v44 = vld [vmem:[%s2709_s7 + $0x60] sm:$0xff] }
 0x11d   :  { %v1365_v17 = vpop.f32.mrf.mxu0  ;;  %v1408_v53 = vadd.f32 %v1407_v16, %v1406_v14 }
 0x11f   :  { %v1366_v19 = vpop.f32.mrf.mxu0  ;;  %v629_v1 = vadd.f32 %v1408_v53, %v544_v52  ;;  %v938_v52 = vlaneseq }
 0x120   :  { %v1409_v18 = vpop.f32.mrf.mxu1  ;;  %v1367_v41 = vadd.f32 %v1366_v19, %v1365_v17 }
 0x121   :  { %v939_v53 = vshrl.u32 %v938_v52, 7 }
 0x122   :  { %v1410_v21 = vpop.f32.mrf.mxu1  ;;  %v549_v55 = vadd.f32 %v1367_v41, %v464_v46  ;;  %v1146_v41 = vld [vmem:[%s2709_s7 + $0x78] sm:$0xff]  ;;  %v1141_v46 = vld [vmem:[%s2709_s7 + $0x50] sm:$0xff] }
 0x123   :  { %v1411_v56 = vadd.f32 %v1410_v21, %v1409_v18 }
 0x125   :  { %v634_v3 = vadd.f32 %v1411_v56, %v549_v55  ;;  %v936_v55 = vld [vmem:[%s2710_s4] sm:$0x3]  ;;  %v944_v56 = vsub.s32 1, %v939_v53 }
 0x133   :  { %v1444_v20 = vpop.f32.mrf.mxu0 }
 0x135   :  { %v1445_v22 = vpop.f32.mrf.mxu0 }
 0x136   :  { %v1488_v23 = vpop.f32.mrf.mxu1  ;;  %v1446_v57 = vadd.f32 %v1445_v22, %v1444_v20 }
 0x138   :  { %v1489_v26 = vpop.f32.mrf.mxu1  ;;  %v1447_v32 = vpop.f32.mrf.mxu0  ;;  %v704_v4 = vadd.f32 %v1446_v57, %v619_v60 }
 0x139   :  { %v1490_v5 = vadd.f32 %v1489_v26, %v1488_v23 }
 0x13a   :  { %v1491_v36 = vpop.f32.mrf.mxu1  ;;  %v1448_v39 = vpop.f32.mrf.mxu0 }
 0x13b   :  { %v1449_v61 = vadd.f32 %v1448_v39, %v1447_v32  ;;  %v789_v16 = vadd.f32 %v1490_v5, %v704_v4  ;;  %v1037_v39 = vld [vmem:[%s2707_s5 + $0x80] sm:$0xff]  ;;  %v1132_v4 = vld [vmem:[%s2709_s7 + $0x8] sm:$0xff] }
 0x13c   :  { %v1492_v42 = vpop.f32.mrf.mxu1  ;;  %v1131_v5 = vld [vmem:[%s2709_s7] sm:$0xff] }
 0x13d   :  { %v1450_v45 = vpop.f32.mrf.mxu0  ;;  %v1493_v8 = vadd.f32 %v1492_v42, %v1491_v36  ;;  %v709_v11 = vadd.f32 %v1449_v61, %v624_v0  ;;  %v1023_v36 = vld [vmem:[%s2707_s5 + $0x10] sm:$0xff] }
 0x13e   :  { %v1494_v49 = vpop.f32.mrf.mxu1  ;;  %1539 = vmatpush3.msra.mxu0 %v1023_v36  ;;  %v1145_v42 = vld [vmem:[%s2709_s7 + $0x70] sm:$0xff] }
 0x13f   :  { %v1451_v54 = vpop.f32.mrf.mxu0  ;;  %v794_v19 = vadd.f32 %v1493_v8, %v709_v11  ;;  %1540 = vmatprep.subr.mxu0 %v1038_v37 }
 0x140   :  { %v1495_v58 = vpop.f32.mrf.mxu1  ;;  %v1452_v62 = vadd.f32 %v1451_v54, %v1450_v45  ;;  %1541 = vmatpush3.msra.mxu0 %v1022_v38  ;;  %v1142_v45 = vld [vmem:[%s2709_s7 + $0x58] sm:$0xff]  ;;  %v940_v54 = vsub.s32 0, %v939_v53 }
 0x141   :  { %v1453_v59 = vpop.f32.mrf.mxu0  ;;  %v1496_v13 = vadd.f32 %v1495_v58, %v1494_v49  ;;  %1542 = vmatprep.subr.mxu0 %v1037_v39  ;;  %v1138_v49 = vld [vmem:[%s2709_s7 + $0x38] sm:$0xff]  ;;  %v945_v58 = vrot.slane %v936_v55, %v944_v56 }
 0x142   :  { %v1497_v63 = vpop.f32.mrf.mxu1  ;;  %v714_v12 = vadd.f32 %v1452_v62, %v629_v1  ;;  %1543 = vmatpush3.msra.mxu0 %v1021_v40  ;;  %v941_v57 = vrot.slane %v936_v55, %v940_v54  ;;  %v1135_v1 = vld [vmem:[%s2709_s7 + $0x20] sm:$0xff] }
 0x143   :  { %v1454_v2 = vpop.f32.mrf.mxu0 }
 0x144   :  { %v1455_v6 = vadd.f32 %v1454_v2, %v1453_v59  ;;  %v1498_v7 = vpop.f32.mrf.mxu1  ;;  %v799_v21 = vadd.f32 %v1496_v13, %v714_v12  ;;  %v1134_v2 = vld [vmem:[%s2709_s7 + $0x18] sm:$0xff]  ;;  %v1235_v12 = vld [vmem:[%s2712_s8] ss:$0 sm:$0xff] }
 0x145   :  { %v1499_v9 = vadd.f32 %v1498_v7, %v1497_v63  ;;  %v1582_v10 = vpop.f32.mrf.mxu0  ;;  %v1234_v7 = vld [vmem:[%s2711_s6] ss:$0 sm:$0xff] }
 0x146   :  { %v719_v14 = vadd.f32 %v1455_v6, %v634_v3  ;;  %v879_v24 = vadd.f32 %v1582_v10, %v794_v19  ;;  %v1133_v3 = vld [vmem:[%s2709_s7 + $0x10] sm:$0xff] }
 0x147   :  { %v873_v15 = vpop.f32.mrf.mxu0 }
 0x148   :  { %v804_v17 = vadd.f32 %v1499_v9, %v719_v14  ;;  %v874_v20 = vadd.f32 %v873_v15, %v789_v16 }
 0x149   :  { %v1585_v18 = vpop.f32.mrf.mxu0 }
 0x14a   :  { %v889_v25 = vadd.f32 %v1585_v18, %v804_v17  ;;  %v892_v26 = vmax.f32 %v874_v20, %v879_v24 }
 0x14b   :  { %v883_v22 = vpop.f32.mrf.mxu0 }
 0x14c   :  { %v884_v23 = vadd.f32 %v883_v22, %v799_v21 }
 0x14e   :  { %v893_v27 = vmax.f32 %v884_v23, %v889_v25 }
 0x150   :  { %v894_v30 = vmax.f32 %v892_v26, %v893_v27 }
 0x152   :  { %v902_v31 = vadd.f32 %v1233_v29, %v894_v30 }
 0x154   :  { %v903_v32 = vmax.f32 %v902_v31, 0.0 }
 0x156   :  { %1013 = vmatmul.mubr.f32.vlgmr.msra.gmra.mxu1 %v903_v32 }
 0x157   :  { %1587 = vmatpush3.msra.mxu1 %v1146_v41  ;;  %1618 = vmatprep.mubr.msk.f32.mxu1 %vm1624_vm1, %v1623_v28 }
 0x158   :  { %1588 = vmatprep.subr.mxu1 %v1623_v28 }
 0x159   :  { %1589 = vmatpush3.msra.mxu1 %v1145_v42 }
 0x15a   :  { %1590 = vmatprep.subr.mxu1 %v1623_v28 }
 0x15b   :  { %1591 = vmatpush3.msra.mxu1 %v1144_v43 }
 0x15c   :  { %1592 = vmatprep.subr.mxu1 %v1623_v28 }
 0x15d   :  { %1593 = vmatpush3.msra.mxu1 %v1143_v44 }
 0x15e   :  { %1594 = vmatprep.subr.mxu1 %v1623_v28 }
 0x15f   :  { %1595 = vmatpush3.msra.mxu1 %v1142_v45 }
 0x160   :  { %1596 = vmatprep.subr.mxu1 %v1623_v28 }
 0x161   :  { %1597 = vmatpush3.msra.mxu1 %v1141_v46 }
 0x162   :  { %1598 = vmatprep.subr.mxu1 %v1623_v28 }
 0x163   :  { %1599 = vmatpush3.msra.mxu1 %v1140_v47 }
 0x164   :  { %1600 = vmatprep.subr.mxu1 %v1623_v28 }
 0x165   :  { %1601 = vmatpush3.msra.mxu1 %v1139_v48 }
 0x166   :  { %1602 = vmatprep.subr.mxu1 %v1623_v28 }
 0x167   :  { %1603 = vmatpush3.msra.mxu1 %v1138_v49 }
 0x168   :  { %1604 = vmatprep.subr.mxu1 %v1623_v28 }
 0x169   :  { %1605 = vmatpush3.msra.mxu1 %v1137_v50 }
 0x16a   :  { %1606 = vmatprep.subr.mxu1 %v1623_v28 }
 0x16b   :  { %1607 = vmatpush3.msra.mxu1 %v1136_v51 }
 0x16c   :  { %1608 = vmatprep.subr.mxu1 %v1623_v28 }
 0x16d   :  { %1609 = vmatpush3.msra.mxu1 %v1135_v1 }
 0x16e   :  { %1610 = vmatprep.subr.mxu1 %v1623_v28 }
 0x16f   :  { %1611 = vmatpush3.msra.mxu1 %v1134_v2 }
 0x170   :  { %1612 = vmatprep.subr.mxu1 %v1623_v28 }
 0x171   :  { %1613 = vmatpush3.msra.mxu1 %v1133_v3 }
 0x172   :  { %1614 = vmatprep.subr.mxu1 %v1623_v28 }
 0x173   :  { %1615 = vmatpush3.msra.mxu1 %v1132_v4 }
 0x174   :  { %1616 = vmatprep.subr.mxu1 %v1623_v28 }
 0x175   :  { %1617 = vmatpush3.msra.mxu1 %v1131_v5 }
 0x216   :  { %v1014_v59 = vpop.f32.mrf.mxu1 }
 0x217   :  { %v1015_v60 = vadd.f32 %v1014_v59, %v941_v57 }
 0x218   :  { %v1016_v61 = vpop.f32.mrf.mxu1 }
 0x219   :  { %v1017_v62 = vadd.f32 %v1016_v61, %v945_v58  ;;  %v1019_v0 = vmax.f32 %v1015_v60, 0.0 }
 0x21b   :  { %v1020_v63 = vmax.f32 %v1017_v62, 0.0 }
 0x21d   :  { %1124 = vmatprep.mubr.f32.mxu0 %v1020_v63 }
 0x21e   :  { %1125 = vmatmul.mubr.f32.vlgmr.msra.gmra.mxu0 %v1019_v0 }
 0x2de   :  { %v1544_v6 = vpop.f32.mrf.mxu0 }
 0x2e0   :  { %v1545_v8 = vpop.f32.mrf.mxu0 }
 0x2e1   :  { %v1546_v9 = vadd.f32 %v1545_v8, %v1544_v6 }
 0x2e3   :  { %v1127_v10 = vadd.f32 %v1546_v9, %v1234_v7 }
 0x2e5   :  { %v1130_v11 = vmax.f32 %v1127_v10, 0.0 }
 0x2e7   :  { %1619 = vmatmul.mubr.f32.vlgmr.msra.gmra.mxu1 %v1130_v11 }
 0x3a7   :  { %v1220_v13 = vpop.f32.mrf.mxu1 }
 0x3a8   :  { %v1221_v14 = vadd.f32 %v1235_v12, %v1220_v13 }
 0x3a9   :  { %v1620_v15 = vpop.f32.mrf.mxu1 }
 0x3aa   :  { %1224 = vst [vmem:[%s2713_s9] sm:$0xff] %v1221_v14 }

</bundles_post_ra>
